<compile_context>
chip_gen: v7x
topology: tpu7x:2x2x1
jax: 0.10.0
libtpu: 0.0.40
codegen_flags: <defaults>
</compile_context>

<pallas_src>
import math
from functools import partial

import jax
import jax.numpy as jnp
from jax.experimental import pallas as pl
from jax.experimental.pallas import tpu as pltpu


# ------------------------ in-kernel building blocks -------------------------

def _layernorm(z, g, b, eps=1e-5):
    mu = jnp.mean(z, axis=-1, keepdims=True)
    c = z - mu
    var = jnp.mean(c * c, axis=-1, keepdims=True)
    return c * jax.lax.rsqrt(var + eps) * g + b


def _mha(x, wqkv_t, bqkv, wo_t, bo, num_heads):
    """nn.MultiheadAttention (batch_first, eval) for one batch element.

    x: (T, E); wqkv_t: (E, 3E) pre-transposed; wo_t: (E, E) pre-transposed.
    Fused QKV matmul; heads merged by accumulating ctx_h @ Wo_t[h-rows]
    (no lane-axis concat).  Static loop over heads (small head count).
    """
    t, e = x.shape
    hd = e // num_heads
    scale = 1.0 / math.sqrt(hd)
    qkv = jnp.dot(x, wqkv_t, preferred_element_type=jnp.float32) + bqkv  # (T,3E)
    acc = jnp.zeros((t, e), jnp.float32)
    for h in range(num_heads):                                  # static unroll
        q = qkv[:, h * hd:(h + 1) * hd] * scale
        k = qkv[:, e + h * hd:e + (h + 1) * hd]
        v = qkv[:, 2 * e + h * hd:2 * e + (h + 1) * hd]
        s = jnp.dot(q, k.T, preferred_element_type=jnp.float32)         # (T,T)
        s = s - jnp.max(s, axis=-1, keepdims=True)
        p = jnp.exp(s)
        p = p * pl.reciprocal(jnp.sum(p, axis=-1, keepdims=True), approx=True)
        ctx = jnp.dot(p, v, preferred_element_type=jnp.float32)         # (T,hd)
        acc = acc + jnp.dot(ctx, wo_t[h * hd:(h + 1) * hd, :],
                            preferred_element_type=jnp.float32)
    return acc + bo


# ------------------------------ fused kernel --------------------------------

_WEIGHT_ORDER = (
    "w_in", "b_in",
    "a1_wqkv", "a1_bqkv", "a1_wo", "a1_bo",
    "a2_wqkv", "a2_bqkv", "a2_wo", "a2_bo",
    "ffn1_w", "ffn1_b", "ffn2_w", "ffn2_b",
    "lyr_wqkv", "lyr_bqkv", "lyr_wo", "lyr_bo",
    "lyr_w1", "lyr_b1", "lyr_w2", "lyr_b2",
    "lyr_ln1_g", "lyr_ln1_b", "lyr_ln2_g", "lyr_ln2_b",
    "w_out", "b_out", "c1_w", "c1_b", "c2_w", "c2_b",
)


def _make_kernel(num_heads, num_layers, use_stillness, ln_eps=1e-5):
    def kernel(*refs):
        it = iter(refs)
        x_ref = next(it)
        pe_out_ref = next(it)
        pe_ff_ref = next(it)
        still_ref = next(it) if use_stillness else None
        (w_in_ref, b_in_ref,
         a1_wqkv_ref, a1_bqkv_ref, a1_wo_ref, a1_bo_ref,
         a2_wqkv_ref, a2_bqkv_ref, a2_wo_ref, a2_bo_ref,
         ffn1_w_ref, ffn1_b_ref, ffn2_w_ref, ffn2_b_ref,
         lw_qkv_ref, lb_qkv_ref, lw_o_ref, lb_o_ref,
         lw1_ref, lb1_ref, lw2_ref, lb2_ref,
         ln1_g_ref, ln1_b_ref, ln2_g_ref, ln2_b_ref,
         w_out_ref, b_out_ref, c1_w_ref, c1_b_ref, c2_w_ref, c2_b_ref,
         out_ref, logits_ref) = tuple(it)

        x = x_ref[0]                                             # (T, in_dim)
        # input_proj with fused positional-encoding epilogue
        h = (jnp.dot(x, w_in_ref[...], preferred_element_type=jnp.float32)
             + b_in_ref[...] + pe_out_ref[...])
        # attn1 / attn2
        h = _mha(h, a1_wqkv_ref[...], a1_bqkv_ref[...],
                 a1_wo_ref[...], a1_bo_ref[...], num_heads)
        h = _mha(h, a2_wqkv_ref[...], a2_bqkv_ref[...],
                 a2_wo_ref[...], a2_bo_ref[...], num_heads)
        # ffn (E -> 2E -> E) with fused pos_encoder (+ stillness) epilogue
        f = jnp.maximum(jnp.dot(h, ffn1_w_ref[...],
                                preferred_element_type=jnp.float32)
                        + ffn1_b_ref[...], 0.0)
        h = (jnp.dot(f, ffn2_w_ref[...], preferred_element_type=jnp.float32)
             + ffn2_b_ref[...] + pe_ff_ref[...])
        if use_stillness:
            h = h + still_ref[0]
        # nn.TransformerEncoderLayer stack (post-norm, relu, eval: dropout off)
        for l in range(num_layers):                              # static unroll
            a = _mha(h, lw_qkv_ref[l], lb_qkv_ref[l],
                     lw_o_ref[l], lb_o_ref[l], num_heads)
            h = _layernorm(h + a, ln1_g_ref[l], ln1_b_ref[l], ln_eps)
            f = jnp.maximum(jnp.dot(h, lw1_ref[l],
                                    preferred_element_type=jnp.float32)
                            + lb1_ref[l], 0.0)
            f = jnp.dot(f, lw2_ref[l],
                        preferred_element_type=jnp.float32) + lb2_ref[l]
            h = _layernorm(h + f, ln2_g_ref[l], ln2_b_ref[l], ln_eps)
        # output_proj
        out = (jnp.dot(h, w_out_ref[...], preferred_element_type=jnp.float32)
               + b_out_ref[...])
        out_ref[0] = out
        # meaning classifier (computed on the full (T,·) tile, last row kept;
        # at T=8 this is one sublane tile so the extra rows are free — for
        # long T slice the last token first or split into a tiny second call)
        t = out.shape[0]
        c = jnp.maximum(jnp.dot(out, c1_w_ref[...],
                                preferred_element_type=jnp.float32)
                        + c1_b_ref[...], 0.0)
        lg = jnp.dot(c, c2_w_ref[...],
                     preferred_element_type=jnp.float32) + c2_b_ref[...]
        logits_ref[0] = lg[t - 1:t, :]
    return kernel


def improvformer_forward(packed, x, num_heads, stillness=None):
    """Fused ImprovFormer forward.  Returns (out (B,T,E), logits (B,ncls))."""
    B, T, in_dim = x.shape
    E = packed["w_in"].shape[1]            # dim_feedforward == output_dim
    L = packed["lyr_wqkv"].shape[0]
    ncls = packed["c2_w"].shape[1]
    use_still = stillness is not None

    def _full(arr):                        # whole-array block, DMA'd once
        return pl.BlockSpec(arr.shape, lambda b, _r=arr.ndim: (0,) * _r)

    inputs = [x, packed["pe_out"][:T], packed["pe_ff"][:T]]
    in_specs = [
        pl.BlockSpec((1, T, in_dim), lambda b: (b, 0, 0)),
        _full(inputs[1]),
        _full(inputs[2]),
    ]
    if use_still:
        still = stillness.astype(jnp.float32)
        inputs.append(still)
        in_specs.append(pl.BlockSpec((1, T, E), lambda b: (b, 0, 0)))
    for name in _WEIGHT_ORDER:
        w = packed[name]
        inputs.append(w)
        in_specs.append(_full(w))

    out, logits3 = pl.pallas_call(
        _make_kernel(num_heads, L, use_still),
        grid=(B,),
        out_shape=(jax.ShapeDtypeStruct((B, T, E), jnp.float32),
                   jax.ShapeDtypeStruct((B, 1, ncls), jnp.float32)),
        in_specs=in_specs,
        out_specs=(pl.BlockSpec((1, T, E), lambda b: (b, 0, 0)),
                   pl.BlockSpec((1, 1, ncls), lambda b: (b, 0, 0))),
        compiler_params=pltpu.CompilerParams(
            dimension_semantics=("parallel",)),
    )(*inputs)
    return out, logits3.reshape(B, ncls)


# ------------------------------ parameter glue ------------------------------

def positional_encoding_table(max_len, d_model):
    position = jnp.arange(max_len, dtype=jnp.float32)[:, None]
    div_term = jnp.exp(jnp.arange(0, d_model, 2, dtype=jnp.float32)
                       * (-math.log(10000.0) / d_model))
    pe = jnp.zeros((max_len, d_model), jnp.float32)
    pe = pe.at[:, 0::2].set(jnp.sin(position * div_term))
    pe = pe.at[:, 1::2].set(jnp.cos(position * div_term))
    return pe


def init_linear(key, out_dim, in_dim, scale=0.1):
    kw, kb = jax.random.split(key)
    w = jax.random.normal(kw, (out_dim, in_dim), jnp.float32) * scale
    b = jax.random.normal(kb, (out_dim,), jnp.float32) * scale
    return w, b


def init_mha(key, e):
    k1, k2 = jax.random.split(key)
    wqkv, bqkv = init_linear(k1, 3 * e, e)
    wo, bo = init_linear(k2, e, e)
    return dict(wqkv=wqkv, bqkv=bqkv, wo=wo, bo=bo)


def make_params(key, input_dim, output_dim, dff, num_layers, num_classes,
                max_len=5000):
    ks = iter(jax.random.split(key, 32))
    params = {
        "input_proj": init_linear(next(ks), dff, input_dim),
        "pe_output": positional_encoding_table(max_len, output_dim),
        "pe_ff": positional_encoding_table(max_len, dff),
        "attn1": init_mha(next(ks), output_dim),
        "attn2": init_mha(next(ks), output_dim),
        "ffn1": init_linear(next(ks), output_dim * 2, output_dim),
        "ffn2": init_linear(next(ks), output_dim, output_dim * 2),
        "output_proj": init_linear(next(ks), output_dim, dff),
        "cls1": init_linear(next(ks), 128, output_dim),
        "cls2": init_linear(next(ks), num_classes, 128),
    }
    layers = []
    for _ in range(num_layers):
        layers.append(dict(
            attn=init_mha(next(ks), dff),
            lin1=init_linear(next(ks), dff, dff),
            lin2=init_linear(next(ks), dff, dff),
            ln1_g=jnp.ones((dff,), jnp.float32),
            ln1_b=jnp.zeros((dff,), jnp.float32),
            ln2_g=jnp.ones((dff,), jnp.float32),
            ln2_b=jnp.zeros((dff,), jnp.float32),
        ))
    params["layers"] = layers
    return params


def pack_params(params):
    """One-time repack: PyTorch (out,in) weights -> (in,out); biases -> (1,N);
    per-layer tensors stacked on a leading axis.  Removes all per-forward
    transposes/reshapes from the hot path."""
    def lin_t(wb):
        w, b = wb
        return w.T, b.reshape(1, -1)

    def stack(fn):
        return jnp.stack([fn(layer) for layer in params["layers"]], axis=0)

    p = {}
    p["pe_out"] = params["pe_output"]
    p["pe_ff"] = params["pe_ff"]
    p["w_in"], p["b_in"] = lin_t(params["input_proj"])
    for name, mha_p in (("a1", params["attn1"]), ("a2", params["attn2"])):
        p[f"{name}_wqkv"] = mha_p["wqkv"].T            # (E, 3E) fused QKV
        p[f"{name}_bqkv"] = mha_p["bqkv"].reshape(1, -1)
        p[f"{name}_wo"] = mha_p["wo"].T
        p[f"{name}_bo"] = mha_p["bo"].reshape(1, -1)
    p["ffn1_w"], p["ffn1_b"] = lin_t(params["ffn1"])
    p["ffn2_w"], p["ffn2_b"] = lin_t(params["ffn2"])
    p["lyr_wqkv"] = stack(lambda l: l["attn"]["wqkv"].T)
    p["lyr_bqkv"] = stack(lambda l: l["attn"]["bqkv"].reshape(1, -1))
    p["lyr_wo"] = stack(lambda l: l["attn"]["wo"].T)
    p["lyr_bo"] = stack(lambda l: l["attn"]["bo"].reshape(1, -1))
    p["lyr_w1"] = stack(lambda l: l["lin1"][0].T)
    p["lyr_b1"] = stack(lambda l: l["lin1"][1].reshape(1, -1))
    p["lyr_w2"] = stack(lambda l: l["lin2"][0].T)
    p["lyr_b2"] = stack(lambda l: l["lin2"][1].reshape(1, -1))
    p["lyr_ln1_g"] = stack(lambda l: l["ln1_g"].reshape(1, -1))
    p["lyr_ln1_b"] = stack(lambda l: l["ln1_b"].reshape(1, -1))
    p["lyr_ln2_g"] = stack(lambda l: l["ln2_g"].reshape(1, -1))
    p["lyr_ln2_b"] = stack(lambda l: l["ln2_b"].reshape(1, -1))
    p["w_out"], p["b_out"] = lin_t(params["output_proj"])
    p["c1_w"], p["c1_b"] = lin_t(params["cls1"])
    p["c2_w"], p["c2_b"] = lin_t(params["cls2"])
    return p


# --------------------------- plain-JAX reference ----------------------------

def _ref_linear(x, w, b, act="none"):
    y = x @ w.T + b
    return jnp.maximum(y, 0.0) if act == "relu" else y


def _ref_mha(x, p, num_heads):
    B, T, E = x.shape
    wq, wk, wv = p["wqkv"][:E], p["wqkv"][E:2 * E], p["wqkv"][2 * E:]
    bq, bk, bv = p["bqkv"][:E], p["bqkv"][E:2 * E], p["bqkv"][2 * E:]
    hd = E // num_heads
    q = (x @ wq.T + bq).reshape(B, T, num_heads, hd).transpose(0, 2, 1, 3)
    k = (x @ wk.T + bk).reshape(B, T, num_heads, hd).transpose(0, 2, 1, 3)
    v = (x @ wv.T + bv).reshape(B, T, num_heads, hd).transpose(0, 2, 1, 3)
    s = (q @ jnp.swapaxes(k, -1, -2)) / math.sqrt(hd)
    a = jax.nn.softmax(s, axis=-1)
    ctx = (a @ v).transpose(0, 2, 1, 3).reshape(B, T, E)
    return ctx @ p["wo"].T + p["bo"]


def _ref_ln(x, g, b, eps=1e-5):
    mu = x.mean(-1, keepdims=True)
    var = ((x - mu) ** 2).mean(-1, keepdims=True)
    return (x - mu) / jnp.sqrt(var + eps) * g + b


def ref_forward(params, x, num_heads, stillness=None):
    B, T, _ = x.shape
    x = _ref_linear(x, *params["input_proj"])
    x = x + params["pe_output"][None, :T, :]
    x = _ref_mha(x, params["attn1"], num_heads)
    x = _ref_mha(x, params["attn2"], num_heads)
    h = _ref_linear(x, *params["ffn1"], "relu")
    x = _ref_linear(h, *params["ffn2"])
    x = x + params["pe_ff"][None, :T, :]
    if stillness is not None:
        x = x + stillness
    for layer in params["layers"]:
        a = _ref_mha(x, layer["attn"], num_heads)
        x = _ref_ln(x + a, layer["ln1_g"], layer["ln1_b"])
        h = _ref_linear(x, *layer["lin1"], "relu")
        h = _ref_linear(h, *layer["lin2"])
        x = _ref_ln(x + h, layer["ln2_g"], layer["ln2_b"])
    out = _ref_linear(x, *params["output_proj"])
    cls = out[:, -1, :]
    h = _ref_linear(cls, *params["cls1"], "relu")
    logits = _ref_linear(h, *params["cls2"])
    return out, logits


# ---------------------------------- main ------------------------------------

if __name__ == "__main__":
    B, T = 2, 8
    input_dim = 16
    output_dim = 32
    dim_feedforward = 32        # must equal output_dim for the torch forward to run
    num_heads = 2
    num_layers = 2
    num_meaning_classes = 4

    key = jax.random.PRNGKey(0)
    kp, kx, ks = jax.random.split(key, 3)
    params = make_params(kp, input_dim, output_dim, dim_feedforward,
                         num_layers, num_meaning_classes)
    packed = pack_params(params)       # one-time transpose/stack, not per call
    x = jax.random.normal(kx, (B, T, input_dim), jnp.float32)
    stillness = 0.1 * jax.random.normal(ks, (B, T, dim_feedforward), jnp.float32)

    fwd = jax.jit(partial(improvformer_forward, num_heads=num_heads))

    # Path 1: stillness=None
    out, logits = fwd(packed, x)
    out = jax.block_until_ready(out)
    logits = jax.block_until_ready(logits)
    assert out.shape == (B, T, output_dim)
    assert logits.shape == (B, num_meaning_classes)
    ref_out, ref_logits = ref_forward(params, x, num_heads)
    assert jnp.allclose(out, ref_out, atol=5e-2, rtol=5e-2)
    assert jnp.allclose(logits, ref_logits, atol=5e-2, rtol=5e-2)

    # Path 2: with stillness (use_stillness=True branch)
    out_s, logits_s = fwd(packed, x, stillness=stillness)
    out_s = jax.block_until_ready(out_s)
    logits_s = jax.block_until_ready(logits_s)
    ref_out_s, ref_logits_s = ref_forward(params, x, num_heads, stillness)
    assert jnp.allclose(out_s, ref_out_s, atol=5e-2, rtol=5e-2)
    assert jnp.allclose(logits_s, ref_logits_s, atol=5e-2, rtol=5e-2)

    print("KERNEL_OK")
</pallas_src>

<mosaic_0001>
module attributes {stable_mosaic.version = 11 : i64} {
  func.func @kernel(%arg0: i32, %arg1: memref<1x8x16xf32, #tpu.memory_space<vmem>>, %arg2: memref<8x32xf32, #tpu.memory_space<vmem>>, %arg3: memref<8x32xf32, #tpu.memory_space<vmem>>, %arg4: memref<16x32xf32, #tpu.memory_space<vmem>>, %arg5: memref<1x32xf32, #tpu.memory_space<vmem>>, %arg6: memref<32x96xf32, #tpu.memory_space<vmem>>, %arg7: memref<1x96xf32, #tpu.memory_space<vmem>>, %arg8: memref<32x32xf32, #tpu.memory_space<vmem>>, %arg9: memref<1x32xf32, #tpu.memory_space<vmem>>, %arg10: memref<32x96xf32, #tpu.memory_space<vmem>>, %arg11: memref<1x96xf32, #tpu.memory_space<vmem>>, %arg12: memref<32x32xf32, #tpu.memory_space<vmem>>, %arg13: memref<1x32xf32, #tpu.memory_space<vmem>>, %arg14: memref<32x64xf32, #tpu.memory_space<vmem>>, %arg15: memref<1x64xf32, #tpu.memory_space<vmem>>, %arg16: memref<64x32xf32, #tpu.memory_space<vmem>>, %arg17: memref<1x32xf32, #tpu.memory_space<vmem>>, %arg18: memref<2x32x96xf32, #tpu.memory_space<vmem>>, %arg19: memref<2x1x96xf32, #tpu.memory_space<vmem>>, %arg20: memref<2x32x32xf32, #tpu.memory_space<vmem>>, %arg21: memref<2x1x32xf32, #tpu.memory_space<vmem>>, %arg22: memref<2x32x32xf32, #tpu.memory_space<vmem>>, %arg23: memref<2x1x32xf32, #tpu.memory_space<vmem>>, %arg24: memref<2x32x32xf32, #tpu.memory_space<vmem>>, %arg25: memref<2x1x32xf32, #tpu.memory_space<vmem>>, %arg26: memref<2x1x32xf32, #tpu.memory_space<vmem>>, %arg27: memref<2x1x32xf32, #tpu.memory_space<vmem>>, %arg28: memref<2x1x32xf32, #tpu.memory_space<vmem>>, %arg29: memref<2x1x32xf32, #tpu.memory_space<vmem>>, %arg30: memref<32x32xf32, #tpu.memory_space<vmem>>, %arg31: memref<1x32xf32, #tpu.memory_space<vmem>>, %arg32: memref<32x128xf32, #tpu.memory_space<vmem>>, %arg33: memref<1x128xf32, #tpu.memory_space<vmem>>, %arg34: memref<128x4xf32, #tpu.memory_space<vmem>>, %arg35: memref<1x4xf32, #tpu.memory_space<vmem>>, %arg36: memref<1x8x32xf32, #tpu.memory_space<vmem>>, %arg37: memref<1x1x4xf32, #tpu.memory_space<vmem>>) attributes {dimension_semantics = [#tpu.dimension_semantics<parallel>], iteration_bounds = array<i64: 2>, scalar_prefetch = 0 : i64, scratch_operands = 0 : i64, tpu.core_type = #tpu.core_type<tc>, window_params = [{transform_indices = @transform_0, window_bounds = array<i64: 1, 8, 16>}, {pipeline_mode = #tpu.pipeline_mode<synchronous>, transform_indices = @transform_1, window_bounds = array<i64: 8, 32>}, {pipeline_mode = #tpu.pipeline_mode<synchronous>, transform_indices = @transform_2, window_bounds = array<i64: 8, 32>}, {pipeline_mode = #tpu.pipeline_mode<synchronous>, transform_indices = @transform_3, window_bounds = array<i64: 16, 32>}, {pipeline_mode = #tpu.pipeline_mode<synchronous>, transform_indices = @transform_4, window_bounds = array<i64: 1, 32>}, {pipeline_mode = #tpu.pipeline_mode<synchronous>, transform_indices = @transform_5, window_bounds = array<i64: 32, 96>}, {pipeline_mode = #tpu.pipeline_mode<synchronous>, transform_indices = @transform_6, window_bounds = array<i64: 1, 96>}, {pipeline_mode = #tpu.pipeline_mode<synchronous>, transform_indices = @transform_7, window_bounds = array<i64: 32, 32>}, {pipeline_mode = #tpu.pipeline_mode<synchronous>, transform_indices = @transform_8, window_bounds = array<i64: 1, 32>}, {pipeline_mode = #tpu.pipeline_mode<synchronous>, transform_indices = @transform_9, window_bounds = array<i64: 32, 96>}, {pipeline_mode = #tpu.pipeline_mode<synchronous>, transform_indices = @transform_10, window_bounds = array<i64: 1, 96>}, {pipeline_mode = #tpu.pipeline_mode<synchronous>, transform_indices = @transform_11, window_bounds = array<i64: 32, 32>}, {pipeline_mode = #tpu.pipeline_mode<synchronous>, transform_indices = @transform_12, window_bounds = array<i64: 1, 32>}, {pipeline_mode = #tpu.pipeline_mode<synchronous>, transform_indices = @transform_13, window_bounds = array<i64: 32, 64>}, {pipeline_mode = #tpu.pipeline_mode<synchronous>, transform_indices = @transform_14, window_bounds = array<i64: 1, 64>}, {pipeline_mode = #tpu.pipeline_mode<synchronous>, transform_indices = @transform_15, window_bounds = array<i64: 64, 32>}, {pipeline_mode = #tpu.pipeline_mode<synchronous>, transform_indices = @transform_16, window_bounds = array<i64: 1, 32>}, {pipeline_mode = #tpu.pipeline_mode<synchronous>, transform_indices = @transform_17, window_bounds = array<i64: 2, 32, 96>}, {pipeline_mode = #tpu.pipeline_mode<synchronous>, transform_indices = @transform_18, window_bounds = array<i64: 2, 1, 96>}, {pipeline_mode = #tpu.pipeline_mode<synchronous>, transform_indices = @transform_19, window_bounds = array<i64: 2, 32, 32>}, {pipeline_mode = #tpu.pipeline_mode<synchronous>, transform_indices = @transform_20, window_bounds = array<i64: 2, 1, 32>}, {pipeline_mode = #tpu.pipeline_mode<synchronous>, transform_indices = @transform_21, window_bounds = array<i64: 2, 32, 32>}, {pipeline_mode = #tpu.pipeline_mode<synchronous>, transform_indices = @transform_22, window_bounds = array<i64: 2, 1, 32>}, {pipeline_mode = #tpu.pipeline_mode<synchronous>, transform_indices = @transform_23, window_bounds = array<i64: 2, 32, 32>}, {pipeline_mode = #tpu.pipeline_mode<synchronous>, transform_indices = @transform_24, window_bounds = array<i64: 2, 1, 32>}, {pipeline_mode = #tpu.pipeline_mode<synchronous>, transform_indices = @transform_25, window_bounds = array<i64: 2, 1, 32>}, {pipeline_mode = #tpu.pipeline_mode<synchronous>, transform_indices = @transform_26, window_bounds = array<i64: 2, 1, 32>}, {pipeline_mode = #tpu.pipeline_mode<synchronous>, transform_indices = @transform_27, window_bounds = array<i64: 2, 1, 32>}, {pipeline_mode = #tpu.pipeline_mode<synchronous>, transform_indices = @transform_28, window_bounds = array<i64: 2, 1, 32>}, {pipeline_mode = #tpu.pipeline_mode<synchronous>, transform_indices = @transform_29, window_bounds = array<i64: 32, 32>}, {pipeline_mode = #tpu.pipeline_mode<synchronous>, transform_indices = @transform_30, window_bounds = array<i64: 1, 32>}, {pipeline_mode = #tpu.pipeline_mode<synchronous>, transform_indices = @transform_31, window_bounds = array<i64: 32, 128>}, {pipeline_mode = #tpu.pipeline_mode<synchronous>, transform_indices = @transform_32, window_bounds = array<i64: 1, 128>}, {pipeline_mode = #tpu.pipeline_mode<synchronous>, transform_indices = @transform_33, window_bounds = array<i64: 128, 4>}, {pipeline_mode = #tpu.pipeline_mode<synchronous>, transform_indices = @transform_34, window_bounds = array<i64: 1, 4>}, {transform_indices = @transform_35, window_bounds = array<i64: 1, 8, 32>}, {transform_indices = @transform_36, window_bounds = array<i64: 1, 1, 4>}]} {
    %c0 = arith.constant 0 : index
    %c0_0 = arith.constant 0 : index
    %c0_1 = arith.constant 0 : index
    %0 = vector.load %arg1[%c0, %c0_0, %c0_1] : memref<1x8x16xf32, #tpu.memory_space<vmem>>, vector<1x8x16xf32>
    %1 = vector.shape_cast %0 : vector<1x8x16xf32> to vector<8x16xf32>
    %c0_2 = arith.constant 0 : index
    %c0_3 = arith.constant 0 : index
    %2 = vector.load %arg4[%c0_2, %c0_3] : memref<16x32xf32, #tpu.memory_space<vmem>>, vector<16x32xf32>
    %cst = arith.constant dense<0.000000e+00> : vector<8x32xf32>
    %3 = tpu.matmul %1, %2, %cst {dimension_numbers = #tpu.dot_dimension_numbers<[1], [0], [0], [1], [0, 0, 1, 1], [], []>} : vector<8x16xf32>, vector<16x32xf32>, vector<8x32xf32> -> vector<8x32xf32>
    %c0_4 = arith.constant 0 : index
    %c0_5 = arith.constant 0 : index
    %4 = vector.load %arg5[%c0_4, %c0_5] : memref<1x32xf32, #tpu.memory_space<vmem>>, vector<1x32xf32>
    %5 = vector.broadcast %4 : vector<1x32xf32> to vector<8x32xf32>
    %6 = arith.addf %3, %5 : vector<8x32xf32>
    %c0_6 = arith.constant 0 : index
    %c0_7 = arith.constant 0 : index
    %7 = vector.load %arg2[%c0_6, %c0_7] : memref<8x32xf32, #tpu.memory_space<vmem>>, vector<8x32xf32>
    %8 = arith.addf %6, %7 : vector<8x32xf32>
    %c0_8 = arith.constant 0 : index
    %c0_9 = arith.constant 0 : index
    %9 = vector.load %arg6[%c0_8, %c0_9] : memref<32x96xf32, #tpu.memory_space<vmem>>, vector<32x96xf32>
    %c0_10 = arith.constant 0 : index
    %c0_11 = arith.constant 0 : index
    %10 = vector.load %arg7[%c0_10, %c0_11] : memref<1x96xf32, #tpu.memory_space<vmem>>, vector<1x96xf32>
    %c0_12 = arith.constant 0 : index
    %c0_13 = arith.constant 0 : index
    %11 = vector.load %arg8[%c0_12, %c0_13] : memref<32x32xf32, #tpu.memory_space<vmem>>, vector<32x32xf32>
    %c0_14 = arith.constant 0 : index
    %c0_15 = arith.constant 0 : index
    %12 = vector.load %arg9[%c0_14, %c0_15] : memref<1x32xf32, #tpu.memory_space<vmem>>, vector<1x32xf32>
    %cst_16 = arith.constant dense<0.000000e+00> : vector<8x96xf32>
    %13 = tpu.matmul %8, %9, %cst_16 {dimension_numbers = #tpu.dot_dimension_numbers<[1], [0], [0], [1], [0, 0, 1, 1], [], []>} : vector<8x32xf32>, vector<32x96xf32>, vector<8x96xf32> -> vector<8x96xf32>
    %14 = vector.broadcast %10 : vector<1x96xf32> to vector<8x96xf32>
    %15 = arith.addf %13, %14 : vector<8x96xf32>
    %cst_17 = arith.constant 0.000000e+00 : f32
    %16 = vector.broadcast %cst_17 : f32 to vector<8x32xf32>
    %17 = vector.extract_strided_slice %15 {offsets = [0, 0], sizes = [8, 16], strides = [1, 1]} : vector<8x96xf32> to vector<8x16xf32>
    %cst_18 = arith.constant 2.500000e-01 : f32
    %18 = vector.broadcast %cst_18 : f32 to vector<8x16xf32>
    %19 = arith.mulf %17, %18 : vector<8x16xf32>
    %20 = vector.extract_strided_slice %15 {offsets = [0, 32], sizes = [8, 16], strides = [1, 1]} : vector<8x96xf32> to vector<8x16xf32>
    %21 = vector.extract_strided_slice %15 {offsets = [0, 64], sizes = [8, 16], strides = [1, 1]} : vector<8x96xf32> to vector<8x16xf32>
    %22 = tpu.transpose %20, [1, 0] : vector<8x16xf32> -> vector<16x8xf32>
    %cst_19 = arith.constant dense<0.000000e+00> : vector<8x8xf32>
    %23 = tpu.matmul %19, %22, %cst_19 {dimension_numbers = #tpu.dot_dimension_numbers<[1], [0], [0], [1], [0, 0, 1, 1], [], []>} : vector<8x16xf32>, vector<16x8xf32>, vector<8x8xf32> -> vector<8x8xf32>
    %cst_20 = arith.constant dense<0xFF800000> : vector<8xf32>
    %24 = vector.multi_reduction <maximumf>, %23, %cst_20 [1] : vector<8x8xf32> to vector<8xf32>
    %25 = vector.shape_cast %24 : vector<8xf32> to vector<8x1xf32>
    %26 = vector.broadcast %25 : vector<8x1xf32> to vector<8x8xf32>
    %27 = arith.subf %23, %26 : vector<8x8xf32>
    %28 = math.exp %27 : vector<8x8xf32>
    %cst_21 = arith.constant dense<0.000000e+00> : vector<8xf32>
    %29 = vector.multi_reduction <add>, %28, %cst_21 [1] : vector<8x8xf32> to vector<8xf32>
    %30 = vector.shape_cast %29 : vector<8xf32> to vector<8x1xf32>
    %31 = tpu.reciprocal %30 {approx = true} : vector<8x1xf32> -> vector<8x1xf32>
    %32 = vector.broadcast %31 : vector<8x1xf32> to vector<8x8xf32>
    %33 = arith.mulf %28, %32 : vector<8x8xf32>
    %cst_22 = arith.constant dense<0.000000e+00> : vector<8x16xf32>
    %34 = tpu.matmul %33, %21, %cst_22 {dimension_numbers = #tpu.dot_dimension_numbers<[1], [0], [0], [1], [0, 0, 1, 1], [], []>} : vector<8x8xf32>, vector<8x16xf32>, vector<8x16xf32> -> vector<8x16xf32>
    %35 = vector.extract_strided_slice %11 {offsets = [0, 0], sizes = [16, 32], strides = [1, 1]} : vector<32x32xf32> to vector<16x32xf32>
    %cst_23 = arith.constant dense<0.000000e+00> : vector<8x32xf32>
    %36 = tpu.matmul %34, %35, %cst_23 {dimension_numbers = #tpu.dot_dimension_numbers<[1], [0], [0], [1], [0, 0, 1, 1], [], []>} : vector<8x16xf32>, vector<16x32xf32>, vector<8x32xf32> -> vector<8x32xf32>
    %37 = arith.addf %16, %36 : vector<8x32xf32>
    %38 = vector.extract_strided_slice %15 {offsets = [0, 16], sizes = [8, 16], strides = [1, 1]} : vector<8x96xf32> to vector<8x16xf32>
    %cst_24 = arith.constant 2.500000e-01 : f32
    %39 = vector.broadcast %cst_24 : f32 to vector<8x16xf32>
    %40 = arith.mulf %38, %39 : vector<8x16xf32>
    %41 = vector.extract_strided_slice %15 {offsets = [0, 48], sizes = [8, 16], strides = [1, 1]} : vector<8x96xf32> to vector<8x16xf32>
    %42 = vector.extract_strided_slice %15 {offsets = [0, 80], sizes = [8, 16], strides = [1, 1]} : vector<8x96xf32> to vector<8x16xf32>
    %43 = tpu.transpose %41, [1, 0] : vector<8x16xf32> -> vector<16x8xf32>
    %cst_25 = arith.constant dense<0.000000e+00> : vector<8x8xf32>
    %44 = tpu.matmul %40, %43, %cst_25 {dimension_numbers = #tpu.dot_dimension_numbers<[1], [0], [0], [1], [0, 0, 1, 1], [], []>} : vector<8x16xf32>, vector<16x8xf32>, vector<8x8xf32> -> vector<8x8xf32>
    %cst_26 = arith.constant dense<0xFF800000> : vector<8xf32>
    %45 = vector.multi_reduction <maximumf>, %44, %cst_26 [1] : vector<8x8xf32> to vector<8xf32>
    %46 = vector.shape_cast %45 : vector<8xf32> to vector<8x1xf32>
    %47 = vector.broadcast %46 : vector<8x1xf32> to vector<8x8xf32>
    %48 = arith.subf %44, %47 : vector<8x8xf32>
    %49 = math.exp %48 : vector<8x8xf32>
    %cst_27 = arith.constant dense<0.000000e+00> : vector<8xf32>
    %50 = vector.multi_reduction <add>, %49, %cst_27 [1] : vector<8x8xf32> to vector<8xf32>
    %51 = vector.shape_cast %50 : vector<8xf32> to vector<8x1xf32>
    %52 = tpu.reciprocal %51 {approx = true} : vector<8x1xf32> -> vector<8x1xf32>
    %53 = vector.broadcast %52 : vector<8x1xf32> to vector<8x8xf32>
    %54 = arith.mulf %49, %53 : vector<8x8xf32>
    %cst_28 = arith.constant dense<0.000000e+00> : vector<8x16xf32>
    %55 = tpu.matmul %54, %42, %cst_28 {dimension_numbers = #tpu.dot_dimension_numbers<[1], [0], [0], [1], [0, 0, 1, 1], [], []>} : vector<8x8xf32>, vector<8x16xf32>, vector<8x16xf32> -> vector<8x16xf32>
    %56 = vector.extract_strided_slice %11 {offsets = [16, 0], sizes = [16, 32], strides = [1, 1]} : vector<32x32xf32> to vector<16x32xf32>
    %cst_29 = arith.constant dense<0.000000e+00> : vector<8x32xf32>
    %57 = tpu.matmul %55, %56, %cst_29 {dimension_numbers = #tpu.dot_dimension_numbers<[1], [0], [0], [1], [0, 0, 1, 1], [], []>} : vector<8x16xf32>, vector<16x32xf32>, vector<8x32xf32> -> vector<8x32xf32>
    %58 = arith.addf %37, %57 : vector<8x32xf32>
    %59 = vector.broadcast %12 : vector<1x32xf32> to vector<8x32xf32>
    %60 = arith.addf %58, %59 : vector<8x32xf32>
    %c0_30 = arith.constant 0 : index
    %c0_31 = arith.constant 0 : index
    %61 = vector.load %arg10[%c0_30, %c0_31] : memref<32x96xf32, #tpu.memory_space<vmem>>, vector<32x96xf32>
    %c0_32 = arith.constant 0 : index
    %c0_33 = arith.constant 0 : index
    %62 = vector.load %arg11[%c0_32, %c0_33] : memref<1x96xf32, #tpu.memory_space<vmem>>, vector<1x96xf32>
    %c0_34 = arith.constant 0 : index
    %c0_35 = arith.constant 0 : index
    %63 = vector.load %arg12[%c0_34, %c0_35] : memref<32x32xf32, #tpu.memory_space<vmem>>, vector<32x32xf32>
    %c0_36 = arith.constant 0 : index
    %c0_37 = arith.constant 0 : index
    %64 = vector.load %arg13[%c0_36, %c0_37] : memref<1x32xf32, #tpu.memory_space<vmem>>, vector<1x32xf32>
    %cst_38 = arith.constant dense<0.000000e+00> : vector<8x96xf32>
    %65 = tpu.matmul %60, %61, %cst_38 {dimension_numbers = #tpu.dot_dimension_numbers<[1], [0], [0], [1], [0, 0, 1, 1], [], []>} : vector<8x32xf32>, vector<32x96xf32>, vector<8x96xf32> -> vector<8x96xf32>
    %66 = vector.broadcast %62 : vector<1x96xf32> to vector<8x96xf32>
    %67 = arith.addf %65, %66 : vector<8x96xf32>
    %cst_39 = arith.constant 0.000000e+00 : f32
    %68 = vector.broadcast %cst_39 : f32 to vector<8x32xf32>
    %69 = vector.extract_strided_slice %67 {offsets = [0, 0], sizes = [8, 16], strides = [1, 1]} : vector<8x96xf32> to vector<8x16xf32>
    %cst_40 = arith.constant 2.500000e-01 : f32
    %70 = vector.broadcast %cst_40 : f32 to vector<8x16xf32>
    %71 = arith.mulf %69, %70 : vector<8x16xf32>
    %72 = vector.extract_strided_slice %67 {offsets = [0, 32], sizes = [8, 16], strides = [1, 1]} : vector<8x96xf32> to vector<8x16xf32>
    %73 = vector.extract_strided_slice %67 {offsets = [0, 64], sizes = [8, 16], strides = [1, 1]} : vector<8x96xf32> to vector<8x16xf32>
    %74 = tpu.transpose %72, [1, 0] : vector<8x16xf32> -> vector<16x8xf32>
    %cst_41 = arith.constant dense<0.000000e+00> : vector<8x8xf32>
    %75 = tpu.matmul %71, %74, %cst_41 {dimension_numbers = #tpu.dot_dimension_numbers<[1], [0], [0], [1], [0, 0, 1, 1], [], []>} : vector<8x16xf32>, vector<16x8xf32>, vector<8x8xf32> -> vector<8x8xf32>
    %cst_42 = arith.constant dense<0xFF800000> : vector<8xf32>
    %76 = vector.multi_reduction <maximumf>, %75, %cst_42 [1] : vector<8x8xf32> to vector<8xf32>
    %77 = vector.shape_cast %76 : vector<8xf32> to vector<8x1xf32>
    %78 = vector.broadcast %77 : vector<8x1xf32> to vector<8x8xf32>
    %79 = arith.subf %75, %78 : vector<8x8xf32>
    %80 = math.exp %79 : vector<8x8xf32>
    %cst_43 = arith.constant dense<0.000000e+00> : vector<8xf32>
    %81 = vector.multi_reduction <add>, %80, %cst_43 [1] : vector<8x8xf32> to vector<8xf32>
    %82 = vector.shape_cast %81 : vector<8xf32> to vector<8x1xf32>
    %83 = tpu.reciprocal %82 {approx = true} : vector<8x1xf32> -> vector<8x1xf32>
    %84 = vector.broadcast %83 : vector<8x1xf32> to vector<8x8xf32>
    %85 = arith.mulf %80, %84 : vector<8x8xf32>
    %cst_44 = arith.constant dense<0.000000e+00> : vector<8x16xf32>
    %86 = tpu.matmul %85, %73, %cst_44 {dimension_numbers = #tpu.dot_dimension_numbers<[1], [0], [0], [1], [0, 0, 1, 1], [], []>} : vector<8x8xf32>, vector<8x16xf32>, vector<8x16xf32> -> vector<8x16xf32>
    %87 = vector.extract_strided_slice %63 {offsets = [0, 0], sizes = [16, 32], strides = [1, 1]} : vector<32x32xf32> to vector<16x32xf32>
    %cst_45 = arith.constant dense<0.000000e+00> : vector<8x32xf32>
    %88 = tpu.matmul %86, %87, %cst_45 {dimension_numbers = #tpu.dot_dimension_numbers<[1], [0], [0], [1], [0, 0, 1, 1], [], []>} : vector<8x16xf32>, vector<16x32xf32>, vector<8x32xf32> -> vector<8x32xf32>
    %89 = arith.addf %68, %88 : vector<8x32xf32>
    %90 = vector.extract_strided_slice %67 {offsets = [0, 16], sizes = [8, 16], strides = [1, 1]} : vector<8x96xf32> to vector<8x16xf32>
    %cst_46 = arith.constant 2.500000e-01 : f32
    %91 = vector.broadcast %cst_46 : f32 to vector<8x16xf32>
    %92 = arith.mulf %90, %91 : vector<8x16xf32>
    %93 = vector.extract_strided_slice %67 {offsets = [0, 48], sizes = [8, 16], strides = [1, 1]} : vector<8x96xf32> to vector<8x16xf32>
    %94 = vector.extract_strided_slice %67 {offsets = [0, 80], sizes = [8, 16], strides = [1, 1]} : vector<8x96xf32> to vector<8x16xf32>
    %95 = tpu.transpose %93, [1, 0] : vector<8x16xf32> -> vector<16x8xf32>
    %cst_47 = arith.constant dense<0.000000e+00> : vector<8x8xf32>
    %96 = tpu.matmul %92, %95, %cst_47 {dimension_numbers = #tpu.dot_dimension_numbers<[1], [0], [0], [1], [0, 0, 1, 1], [], []>} : vector<8x16xf32>, vector<16x8xf32>, vector<8x8xf32> -> vector<8x8xf32>
    %cst_48 = arith.constant dense<0xFF800000> : vector<8xf32>
    %97 = vector.multi_reduction <maximumf>, %96, %cst_48 [1] : vector<8x8xf32> to vector<8xf32>
    %98 = vector.shape_cast %97 : vector<8xf32> to vector<8x1xf32>
    %99 = vector.broadcast %98 : vector<8x1xf32> to vector<8x8xf32>
    %100 = arith.subf %96, %99 : vector<8x8xf32>
    %101 = math.exp %100 : vector<8x8xf32>
    %cst_49 = arith.constant dense<0.000000e+00> : vector<8xf32>
    %102 = vector.multi_reduction <add>, %101, %cst_49 [1] : vector<8x8xf32> to vector<8xf32>
    %103 = vector.shape_cast %102 : vector<8xf32> to vector<8x1xf32>
    %104 = tpu.reciprocal %103 {approx = true} : vector<8x1xf32> -> vector<8x1xf32>
    %105 = vector.broadcast %104 : vector<8x1xf32> to vector<8x8xf32>
    %106 = arith.mulf %101, %105 : vector<8x8xf32>
    %cst_50 = arith.constant dense<0.000000e+00> : vector<8x16xf32>
    %107 = tpu.matmul %106, %94, %cst_50 {dimension_numbers = #tpu.dot_dimension_numbers<[1], [0], [0], [1], [0, 0, 1, 1], [], []>} : vector<8x8xf32>, vector<8x16xf32>, vector<8x16xf32> -> vector<8x16xf32>
    %108 = vector.extract_strided_slice %63 {offsets = [16, 0], sizes = [16, 32], strides = [1, 1]} : vector<32x32xf32> to vector<16x32xf32>
    %cst_51 = arith.constant dense<0.000000e+00> : vector<8x32xf32>
    %109 = tpu.matmul %107, %108, %cst_51 {dimension_numbers = #tpu.dot_dimension_numbers<[1], [0], [0], [1], [0, 0, 1, 1], [], []>} : vector<8x16xf32>, vector<16x32xf32>, vector<8x32xf32> -> vector<8x32xf32>
    %110 = arith.addf %89, %109 : vector<8x32xf32>
    %111 = vector.broadcast %64 : vector<1x32xf32> to vector<8x32xf32>
    %112 = arith.addf %110, %111 : vector<8x32xf32>
    %c0_52 = arith.constant 0 : index
    %c0_53 = arith.constant 0 : index
    %113 = vector.load %arg14[%c0_52, %c0_53] : memref<32x64xf32, #tpu.memory_space<vmem>>, vector<32x64xf32>
    %cst_54 = arith.constant dense<0.000000e+00> : vector<8x64xf32>
    %114 = tpu.matmul %112, %113, %cst_54 {dimension_numbers = #tpu.dot_dimension_numbers<[1], [0], [0], [1], [0, 0, 1, 1], [], []>} : vector<8x32xf32>, vector<32x64xf32>, vector<8x64xf32> -> vector<8x64xf32>
    %c0_55 = arith.constant 0 : index
    %c0_56 = arith.constant 0 : index
    %115 = vector.load %arg15[%c0_55, %c0_56] : memref<1x64xf32, #tpu.memory_space<vmem>>, vector<1x64xf32>
    %116 = vector.broadcast %115 : vector<1x64xf32> to vector<8x64xf32>
    %117 = arith.addf %114, %116 : vector<8x64xf32>
    %cst_57 = arith.constant 0.000000e+00 : f32
    %118 = vector.broadcast %cst_57 : f32 to vector<8x64xf32>
    %119 = arith.maximumf %117, %118 : vector<8x64xf32>
    %c0_58 = arith.constant 0 : index
    %c0_59 = arith.constant 0 : index
    %120 = vector.load %arg16[%c0_58, %c0_59] : memref<64x32xf32, #tpu.memory_space<vmem>>, vector<64x32xf32>
    %cst_60 = arith.constant dense<0.000000e+00> : vector<8x32xf32>
    %121 = tpu.matmul %119, %120, %cst_60 {dimension_numbers = #tpu.dot_dimension_numbers<[1], [0], [0], [1], [0, 0, 1, 1], [], []>} : vector<8x64xf32>, vector<64x32xf32>, vector<8x32xf32> -> vector<8x32xf32>
    %c0_61 = arith.constant 0 : index
    %c0_62 = arith.constant 0 : index
    %122 = vector.load %arg17[%c0_61, %c0_62] : memref<1x32xf32, #tpu.memory_space<vmem>>, vector<1x32xf32>
    %123 = vector.broadcast %122 : vector<1x32xf32> to vector<8x32xf32>
    %124 = arith.addf %121, %123 : vector<8x32xf32>
    %c0_63 = arith.constant 0 : index
    %c0_64 = arith.constant 0 : index
    %125 = vector.load %arg3[%c0_63, %c0_64] : memref<8x32xf32, #tpu.memory_space<vmem>>, vector<8x32xf32>
    %126 = arith.addf %124, %125 : vector<8x32xf32>
    %c0_65 = arith.constant 0 : index
    %c0_66 = arith.constant 0 : index
    %c0_67 = arith.constant 0 : index
    %127 = vector.load %arg18[%c0_65, %c0_66, %c0_67] : memref<2x32x96xf32, #tpu.memory_space<vmem>>, vector<1x32x96xf32>
    %128 = vector.shape_cast %127 : vector<1x32x96xf32> to vector<32x96xf32>
    %c0_68 = arith.constant 0 : index
    %c0_69 = arith.constant 0 : index
    %c0_70 = arith.constant 0 : index
    %129 = vector.load %arg19[%c0_68, %c0_69, %c0_70] : memref<2x1x96xf32, #tpu.memory_space<vmem>>, vector<1x1x96xf32>
    %130 = vector.shape_cast %129 : vector<1x1x96xf32> to vector<1x96xf32>
    %c0_71 = arith.constant 0 : index
    %c0_72 = arith.constant 0 : index
    %c0_73 = arith.constant 0 : index
    %131 = vector.load %arg20[%c0_71, %c0_72, %c0_73] : memref<2x32x32xf32, #tpu.memory_space<vmem>>, vector<1x32x32xf32>
    %132 = vector.shape_cast %131 : vector<1x32x32xf32> to vector<32x32xf32>
    %c0_74 = arith.constant 0 : index
    %c0_75 = arith.constant 0 : index
    %c0_76 = arith.constant 0 : index
    %133 = vector.load %arg21[%c0_74, %c0_75, %c0_76] : memref<2x1x32xf32, #tpu.memory_space<vmem>>, vector<1x1x32xf32>
    %134 = vector.shape_cast %133 : vector<1x1x32xf32> to vector<1x32xf32>
    %cst_77 = arith.constant dense<0.000000e+00> : vector<8x96xf32>
    %135 = tpu.matmul %126, %128, %cst_77 {dimension_numbers = #tpu.dot_dimension_numbers<[1], [0], [0], [1], [0, 0, 1, 1], [], []>} : vector<8x32xf32>, vector<32x96xf32>, vector<8x96xf32> -> vector<8x96xf32>
    %136 = vector.broadcast %130 : vector<1x96xf32> to vector<8x96xf32>
    %137 = arith.addf %135, %136 : vector<8x96xf32>
    %cst_78 = arith.constant 0.000000e+00 : f32
    %138 = vector.broadcast %cst_78 : f32 to vector<8x32xf32>
    %139 = vector.extract_strided_slice %137 {offsets = [0, 0], sizes = [8, 16], strides = [1, 1]} : vector<8x96xf32> to vector<8x16xf32>
    %cst_79 = arith.constant 2.500000e-01 : f32
    %140 = vector.broadcast %cst_79 : f32 to vector<8x16xf32>
    %141 = arith.mulf %139, %140 : vector<8x16xf32>
    %142 = vector.extract_strided_slice %137 {offsets = [0, 32], sizes = [8, 16], strides = [1, 1]} : vector<8x96xf32> to vector<8x16xf32>
    %143 = vector.extract_strided_slice %137 {offsets = [0, 64], sizes = [8, 16], strides = [1, 1]} : vector<8x96xf32> to vector<8x16xf32>
    %144 = tpu.transpose %142, [1, 0] : vector<8x16xf32> -> vector<16x8xf32>
    %cst_80 = arith.constant dense<0.000000e+00> : vector<8x8xf32>
    %145 = tpu.matmul %141, %144, %cst_80 {dimension_numbers = #tpu.dot_dimension_numbers<[1], [0], [0], [1], [0, 0, 1, 1], [], []>} : vector<8x16xf32>, vector<16x8xf32>, vector<8x8xf32> -> vector<8x8xf32>
    %cst_81 = arith.constant dense<0xFF800000> : vector<8xf32>
    %146 = vector.multi_reduction <maximumf>, %145, %cst_81 [1] : vector<8x8xf32> to vector<8xf32>
    %147 = vector.shape_cast %146 : vector<8xf32> to vector<8x1xf32>
    %148 = vector.broadcast %147 : vector<8x1xf32> to vector<8x8xf32>
    %149 = arith.subf %145, %148 : vector<8x8xf32>
    %150 = math.exp %149 : vector<8x8xf32>
    %cst_82 = arith.constant dense<0.000000e+00> : vector<8xf32>
    %151 = vector.multi_reduction <add>, %150, %cst_82 [1] : vector<8x8xf32> to vector<8xf32>
    %152 = vector.shape_cast %151 : vector<8xf32> to vector<8x1xf32>
    %153 = tpu.reciprocal %152 {approx = true} : vector<8x1xf32> -> vector<8x1xf32>
    %154 = vector.broadcast %153 : vector<8x1xf32> to vector<8x8xf32>
    %155 = arith.mulf %150, %154 : vector<8x8xf32>
    %cst_83 = arith.constant dense<0.000000e+00> : vector<8x16xf32>
    %156 = tpu.matmul %155, %143, %cst_83 {dimension_numbers = #tpu.dot_dimension_numbers<[1], [0], [0], [1], [0, 0, 1, 1], [], []>} : vector<8x8xf32>, vector<8x16xf32>, vector<8x16xf32> -> vector<8x16xf32>
    %157 = vector.extract_strided_slice %132 {offsets = [0, 0], sizes = [16, 32], strides = [1, 1]} : vector<32x32xf32> to vector<16x32xf32>
    %cst_84 = arith.constant dense<0.000000e+00> : vector<8x32xf32>
    %158 = tpu.matmul %156, %157, %cst_84 {dimension_numbers = #tpu.dot_dimension_numbers<[1], [0], [0], [1], [0, 0, 1, 1], [], []>} : vector<8x16xf32>, vector<16x32xf32>, vector<8x32xf32> -> vector<8x32xf32>
    %159 = arith.addf %138, %158 : vector<8x32xf32>
    %160 = vector.extract_strided_slice %137 {offsets = [0, 16], sizes = [8, 16], strides = [1, 1]} : vector<8x96xf32> to vector<8x16xf32>
    %cst_85 = arith.constant 2.500000e-01 : f32
    %161 = vector.broadcast %cst_85 : f32 to vector<8x16xf32>
    %162 = arith.mulf %160, %161 : vector<8x16xf32>
    %163 = vector.extract_strided_slice %137 {offsets = [0, 48], sizes = [8, 16], strides = [1, 1]} : vector<8x96xf32> to vector<8x16xf32>
    %164 = vector.extract_strided_slice %137 {offsets = [0, 80], sizes = [8, 16], strides = [1, 1]} : vector<8x96xf32> to vector<8x16xf32>
    %165 = tpu.transpose %163, [1, 0] : vector<8x16xf32> -> vector<16x8xf32>
    %cst_86 = arith.constant dense<0.000000e+00> : vector<8x8xf32>
    %166 = tpu.matmul %162, %165, %cst_86 {dimension_numbers = #tpu.dot_dimension_numbers<[1], [0], [0], [1], [0, 0, 1, 1], [], []>} : vector<8x16xf32>, vector<16x8xf32>, vector<8x8xf32> -> vector<8x8xf32>
    %cst_87 = arith.constant dense<0xFF800000> : vector<8xf32>
    %167 = vector.multi_reduction <maximumf>, %166, %cst_87 [1] : vector<8x8xf32> to vector<8xf32>
    %168 = vector.shape_cast %167 : vector<8xf32> to vector<8x1xf32>
    %169 = vector.broadcast %168 : vector<8x1xf32> to vector<8x8xf32>
    %170 = arith.subf %166, %169 : vector<8x8xf32>
    %171 = math.exp %170 : vector<8x8xf32>
    %cst_88 = arith.constant dense<0.000000e+00> : vector<8xf32>
    %172 = vector.multi_reduction <add>, %171, %cst_88 [1] : vector<8x8xf32> to vector<8xf32>
    %173 = vector.shape_cast %172 : vector<8xf32> to vector<8x1xf32>
    %174 = tpu.reciprocal %173 {approx = true} : vector<8x1xf32> -> vector<8x1xf32>
    %175 = vector.broadcast %174 : vector<8x1xf32> to vector<8x8xf32>
    %176 = arith.mulf %171, %175 : vector<8x8xf32>
    %cst_89 = arith.constant dense<0.000000e+00> : vector<8x16xf32>
    %177 = tpu.matmul %176, %164, %cst_89 {dimension_numbers = #tpu.dot_dimension_numbers<[1], [0], [0], [1], [0, 0, 1, 1], [], []>} : vector<8x8xf32>, vector<8x16xf32>, vector<8x16xf32> -> vector<8x16xf32>
    %178 = vector.extract_strided_slice %132 {offsets = [16, 0], sizes = [16, 32], strides = [1, 1]} : vector<32x32xf32> to vector<16x32xf32>
    %cst_90 = arith.constant dense<0.000000e+00> : vector<8x32xf32>
    %179 = tpu.matmul %177, %178, %cst_90 {dimension_numbers = #tpu.dot_dimension_numbers<[1], [0], [0], [1], [0, 0, 1, 1], [], []>} : vector<8x16xf32>, vector<16x32xf32>, vector<8x32xf32> -> vector<8x32xf32>
    %180 = arith.addf %159, %179 : vector<8x32xf32>
    %181 = vector.broadcast %134 : vector<1x32xf32> to vector<8x32xf32>
    %182 = arith.addf %180, %181 : vector<8x32xf32>
    %183 = arith.addf %126, %182 : vector<8x32xf32>
    %c0_91 = arith.constant 0 : index
    %c0_92 = arith.constant 0 : index
    %c0_93 = arith.constant 0 : index
    %184 = vector.load %arg26[%c0_91, %c0_92, %c0_93] : memref<2x1x32xf32, #tpu.memory_space<vmem>>, vector<1x1x32xf32>
    %185 = vector.shape_cast %184 : vector<1x1x32xf32> to vector<1x32xf32>
    %c0_94 = arith.constant 0 : index
    %c0_95 = arith.constant 0 : index
    %c0_96 = arith.constant 0 : index
    %186 = vector.load %arg27[%c0_94, %c0_95, %c0_96] : memref<2x1x32xf32, #tpu.memory_space<vmem>>, vector<1x1x32xf32>
    %187 = vector.shape_cast %186 : vector<1x1x32xf32> to vector<1x32xf32>
    %cst_97 = arith.constant dense<0.000000e+00> : vector<8xf32>
    %188 = vector.multi_reduction <add>, %183, %cst_97 [1] : vector<8x32xf32> to vector<8xf32>
    %189 = vector.shape_cast %188 : vector<8xf32> to vector<8x1xf32>
    %cst_98 = arith.constant 3.200000e+01 : f32
    %190 = vector.broadcast %cst_98 : f32 to vector<8x1xf32>
    %191 = arith.divf %189, %190 : vector<8x1xf32>
    %192 = vector.broadcast %191 : vector<8x1xf32> to vector<8x32xf32>
    %193 = arith.subf %183, %192 : vector<8x32xf32>
    %194 = arith.mulf %193, %193 : vector<8x32xf32>
    %cst_99 = arith.constant dense<0.000000e+00> : vector<8xf32>
    %195 = vector.multi_reduction <add>, %194, %cst_99 [1] : vector<8x32xf32> to vector<8xf32>
    %196 = vector.shape_cast %195 : vector<8xf32> to vector<8x1xf32>
    %cst_100 = arith.constant 3.200000e+01 : f32
    %197 = vector.broadcast %cst_100 : f32 to vector<8x1xf32>
    %198 = arith.divf %196, %197 : vector<8x1xf32>
    %cst_101 = arith.constant 9.99999974E-6 : f32
    %199 = vector.broadcast %cst_101 : f32 to vector<8x1xf32>
    %200 = arith.addf %198, %199 : vector<8x1xf32>
    %201 = math.rsqrt %200 : vector<8x1xf32>
    %202 = vector.broadcast %201 : vector<8x1xf32> to vector<8x32xf32>
    %203 = arith.mulf %193, %202 : vector<8x32xf32>
    %204 = vector.broadcast %185 : vector<1x32xf32> to vector<8x32xf32>
    %205 = arith.mulf %203, %204 : vector<8x32xf32>
    %206 = vector.broadcast %187 : vector<1x32xf32> to vector<8x32xf32>
    %207 = arith.addf %205, %206 : vector<8x32xf32>
    %c0_102 = arith.constant 0 : index
    %c0_103 = arith.constant 0 : index
    %c0_104 = arith.constant 0 : index
    %208 = vector.load %arg22[%c0_102, %c0_103, %c0_104] : memref<2x32x32xf32, #tpu.memory_space<vmem>>, vector<1x32x32xf32>
    %209 = vector.shape_cast %208 : vector<1x32x32xf32> to vector<32x32xf32>
    %cst_105 = arith.constant dense<0.000000e+00> : vector<8x32xf32>
    %210 = tpu.matmul %207, %209, %cst_105 {dimension_numbers = #tpu.dot_dimension_numbers<[1], [0], [0], [1], [0, 0, 1, 1], [], []>} : vector<8x32xf32>, vector<32x32xf32>, vector<8x32xf32> -> vector<8x32xf32>
    %c0_106 = arith.constant 0 : index
    %c0_107 = arith.constant 0 : index
    %c0_108 = arith.constant 0 : index
    %211 = vector.load %arg23[%c0_106, %c0_107, %c0_108] : memref<2x1x32xf32, #tpu.memory_space<vmem>>, vector<1x1x32xf32>
    %212 = vector.shape_cast %211 : vector<1x1x32xf32> to vector<1x32xf32>
    %213 = vector.broadcast %212 : vector<1x32xf32> to vector<8x32xf32>
    %214 = arith.addf %210, %213 : vector<8x32xf32>
    %cst_109 = arith.constant 0.000000e+00 : f32
    %215 = vector.broadcast %cst_109 : f32 to vector<8x32xf32>
    %216 = arith.maximumf %214, %215 : vector<8x32xf32>
    %c0_110 = arith.constant 0 : index
    %c0_111 = arith.constant 0 : index
    %c0_112 = arith.constant 0 : index
    %217 = vector.load %arg24[%c0_110, %c0_111, %c0_112] : memref<2x32x32xf32, #tpu.memory_space<vmem>>, vector<1x32x32xf32>
    %218 = vector.shape_cast %217 : vector<1x32x32xf32> to vector<32x32xf32>
    %cst_113 = arith.constant dense<0.000000e+00> : vector<8x32xf32>
    %219 = tpu.matmul %216, %218, %cst_113 {dimension_numbers = #tpu.dot_dimension_numbers<[1], [0], [0], [1], [0, 0, 1, 1], [], []>} : vector<8x32xf32>, vector<32x32xf32>, vector<8x32xf32> -> vector<8x32xf32>
    %c0_114 = arith.constant 0 : index
    %c0_115 = arith.constant 0 : index
    %c0_116 = arith.constant 0 : index
    %220 = vector.load %arg25[%c0_114, %c0_115, %c0_116] : memref<2x1x32xf32, #tpu.memory_space<vmem>>, vector<1x1x32xf32>
    %221 = vector.shape_cast %220 : vector<1x1x32xf32> to vector<1x32xf32>
    %222 = vector.broadcast %221 : vector<1x32xf32> to vector<8x32xf32>
    %223 = arith.addf %219, %222 : vector<8x32xf32>
    %224 = arith.addf %207, %223 : vector<8x32xf32>
    %c0_117 = arith.constant 0 : index
    %c0_118 = arith.constant 0 : index
    %c0_119 = arith.constant 0 : index
    %225 = vector.load %arg28[%c0_117, %c0_118, %c0_119] : memref<2x1x32xf32, #tpu.memory_space<vmem>>, vector<1x1x32xf32>
    %226 = vector.shape_cast %225 : vector<1x1x32xf32> to vector<1x32xf32>
    %c0_120 = arith.constant 0 : index
    %c0_121 = arith.constant 0 : index
    %c0_122 = arith.constant 0 : index
    %227 = vector.load %arg29[%c0_120, %c0_121, %c0_122] : memref<2x1x32xf32, #tpu.memory_space<vmem>>, vector<1x1x32xf32>
    %228 = vector.shape_cast %227 : vector<1x1x32xf32> to vector<1x32xf32>
    %cst_123 = arith.constant dense<0.000000e+00> : vector<8xf32>
    %229 = vector.multi_reduction <add>, %224, %cst_123 [1] : vector<8x32xf32> to vector<8xf32>
    %230 = vector.shape_cast %229 : vector<8xf32> to vector<8x1xf32>
    %cst_124 = arith.constant 3.200000e+01 : f32
    %231 = vector.broadcast %cst_124 : f32 to vector<8x1xf32>
    %232 = arith.divf %230, %231 : vector<8x1xf32>
    %233 = vector.broadcast %232 : vector<8x1xf32> to vector<8x32xf32>
    %234 = arith.subf %224, %233 : vector<8x32xf32>
    %235 = arith.mulf %234, %234 : vector<8x32xf32>
    %cst_125 = arith.constant dense<0.000000e+00> : vector<8xf32>
    %236 = vector.multi_reduction <add>, %235, %cst_125 [1] : vector<8x32xf32> to vector<8xf32>
    %237 = vector.shape_cast %236 : vector<8xf32> to vector<8x1xf32>
    %cst_126 = arith.constant 3.200000e+01 : f32
    %238 = vector.broadcast %cst_126 : f32 to vector<8x1xf32>
    %239 = arith.divf %237, %238 : vector<8x1xf32>
    %cst_127 = arith.constant 9.99999974E-6 : f32
    %240 = vector.broadcast %cst_127 : f32 to vector<8x1xf32>
    %241 = arith.addf %239, %240 : vector<8x1xf32>
    %242 = math.rsqrt %241 : vector<8x1xf32>
    %243 = vector.broadcast %242 : vector<8x1xf32> to vector<8x32xf32>
    %244 = arith.mulf %234, %243 : vector<8x32xf32>
    %245 = vector.broadcast %226 : vector<1x32xf32> to vector<8x32xf32>
    %246 = arith.mulf %244, %245 : vector<8x32xf32>
    %247 = vector.broadcast %228 : vector<1x32xf32> to vector<8x32xf32>
    %248 = arith.addf %246, %247 : vector<8x32xf32>
    %c1 = arith.constant 1 : index
    %c0_128 = arith.constant 0 : index
    %c0_129 = arith.constant 0 : index
    %249 = vector.load %arg18[%c1, %c0_128, %c0_129] : memref<2x32x96xf32, #tpu.memory_space<vmem>>, vector<1x32x96xf32>
    %250 = vector.shape_cast %249 : vector<1x32x96xf32> to vector<32x96xf32>
    %c1_130 = arith.constant 1 : index
    %c0_131 = arith.constant 0 : index
    %c0_132 = arith.constant 0 : index
    %251 = vector.load %arg19[%c1_130, %c0_131, %c0_132] : memref<2x1x96xf32, #tpu.memory_space<vmem>>, vector<1x1x96xf32>
    %252 = vector.shape_cast %251 : vector<1x1x96xf32> to vector<1x96xf32>
    %c1_133 = arith.constant 1 : index
    %c0_134 = arith.constant 0 : index
    %c0_135 = arith.constant 0 : index
    %253 = vector.load %arg20[%c1_133, %c0_134, %c0_135] : memref<2x32x32xf32, #tpu.memory_space<vmem>>, vector<1x32x32xf32>
    %254 = vector.shape_cast %253 : vector<1x32x32xf32> to vector<32x32xf32>
    %c1_136 = arith.constant 1 : index
    %c0_137 = arith.constant 0 : index
    %c0_138 = arith.constant 0 : index
    %255 = vector.load %arg21[%c1_136, %c0_137, %c0_138] : memref<2x1x32xf32, #tpu.memory_space<vmem>>, vector<1x1x32xf32>
    %256 = vector.shape_cast %255 : vector<1x1x32xf32> to vector<1x32xf32>
    %cst_139 = arith.constant dense<0.000000e+00> : vector<8x96xf32>
    %257 = tpu.matmul %248, %250, %cst_139 {dimension_numbers = #tpu.dot_dimension_numbers<[1], [0], [0], [1], [0, 0, 1, 1], [], []>} : vector<8x32xf32>, vector<32x96xf32>, vector<8x96xf32> -> vector<8x96xf32>
    %258 = vector.broadcast %252 : vector<1x96xf32> to vector<8x96xf32>
    %259 = arith.addf %257, %258 : vector<8x96xf32>
    %cst_140 = arith.constant 0.000000e+00 : f32
    %260 = vector.broadcast %cst_140 : f32 to vector<8x32xf32>
    %261 = vector.extract_strided_slice %259 {offsets = [0, 0], sizes = [8, 16], strides = [1, 1]} : vector<8x96xf32> to vector<8x16xf32>
    %cst_141 = arith.constant 2.500000e-01 : f32
    %262 = vector.broadcast %cst_141 : f32 to vector<8x16xf32>
    %263 = arith.mulf %261, %262 : vector<8x16xf32>
    %264 = vector.extract_strided_slice %259 {offsets = [0, 32], sizes = [8, 16], strides = [1, 1]} : vector<8x96xf32> to vector<8x16xf32>
    %265 = vector.extract_strided_slice %259 {offsets = [0, 64], sizes = [8, 16], strides = [1, 1]} : vector<8x96xf32> to vector<8x16xf32>
    %266 = tpu.transpose %264, [1, 0] : vector<8x16xf32> -> vector<16x8xf32>
    %cst_142 = arith.constant dense<0.000000e+00> : vector<8x8xf32>
    %267 = tpu.matmul %263, %266, %cst_142 {dimension_numbers = #tpu.dot_dimension_numbers<[1], [0], [0], [1], [0, 0, 1, 1], [], []>} : vector<8x16xf32>, vector<16x8xf32>, vector<8x8xf32> -> vector<8x8xf32>
    %cst_143 = arith.constant dense<0xFF800000> : vector<8xf32>
    %268 = vector.multi_reduction <maximumf>, %267, %cst_143 [1] : vector<8x8xf32> to vector<8xf32>
    %269 = vector.shape_cast %268 : vector<8xf32> to vector<8x1xf32>
    %270 = vector.broadcast %269 : vector<8x1xf32> to vector<8x8xf32>
    %271 = arith.subf %267, %270 : vector<8x8xf32>
    %272 = math.exp %271 : vector<8x8xf32>
    %cst_144 = arith.constant dense<0.000000e+00> : vector<8xf32>
    %273 = vector.multi_reduction <add>, %272, %cst_144 [1] : vector<8x8xf32> to vector<8xf32>
    %274 = vector.shape_cast %273 : vector<8xf32> to vector<8x1xf32>
    %275 = tpu.reciprocal %274 {approx = true} : vector<8x1xf32> -> vector<8x1xf32>
    %276 = vector.broadcast %275 : vector<8x1xf32> to vector<8x8xf32>
    %277 = arith.mulf %272, %276 : vector<8x8xf32>
    %cst_145 = arith.constant dense<0.000000e+00> : vector<8x16xf32>
    %278 = tpu.matmul %277, %265, %cst_145 {dimension_numbers = #tpu.dot_dimension_numbers<[1], [0], [0], [1], [0, 0, 1, 1], [], []>} : vector<8x8xf32>, vector<8x16xf32>, vector<8x16xf32> -> vector<8x16xf32>
    %279 = vector.extract_strided_slice %254 {offsets = [0, 0], sizes = [16, 32], strides = [1, 1]} : vector<32x32xf32> to vector<16x32xf32>
    %cst_146 = arith.constant dense<0.000000e+00> : vector<8x32xf32>
    %280 = tpu.matmul %278, %279, %cst_146 {dimension_numbers = #tpu.dot_dimension_numbers<[1], [0], [0], [1], [0, 0, 1, 1], [], []>} : vector<8x16xf32>, vector<16x32xf32>, vector<8x32xf32> -> vector<8x32xf32>
    %281 = arith.addf %260, %280 : vector<8x32xf32>
    %282 = vector.extract_strided_slice %259 {offsets = [0, 16], sizes = [8, 16], strides = [1, 1]} : vector<8x96xf32> to vector<8x16xf32>
    %cst_147 = arith.constant 2.500000e-01 : f32
    %283 = vector.broadcast %cst_147 : f32 to vector<8x16xf32>
    %284 = arith.mulf %282, %283 : vector<8x16xf32>
    %285 = vector.extract_strided_slice %259 {offsets = [0, 48], sizes = [8, 16], strides = [1, 1]} : vector<8x96xf32> to vector<8x16xf32>
    %286 = vector.extract_strided_slice %259 {offsets = [0, 80], sizes = [8, 16], strides = [1, 1]} : vector<8x96xf32> to vector<8x16xf32>
    %287 = tpu.transpose %285, [1, 0] : vector<8x16xf32> -> vector<16x8xf32>
    %cst_148 = arith.constant dense<0.000000e+00> : vector<8x8xf32>
    %288 = tpu.matmul %284, %287, %cst_148 {dimension_numbers = #tpu.dot_dimension_numbers<[1], [0], [0], [1], [0, 0, 1, 1], [], []>} : vector<8x16xf32>, vector<16x8xf32>, vector<8x8xf32> -> vector<8x8xf32>
    %cst_149 = arith.constant dense<0xFF800000> : vector<8xf32>
    %289 = vector.multi_reduction <maximumf>, %288, %cst_149 [1] : vector<8x8xf32> to vector<8xf32>
    %290 = vector.shape_cast %289 : vector<8xf32> to vector<8x1xf32>
    %291 = vector.broadcast %290 : vector<8x1xf32> to vector<8x8xf32>
    %292 = arith.subf %288, %291 : vector<8x8xf32>
    %293 = math.exp %292 : vector<8x8xf32>
    %cst_150 = arith.constant dense<0.000000e+00> : vector<8xf32>
    %294 = vector.multi_reduction <add>, %293, %cst_150 [1] : vector<8x8xf32> to vector<8xf32>
    %295 = vector.shape_cast %294 : vector<8xf32> to vector<8x1xf32>
    %296 = tpu.reciprocal %295 {approx = true} : vector<8x1xf32> -> vector<8x1xf32>
    %297 = vector.broadcast %296 : vector<8x1xf32> to vector<8x8xf32>
    %298 = arith.mulf %293, %297 : vector<8x8xf32>
    %cst_151 = arith.constant dense<0.000000e+00> : vector<8x16xf32>
    %299 = tpu.matmul %298, %286, %cst_151 {dimension_numbers = #tpu.dot_dimension_numbers<[1], [0], [0], [1], [0, 0, 1, 1], [], []>} : vector<8x8xf32>, vector<8x16xf32>, vector<8x16xf32> -> vector<8x16xf32>
    %300 = vector.extract_strided_slice %254 {offsets = [16, 0], sizes = [16, 32], strides = [1, 1]} : vector<32x32xf32> to vector<16x32xf32>
    %cst_152 = arith.constant dense<0.000000e+00> : vector<8x32xf32>
    %301 = tpu.matmul %299, %300, %cst_152 {dimension_numbers = #tpu.dot_dimension_numbers<[1], [0], [0], [1], [0, 0, 1, 1], [], []>} : vector<8x16xf32>, vector<16x32xf32>, vector<8x32xf32> -> vector<8x32xf32>
    %302 = arith.addf %281, %301 : vector<8x32xf32>
    %303 = vector.broadcast %256 : vector<1x32xf32> to vector<8x32xf32>
    %304 = arith.addf %302, %303 : vector<8x32xf32>
    %305 = arith.addf %248, %304 : vector<8x32xf32>
    %c1_153 = arith.constant 1 : index
    %c0_154 = arith.constant 0 : index
    %c0_155 = arith.constant 0 : index
    %306 = vector.load %arg26[%c1_153, %c0_154, %c0_155] : memref<2x1x32xf32, #tpu.memory_space<vmem>>, vector<1x1x32xf32>
    %307 = vector.shape_cast %306 : vector<1x1x32xf32> to vector<1x32xf32>
    %c1_156 = arith.constant 1 : index
    %c0_157 = arith.constant 0 : index
    %c0_158 = arith.constant 0 : index
    %308 = vector.load %arg27[%c1_156, %c0_157, %c0_158] : memref<2x1x32xf32, #tpu.memory_space<vmem>>, vector<1x1x32xf32>
    %309 = vector.shape_cast %308 : vector<1x1x32xf32> to vector<1x32xf32>
    %cst_159 = arith.constant dense<0.000000e+00> : vector<8xf32>
    %310 = vector.multi_reduction <add>, %305, %cst_159 [1] : vector<8x32xf32> to vector<8xf32>
    %311 = vector.shape_cast %310 : vector<8xf32> to vector<8x1xf32>
    %cst_160 = arith.constant 3.200000e+01 : f32
    %312 = vector.broadcast %cst_160 : f32 to vector<8x1xf32>
    %313 = arith.divf %311, %312 : vector<8x1xf32>
    %314 = vector.broadcast %313 : vector<8x1xf32> to vector<8x32xf32>
    %315 = arith.subf %305, %314 : vector<8x32xf32>
    %316 = arith.mulf %315, %315 : vector<8x32xf32>
    %cst_161 = arith.constant dense<0.000000e+00> : vector<8xf32>
    %317 = vector.multi_reduction <add>, %316, %cst_161 [1] : vector<8x32xf32> to vector<8xf32>
    %318 = vector.shape_cast %317 : vector<8xf32> to vector<8x1xf32>
    %cst_162 = arith.constant 3.200000e+01 : f32
    %319 = vector.broadcast %cst_162 : f32 to vector<8x1xf32>
    %320 = arith.divf %318, %319 : vector<8x1xf32>
    %cst_163 = arith.constant 9.99999974E-6 : f32
    %321 = vector.broadcast %cst_163 : f32 to vector<8x1xf32>
    %322 = arith.addf %320, %321 : vector<8x1xf32>
    %323 = math.rsqrt %322 : vector<8x1xf32>
    %324 = vector.broadcast %323 : vector<8x1xf32> to vector<8x32xf32>
    %325 = arith.mulf %315, %324 : vector<8x32xf32>
    %326 = vector.broadcast %307 : vector<1x32xf32> to vector<8x32xf32>
    %327 = arith.mulf %325, %326 : vector<8x32xf32>
    %328 = vector.broadcast %309 : vector<1x32xf32> to vector<8x32xf32>
    %329 = arith.addf %327, %328 : vector<8x32xf32>
    %c1_164 = arith.constant 1 : index
    %c0_165 = arith.constant 0 : index
    %c0_166 = arith.constant 0 : index
    %330 = vector.load %arg22[%c1_164, %c0_165, %c0_166] : memref<2x32x32xf32, #tpu.memory_space<vmem>>, vector<1x32x32xf32>
    %331 = vector.shape_cast %330 : vector<1x32x32xf32> to vector<32x32xf32>
    %cst_167 = arith.constant dense<0.000000e+00> : vector<8x32xf32>
    %332 = tpu.matmul %329, %331, %cst_167 {dimension_numbers = #tpu.dot_dimension_numbers<[1], [0], [0], [1], [0, 0, 1, 1], [], []>} : vector<8x32xf32>, vector<32x32xf32>, vector<8x32xf32> -> vector<8x32xf32>
    %c1_168 = arith.constant 1 : index
    %c0_169 = arith.constant 0 : index
    %c0_170 = arith.constant 0 : index
    %333 = vector.load %arg23[%c1_168, %c0_169, %c0_170] : memref<2x1x32xf32, #tpu.memory_space<vmem>>, vector<1x1x32xf32>
    %334 = vector.shape_cast %333 : vector<1x1x32xf32> to vector<1x32xf32>
    %335 = vector.broadcast %334 : vector<1x32xf32> to vector<8x32xf32>
    %336 = arith.addf %332, %335 : vector<8x32xf32>
    %cst_171 = arith.constant 0.000000e+00 : f32
    %337 = vector.broadcast %cst_171 : f32 to vector<8x32xf32>
    %338 = arith.maximumf %336, %337 : vector<8x32xf32>
    %c1_172 = arith.constant 1 : index
    %c0_173 = arith.constant 0 : index
    %c0_174 = arith.constant 0 : index
    %339 = vector.load %arg24[%c1_172, %c0_173, %c0_174] : memref<2x32x32xf32, #tpu.memory_space<vmem>>, vector<1x32x32xf32>
    %340 = vector.shape_cast %339 : vector<1x32x32xf32> to vector<32x32xf32>
    %cst_175 = arith.constant dense<0.000000e+00> : vector<8x32xf32>
    %341 = tpu.matmul %338, %340, %cst_175 {dimension_numbers = #tpu.dot_dimension_numbers<[1], [0], [0], [1], [0, 0, 1, 1], [], []>} : vector<8x32xf32>, vector<32x32xf32>, vector<8x32xf32> -> vector<8x32xf32>
    %c1_176 = arith.constant 1 : index
    %c0_177 = arith.constant 0 : index
    %c0_178 = arith.constant 0 : index
    %342 = vector.load %arg25[%c1_176, %c0_177, %c0_178] : memref<2x1x32xf32, #tpu.memory_space<vmem>>, vector<1x1x32xf32>
    %343 = vector.shape_cast %342 : vector<1x1x32xf32> to vector<1x32xf32>
    %344 = vector.broadcast %343 : vector<1x32xf32> to vector<8x32xf32>
    %345 = arith.addf %341, %344 : vector<8x32xf32>
    %346 = arith.addf %329, %345 : vector<8x32xf32>
    %c1_179 = arith.constant 1 : index
    %c0_180 = arith.constant 0 : index
    %c0_181 = arith.constant 0 : index
    %347 = vector.load %arg28[%c1_179, %c0_180, %c0_181] : memref<2x1x32xf32, #tpu.memory_space<vmem>>, vector<1x1x32xf32>
    %348 = vector.shape_cast %347 : vector<1x1x32xf32> to vector<1x32xf32>
    %c1_182 = arith.constant 1 : index
    %c0_183 = arith.constant 0 : index
    %c0_184 = arith.constant 0 : index
    %349 = vector.load %arg29[%c1_182, %c0_183, %c0_184] : memref<2x1x32xf32, #tpu.memory_space<vmem>>, vector<1x1x32xf32>
    %350 = vector.shape_cast %349 : vector<1x1x32xf32> to vector<1x32xf32>
    %cst_185 = arith.constant dense<0.000000e+00> : vector<8xf32>
    %351 = vector.multi_reduction <add>, %346, %cst_185 [1] : vector<8x32xf32> to vector<8xf32>
    %352 = vector.shape_cast %351 : vector<8xf32> to vector<8x1xf32>
    %cst_186 = arith.constant 3.200000e+01 : f32
    %353 = vector.broadcast %cst_186 : f32 to vector<8x1xf32>
    %354 = arith.divf %352, %353 : vector<8x1xf32>
    %355 = vector.broadcast %354 : vector<8x1xf32> to vector<8x32xf32>
    %356 = arith.subf %346, %355 : vector<8x32xf32>
    %357 = arith.mulf %356, %356 : vector<8x32xf32>
    %cst_187 = arith.constant dense<0.000000e+00> : vector<8xf32>
    %358 = vector.multi_reduction <add>, %357, %cst_187 [1] : vector<8x32xf32> to vector<8xf32>
    %359 = vector.shape_cast %358 : vector<8xf32> to vector<8x1xf32>
    %cst_188 = arith.constant 3.200000e+01 : f32
    %360 = vector.broadcast %cst_188 : f32 to vector<8x1xf32>
    %361 = arith.divf %359, %360 : vector<8x1xf32>
    %cst_189 = arith.constant 9.99999974E-6 : f32
    %362 = vector.broadcast %cst_189 : f32 to vector<8x1xf32>
    %363 = arith.addf %361, %362 : vector<8x1xf32>
    %364 = math.rsqrt %363 : vector<8x1xf32>
    %365 = vector.broadcast %364 : vector<8x1xf32> to vector<8x32xf32>
    %366 = arith.mulf %356, %365 : vector<8x32xf32>
    %367 = vector.broadcast %348 : vector<1x32xf32> to vector<8x32xf32>
    %368 = arith.mulf %366, %367 : vector<8x32xf32>
    %369 = vector.broadcast %350 : vector<1x32xf32> to vector<8x32xf32>
    %370 = arith.addf %368, %369 : vector<8x32xf32>
    %c0_190 = arith.constant 0 : index
    %c0_191 = arith.constant 0 : index
    %371 = vector.load %arg30[%c0_190, %c0_191] : memref<32x32xf32, #tpu.memory_space<vmem>>, vector<32x32xf32>
    %cst_192 = arith.constant dense<0.000000e+00> : vector<8x32xf32>
    %372 = tpu.matmul %370, %371, %cst_192 {dimension_numbers = #tpu.dot_dimension_numbers<[1], [0], [0], [1], [0, 0, 1, 1], [], []>} : vector<8x32xf32>, vector<32x32xf32>, vector<8x32xf32> -> vector<8x32xf32>
    %c0_193 = arith.constant 0 : index
    %c0_194 = arith.constant 0 : index
    %373 = vector.load %arg31[%c0_193, %c0_194] : memref<1x32xf32, #tpu.memory_space<vmem>>, vector<1x32xf32>
    %374 = vector.broadcast %373 : vector<1x32xf32> to vector<8x32xf32>
    %375 = arith.addf %372, %374 : vector<8x32xf32>
    %c0_195 = arith.constant 0 : index
    %c0_196 = arith.constant 0 : index
    %c0_197 = arith.constant 0 : index
    %376 = vector.load %arg36[%c0_195, %c0_196, %c0_197] : memref<1x8x32xf32, #tpu.memory_space<vmem>>, vector<1x8x32xf32>
    %377 = vector.shape_cast %376 : vector<1x8x32xf32> to vector<8x32xf32>
    %378 = vector.shape_cast %375 : vector<8x32xf32> to vector<1x8x32xf32>
    tpu.vector_store %arg36[%c0_195, %c0_196, %c0_197], %378 {strides = array<i32>} : memref<1x8x32xf32, #tpu.memory_space<vmem>>, vector<1x8x32xf32>,
    %c0_198 = arith.constant 0 : index
    %c0_199 = arith.constant 0 : index
    %379 = vector.load %arg32[%c0_198, %c0_199] : memref<32x128xf32, #tpu.memory_space<vmem>>, vector<32x128xf32>
    %cst_200 = arith.constant dense<0.000000e+00> : vector<8x128xf32>
    %380 = tpu.matmul %375, %379, %cst_200 {dimension_numbers = #tpu.dot_dimension_numbers<[1], [0], [0], [1], [0, 0, 1, 1], [], []>} : vector<8x32xf32>, vector<32x128xf32>, vector<8x128xf32> -> vector<8x128xf32>
    %c0_201 = arith.constant 0 : index
    %c0_202 = arith.constant 0 : index
    %381 = vector.load %arg33[%c0_201, %c0_202] : memref<1x128xf32, #tpu.memory_space<vmem>>, vector<1x128xf32>
    %382 = vector.broadcast %381 : vector<1x128xf32> to vector<8x128xf32>
    %383 = arith.addf %380, %382 : vector<8x128xf32>
    %cst_203 = arith.constant 0.000000e+00 : f32
    %384 = vector.broadcast %cst_203 : f32 to vector<8x128xf32>
    %385 = arith.maximumf %383, %384 : vector<8x128xf32>
    %c0_204 = arith.constant 0 : index
    %c0_205 = arith.constant 0 : index
    %386 = vector.load %arg34[%c0_204, %c0_205] : memref<128x4xf32, #tpu.memory_space<vmem>>, vector<128x4xf32>
    %cst_206 = arith.constant dense<0.000000e+00> : vector<8x4xf32>
    %387 = tpu.matmul %385, %386, %cst_206 {dimension_numbers = #tpu.dot_dimension_numbers<[1], [0], [0], [1], [0, 0, 1, 1], [], []>} : vector<8x128xf32>, vector<128x4xf32>, vector<8x4xf32> -> vector<8x4xf32>
    %c0_207 = arith.constant 0 : index
    %c0_208 = arith.constant 0 : index
    %388 = vector.load %arg35[%c0_207, %c0_208] : memref<1x4xf32, #tpu.memory_space<vmem>>, vector<1x4xf32>
    %389 = vector.broadcast %388 : vector<1x4xf32> to vector<8x4xf32>
    %390 = arith.addf %387, %389 : vector<8x4xf32>
    %391 = vector.extract_strided_slice %390 {offsets = [7, 0], sizes = [1, 4], strides = [1, 1]} : vector<8x4xf32> to vector<1x4xf32>
    %c0_209 = arith.constant 0 : index
    %c0_210 = arith.constant 0 : index
    %c0_211 = arith.constant 0 : index
    %392 = vector.load %arg37[%c0_209, %c0_210, %c0_211] : memref<1x1x4xf32, #tpu.memory_space<vmem>>, vector<1x1x4xf32>
    %393 = vector.shape_cast %392 : vector<1x1x4xf32> to vector<1x4xf32>
    %394 = vector.shape_cast %391 : vector<1x4xf32> to vector<1x1x4xf32>
    tpu.vector_store %arg37[%c0_209, %c0_210, %c0_211], %394 {strides = array<i32>} : memref<1x1x4xf32, #tpu.memory_space<vmem>>, vector<1x1x4xf32>,
    return
  }
  func.func @transform_0(%arg0: i32) -> (i32, i32, i32) {
    %c0_i32 = arith.constant 0 : i32
    %c0_i32_0 = arith.constant 0 : i32
    %c0_i32_1 = arith.constant 0 : i32
    return %arg0, %c0_i32, %c0_i32_0 : i32, i32, i32
  }
  func.func @transform_1(%arg0: i32) -> (i32, i32) {
    %c0_i32 = arith.constant 0 : i32
    %c0_i32_0 = arith.constant 0 : i32
    %c0_i32_1 = arith.constant 0 : i32
    return %c0_i32, %c0_i32_0 : i32, i32
  }
  func.func @transform_2(%arg0: i32) -> (i32, i32) {
    %c0_i32 = arith.constant 0 : i32
    %c0_i32_0 = arith.constant 0 : i32
    %c0_i32_1 = arith.constant 0 : i32
    return %c0_i32, %c0_i32_0 : i32, i32
  }
  func.func @transform_3(%arg0: i32) -> (i32, i32) {
    %c0_i32 = arith.constant 0 : i32
    %c0_i32_0 = arith.constant 0 : i32
    %c0_i32_1 = arith.constant 0 : i32
    return %c0_i32, %c0_i32_0 : i32, i32
  }
  func.func @transform_4(%arg0: i32) -> (i32, i32) {
    %c0_i32 = arith.constant 0 : i32
    %c0_i32_0 = arith.constant 0 : i32
    %c0_i32_1 = arith.constant 0 : i32
    return %c0_i32, %c0_i32_0 : i32, i32
  }
  func.func @transform_5(%arg0: i32) -> (i32, i32) {
    %c0_i32 = arith.constant 0 : i32
    %c0_i32_0 = arith.constant 0 : i32
    %c0_i32_1 = arith.constant 0 : i32
    return %c0_i32, %c0_i32_0 : i32, i32
  }
  func.func @transform_6(%arg0: i32) -> (i32, i32) {
    %c0_i32 = arith.constant 0 : i32
    %c0_i32_0 = arith.constant 0 : i32
    %c0_i32_1 = arith.constant 0 : i32
    return %c0_i32, %c0_i32_0 : i32, i32
  }
  func.func @transform_7(%arg0: i32) -> (i32, i32) {
    %c0_i32 = arith.constant 0 : i32
    %c0_i32_0 = arith.constant 0 : i32
    %c0_i32_1 = arith.constant 0 : i32
    return %c0_i32, %c0_i32_0 : i32, i32
  }
  func.func @transform_8(%arg0: i32) -> (i32, i32) {
    %c0_i32 = arith.constant 0 : i32
    %c0_i32_0 = arith.constant 0 : i32
    %c0_i32_1 = arith.constant 0 : i32
    return %c0_i32, %c0_i32_0 : i32, i32
  }
  func.func @transform_9(%arg0: i32) -> (i32, i32) {
    %c0_i32 = arith.constant 0 : i32
    %c0_i32_0 = arith.constant 0 : i32
    %c0_i32_1 = arith.constant 0 : i32
    return %c0_i32, %c0_i32_0 : i32, i32
  }
  func.func @transform_10(%arg0: i32) -> (i32, i32) {
    %c0_i32 = arith.constant 0 : i32
    %c0_i32_0 = arith.constant 0 : i32
    %c0_i32_1 = arith.constant 0 : i32
    return %c0_i32, %c0_i32_0 : i32, i32
  }
  func.func @transform_11(%arg0: i32) -> (i32, i32) {
    %c0_i32 = arith.constant 0 : i32
    %c0_i32_0 = arith.constant 0 : i32
    %c0_i32_1 = arith.constant 0 : i32
    return %c0_i32, %c0_i32_0 : i32, i32
  }
  func.func @transform_12(%arg0: i32) -> (i32, i32) {
    %c0_i32 = arith.constant 0 : i32
    %c0_i32_0 = arith.constant 0 : i32
    %c0_i32_1 = arith.constant 0 : i32
    return %c0_i32, %c0_i32_0 : i32, i32
  }
  func.func @transform_13(%arg0: i32) -> (i32, i32) {
    %c0_i32 = arith.constant 0 : i32
    %c0_i32_0 = arith.constant 0 : i32
    %c0_i32_1 = arith.constant 0 : i32
    return %c0_i32, %c0_i32_0 : i32, i32
  }
  func.func @transform_14(%arg0: i32) -> (i32, i32) {
    %c0_i32 = arith.constant 0 : i32
    %c0_i32_0 = arith.constant 0 : i32
    %c0_i32_1 = arith.constant 0 : i32
    return %c0_i32, %c0_i32_0 : i32, i32
  }
  func.func @transform_15(%arg0: i32) -> (i32, i32) {
    %c0_i32 = arith.constant 0 : i32
    %c0_i32_0 = arith.constant 0 : i32
    %c0_i32_1 = arith.constant 0 : i32
    return %c0_i32, %c0_i32_0 : i32, i32
  }
  func.func @transform_16(%arg0: i32) -> (i32, i32) {
    %c0_i32 = arith.constant 0 : i32
    %c0_i32_0 = arith.constant 0 : i32
    %c0_i32_1 = arith.constant 0 : i32
    return %c0_i32, %c0_i32_0 : i32, i32
  }
  func.func @transform_17(%arg0: i32) -> (i32, i32, i32) {
    %c0_i32 = arith.constant 0 : i32
    %c0_i32_0 = arith.constant 0 : i32
    %c0_i32_1 = arith.constant 0 : i32
    %c0_i32_2 = arith.constant 0 : i32
    return %c0_i32, %c0_i32_0, %c0_i32_1 : i32, i32, i32
  }
  func.func @transform_18(%arg0: i32) -> (i32, i32, i32) {
    %c0_i32 = arith.constant 0 : i32
    %c0_i32_0 = arith.constant 0 : i32
    %c0_i32_1 = arith.constant 0 : i32
    %c0_i32_2 = arith.constant 0 : i32
    return %c0_i32, %c0_i32_0, %c0_i32_1 : i32, i32, i32
  }
  func.func @transform_19(%arg0: i32) -> (i32, i32, i32) {
    %c0_i32 = arith.constant 0 : i32
    %c0_i32_0 = arith.constant 0 : i32
    %c0_i32_1 = arith.constant 0 : i32
    %c0_i32_2 = arith.constant 0 : i32
    return %c0_i32, %c0_i32_0, %c0_i32_1 : i32, i32, i32
  }
  func.func @transform_20(%arg0: i32) -> (i32, i32, i32) {
    %c0_i32 = arith.constant 0 : i32
    %c0_i32_0 = arith.constant 0 : i32
    %c0_i32_1 = arith.constant 0 : i32
    %c0_i32_2 = arith.constant 0 : i32
    return %c0_i32, %c0_i32_0, %c0_i32_1 : i32, i32, i32
  }
  func.func @transform_21(%arg0: i32) -> (i32, i32, i32) {
    %c0_i32 = arith.constant 0 : i32
    %c0_i32_0 = arith.constant 0 : i32
    %c0_i32_1 = arith.constant 0 : i32
    %c0_i32_2 = arith.constant 0 : i32
    return %c0_i32, %c0_i32_0, %c0_i32_1 : i32, i32, i32
  }
  func.func @transform_22(%arg0: i32) -> (i32, i32, i32) {
    %c0_i32 = arith.constant 0 : i32
    %c0_i32_0 = arith.constant 0 : i32
    %c0_i32_1 = arith.constant 0 : i32
    %c0_i32_2 = arith.constant 0 : i32
    return %c0_i32, %c0_i32_0, %c0_i32_1 : i32, i32, i32
  }
  func.func @transform_23(%arg0: i32) -> (i32, i32, i32) {
    %c0_i32 = arith.constant 0 : i32
    %c0_i32_0 = arith.constant 0 : i32
    %c0_i32_1 = arith.constant 0 : i32
    %c0_i32_2 = arith.constant 0 : i32
    return %c0_i32, %c0_i32_0, %c0_i32_1 : i32, i32, i32
  }
  func.func @transform_24(%arg0: i32) -> (i32, i32, i32) {
    %c0_i32 = arith.constant 0 : i32
    %c0_i32_0 = arith.constant 0 : i32
    %c0_i32_1 = arith.constant 0 : i32
    %c0_i32_2 = arith.constant 0 : i32
    return %c0_i32, %c0_i32_0, %c0_i32_1 : i32, i32, i32
  }
  func.func @transform_25(%arg0: i32) -> (i32, i32, i32) {
    %c0_i32 = arith.constant 0 : i32
    %c0_i32_0 = arith.constant 0 : i32
    %c0_i32_1 = arith.constant 0 : i32
    %c0_i32_2 = arith.constant 0 : i32
    return %c0_i32, %c0_i32_0, %c0_i32_1 : i32, i32, i32
  }
  func.func @transform_26(%arg0: i32) -> (i32, i32, i32) {
    %c0_i32 = arith.constant 0 : i32
    %c0_i32_0 = arith.constant 0 : i32
    %c0_i32_1 = arith.constant 0 : i32
    %c0_i32_2 = arith.constant 0 : i32
    return %c0_i32, %c0_i32_0, %c0_i32_1 : i32, i32, i32
  }
  func.func @transform_27(%arg0: i32) -> (i32, i32, i32) {
    %c0_i32 = arith.constant 0 : i32
    %c0_i32_0 = arith.constant 0 : i32
    %c0_i32_1 = arith.constant 0 : i32
    %c0_i32_2 = arith.constant 0 : i32
    return %c0_i32, %c0_i32_0, %c0_i32_1 : i32, i32, i32
  }
  func.func @transform_28(%arg0: i32) -> (i32, i32, i32) {
    %c0_i32 = arith.constant 0 : i32
    %c0_i32_0 = arith.constant 0 : i32
    %c0_i32_1 = arith.constant 0 : i32
    %c0_i32_2 = arith.constant 0 : i32
    return %c0_i32, %c0_i32_0, %c0_i32_1 : i32, i32, i32
  }
  func.func @transform_29(%arg0: i32) -> (i32, i32) {
    %c0_i32 = arith.constant 0 : i32
    %c0_i32_0 = arith.constant 0 : i32
    %c0_i32_1 = arith.constant 0 : i32
    return %c0_i32, %c0_i32_0 : i32, i32
  }
  func.func @transform_30(%arg0: i32) -> (i32, i32) {
    %c0_i32 = arith.constant 0 : i32
    %c0_i32_0 = arith.constant 0 : i32
    %c0_i32_1 = arith.constant 0 : i32
    return %c0_i32, %c0_i32_0 : i32, i32
  }
  func.func @transform_31(%arg0: i32) -> (i32, i32) {
    %c0_i32 = arith.constant 0 : i32
    %c0_i32_0 = arith.constant 0 : i32
    %c0_i32_1 = arith.constant 0 : i32
    return %c0_i32, %c0_i32_0 : i32, i32
  }
  func.func @transform_32(%arg0: i32) -> (i32, i32) {
    %c0_i32 = arith.constant 0 : i32
    %c0_i32_0 = arith.constant 0 : i32
    %c0_i32_1 = arith.constant 0 : i32
    return %c0_i32, %c0_i32_0 : i32, i32
  }
  func.func @transform_33(%arg0: i32) -> (i32, i32) {
    %c0_i32 = arith.constant 0 : i32
    %c0_i32_0 = arith.constant 0 : i32
    %c0_i32_1 = arith.constant 0 : i32
    return %c0_i32, %c0_i32_0 : i32, i32
  }
  func.func @transform_34(%arg0: i32) -> (i32, i32) {
    %c0_i32 = arith.constant 0 : i32
    %c0_i32_0 = arith.constant 0 : i32
    %c0_i32_1 = arith.constant 0 : i32
    return %c0_i32, %c0_i32_0 : i32, i32
  }
  func.func @transform_35(%arg0: i32) -> (i32, i32, i32) {
    %c0_i32 = arith.constant 0 : i32
    %c0_i32_0 = arith.constant 0 : i32
    %c0_i32_1 = arith.constant 0 : i32
    return %arg0, %c0_i32, %c0_i32_0 : i32, i32, i32
  }
  func.func @transform_36(%arg0: i32) -> (i32, i32, i32) {
    %c0_i32 = arith.constant 0 : i32
    %c0_i32_0 = arith.constant 0 : i32
    %c0_i32_1 = arith.constant 0 : i32
    return %arg0, %c0_i32, %c0_i32_0 : i32, i32, i32
  }
}

</mosaic_0001>

<bundles_post_ra>
// kernel: improvformer_forward.1
= control target key start
LH: loop header
LB: loop body
LE: loop exit
PB: predicated region body
PF: predicated region fallthrough
CT: control target
= control target key end

     0   :  { %s6705_s6 = smov 1   ;;  %s6706_s10 = smov 2   ;;  %s7735_s0 = inlined_call_operand.smem [shape: u32[37], index: -1, kind: input, shape index: {}] }
   0x1   :  { %s6782_s5 = sld [smem:[%s7735_s0]]   ;;  %s6707_s14 = smov 3  }
   0x2   :  { %s6787_s9 = sld [smem:[%s7735_s0 + %s6705_s6]]   ;;  %s6708_s18 = smov 4  }
   0x3   :  { %s6792_s13 = sld [smem:[%s7735_s0 + %s6706_s10]]   ;;  %s6709_s22 = smov 5  }
   0x4   :  { %s6797_s17 = sld [smem:[%s7735_s0 + %s6707_s14]]   ;;  %s6710_s26 = smov 6  }
   0x5   :  { %s6802_s21 = sld [smem:[%s7735_s0 + %s6708_s18]]   ;;  %s6711_s30 = smov 7  }
   0x6   :  { %s6807_s25 = sld [smem:[%s7735_s0 + %s6709_s22]]   ;;  %s6712_s4 = smov 8  }
   0x7   :  { %7784 = sst [smem:[#allocation47_spill]] %s6782_s5  ;;  %s6713_s10 = smov 9  }
   0x8   :  { %7785 = sst [smem:[#allocation48_spill]] %s6787_s9  ;;  %s6714_s15 = smov 10  }
   0x9   :  { %7786 = sst [smem:[#allocation49_spill]] %s6792_s13  ;;  %s6715_s20 = smov 11  }
   0xa   :  { %7787 = sst [smem:[#allocation50_spill]] %s6797_s17  ;;  %s6717_s1 = smov 13  }
   0xb   :  { %7788 = sst [smem:[#allocation51_spill]] %s6802_s21  ;;  %s6718_s7 = smov 14  }
   0xc   :  { %7789 = sst [smem:[#allocation52_spill]] %s6807_s25  ;;  %s6720_s22 = smov 16  }
   0xd   :  { %s6812_s29 = sld [smem:[%s7735_s0 + %s6710_s26]]   ;;  %s6716_s26 = smov 12  }
   0xe   :  { %s6817_s3 = sld [smem:[%s7735_s0 + %s6711_s30]]   ;;  %s6721_s28 = smov 17  }
   0xf   :  { %s6822_s8 = sld [smem:[%s7735_s0 + %s6712_s4]]  }
  0x10   :  { %s6827_s14 = sld [smem:[%s7735_s0 + %s6713_s10]]  }
  0x11   :  { %s6832_s19 = sld [smem:[%s7735_s0 + %s6714_s15]]   ;;  %s6719_s15 = smov 15  }
  0x12   :  { %s6837_s24 = sld [smem:[%s7735_s0 + %s6715_s20]]  }
  0x13   :  { %s6842_s30 = sld [smem:[%s7735_s0 + %s6716_s26]]  }
  0x14   :  { %7790 = sst [smem:[#allocation53_spill]] %s6817_s3 }
  0x15   :  { %7791 = sst [smem:[#allocation54_spill]] %s6822_s8 }
  0x16   :  { %7792 = sst [smem:[#allocation55_spill]] %s6827_s14 }
  0x17   :  { %s6847_s6 = sld [smem:[%s7735_s0 + %s6717_s1]]  }
  0x18   :  { %7793 = sst [smem:[#allocation56_spill]] %s6837_s24 }
  0x19   :  { %s6852_s12 = sld [smem:[%s7735_s0 + %s6718_s7]]   ;;  %s6722_s7 = smov 18  }
  0x1a   :  { %s6857_s20 = sld [smem:[%s7735_s0 + %s6719_s15]]   ;;  %s6723_s15 = smov 19  }
  0x1b   :  { %s6862_s27 = sld [smem:[%s7735_s0 + %s6720_s22]]   ;;  %s6724_s22 = smov 20  }
  0x1c   :  { %s6867_s4 = sld [smem:[%s7735_s0 + %s6721_s28]]   ;;  %s6725_s28 = smov 21  }
  0x1d   :  { %7794 = sst [smem:[#allocation57_spill]] %s6847_s6 }
  0x1e   :  { %s6872_s13 = sld [smem:[%s7735_s0 + %s6722_s7]]   ;;  %s6726_s7 = smov 22  }
  0x1f   :  { %7795 = sst [smem:[#allocation58_spill]] %s6852_s12 }
  0x20   :  { %7796 = sst [smem:[#allocation59_spill]] %s6857_s20 }
  0x21   :  { %s6877_s20 = sld [smem:[%s7735_s0 + %s6723_s15]]   ;;  %s6727_s15 = smov 23  }
  0x22   :  { %7797 = sst [smem:[#allocation60_spill]] %s6867_s4 }
  0x23   :  { %s6882_s6 = sld [smem:[%s7735_s0 + %s6724_s22]]   ;;  %s6728_s22 = smov 24  }
  0x24   :  { %s6887_s4 = sld [smem:[%s7735_s0 + %s6725_s28]]   ;;  %s6729_s28 = smov 25  }
  0x25   :  { %s6892_s14 = sld [smem:[%s7735_s0 + %s6726_s7]]   ;;  %s6730_s7 = smov 26  }
  0x26   :  { %s6902_s3 = sld [smem:[%s7735_s0 + %s6728_s22]]   ;;  %s6732_s22 = smov 28  }
  0x27   :  { %7798 = sst [smem:[#allocation61_spill]] %s6877_s20 }
  0x28   :  { %s6897_s20 = sld [smem:[%s7735_s0 + %s6727_s15]]   ;;  %s6731_s15 = smov 27  }
  0x29   :  { %7799 = sst [smem:[#allocation62_spill]] %s6882_s6 }
  0x2a   :  { %7800 = sst [smem:[#allocation63_spill]] %s6887_s4 }
  0x2b   :  { %s6907_s4 = sld [smem:[%s7735_s0 + %s6729_s28]]   ;;  %s6733_s28 = smov 29  }
  0x2c   :  { %7802 = sst [smem:[#allocation65_spill]] %s6902_s3 }
  0x2d   :  { %s6912_s9 = sld [smem:[%s7735_s0 + %s6730_s7]]   ;;  %s6734_s7 = smov 30  }
  0x2e   :  { %7801 = sst [smem:[#allocation64_spill]] %s6897_s20 }
  0x2f   :  { %s6917_s20 = sld [smem:[%s7735_s0 + %s6731_s15]]   ;;  %s6735_s15 = smov 31  }
  0x30   :  { %s6922_s21 = sld [smem:[%s7735_s0 + %s6732_s22]]   ;;  %s6736_s22 = smov 32  }
  0x31   :  { %7803 = sst [smem:[#allocation66_spill]] %s6907_s4 }
  0x32   :  { %s6927_s25 = sld [smem:[%s7735_s0 + %s6733_s28]]   ;;  %s6737_s28 = smov 33  }
  0x33   :  { %7804 = sst [smem:[#allocation67_spill]] %s6912_s9 }
  0x34   :  { %s6932_s5 = sld [smem:[%s7735_s0 + %s6734_s7]]   ;;  %s6738_s7 = smov 34  }
  0x35   :  { %s6937_s17 = sld [smem:[%s7735_s0 + %s6735_s15]]   ;;  %s6739_s15 = smov 35  }
  0x36   :  { %7805 = sst [smem:[#allocation68_spill]] %s6922_s21 }
  0x37   :  { %s6942_s21 = sld [smem:[%s7735_s0 + %s6736_s22]]   ;;  %s6740_s22 = smov 36  }
  0x38   :  { %7806 = sst [smem:[#allocation69_spill]] %s6927_s25 }
  0x39   :  { %s6947_s25 = sld [smem:[%s7735_s0 + %s6737_s28]]  }
  0x3a   :  { %7807 = sst [smem:[#allocation70_spill]] %s6932_s5 }
  0x3b   :  { %7808 = sst [smem:[#allocation71_spill]] %s6937_s17 }
  0x3c   :  { %s6952_s9 = sld [smem:[%s7735_s0 + %s6738_s7]]  }
  0x3d   :  { %s6957_s17 = sld [smem:[%s7735_s0 + %s6739_s15]]  }
  0x3e   :  { %s6962_s3 = sld [smem:[%s7735_s0 + %s6740_s22]]  }
  0x42   :  { %7809 = sst [smem:[#allocation72_spill]] %s6952_s9 }
  0x43   :  { %79 = vsyncpa [#allocation3], 0 }
  0x44   :  { %80 = vsyncpa [#allocation6], 0 }
  0x45   :  { %81 = vsyncpa [#allocation9], 0 }
  0x46   :  { %82 = vsyncpa [#allocation12], 0 }
  0x47   :  { %83 = vsyncpa [#allocation15], 0 }
  0x48   :  { %84 = vsyncpa [#allocation18], 0 }
  0x49   :  { %85 = vsyncpa [#allocation21], 0 }
  0x4a   :  { %86 = vsyncpa [#allocation24], 0 }
  0x4b   :  { %87 = vsyncpa [#allocation27], 0 }
  0x4c   :  { %88 = vsyncpa [#allocation30], 0 }
  0x4d   :  { %89 = vsyncpa [#allocation4], 0 }
  0x4e   :  { %91 = vsyncpa [#allocation4 + $0x1], 0 }
  0x4f   :  { %92 = vsyncpa [#allocation34], 0 }
  0x50   :  { %94 = vsyncpa [#allocation34 + $0x1], 0  ;;  %s6964_s28 = smov 0   ;;  %s6966_s1 = smov 0  }
  0x51   :  { %s6968_s0 = smov 0   ;;  %s6970_s2 = smov 0  }
  0x52 LB: > { %s7810_s9 = sld [smem:[#allocation72_spill]]  ;;  %s7811_s6 = sld [smem:[#allocation62_spill]]  ;;  %s6699_s0 = sphi %s6968_s0, %s7881_s0   ;;  %s6695_s1 = sphi %s6966_s1, %s7883_s1   ;;  %s6691_s28 = sphi %s6964_s28, %s7882_s28   ;;  %s6703_s2 = sphi %s6970_s2, %s7879_s2  }
  0x53   : > { %s7812_s5 = sld [smem:[#allocation70_spill]]  ;;  %s7813_s4 = sld [smem:[#allocation66_spill]] }
  0x54   : > { %s7814_s24 = sld [smem:[#allocation56_spill]]  ;;  %s7815_s12 = sld [smem:[#allocation58_spill]] }
  0x55   : > { %s7816_s8 = sld [smem:[#allocation54_spill]]  ;;  %7817 = sst [smem:[#allocation73_spill]] %s6691_s28 }
  0x56   : > { %7818 = sst [smem:[#allocation74_spill]] %s6699_s0  ;;  %s6985_s7 = sadd.s32 4294967295, %s6703_s2  }
  0x57   : > { %s4991_s10 = sadd.s32 4294967294, %s6703_s2   ;;  %s6989_s11 = sadd.s32 1, %s6703_s2  }
  0x58   : > { %7819 = sst [smem:[#allocation75_spill]] %s6989_s11  ;;  %s847_s15 = sadd.s32 1, %s6699_s0 }
  0x59   : > { %s844_s16 = ssub.s32 %s6703_s2, %s6989_s11  ;;  %p857_p0 = scmp.ne.s32.totalorder %s6699_s0, %s6695_s1 }
  0x5a   : > { %p845_p1 = scmp.eq.s32.totalorder %s844_s16, 0  ;;  %p858_p2 = scmp.eq.s32.totalorder %s6985_s7, 1 }
  0x5b   : > { %p863_p3 = scmp.ne.s32.totalorder %s6695_s1, %s6691_s28  ;;  %p864_p4 = scmp.eq.s32.totalorder %s4991_s10, 1 }
  0x5c   : > { %s7000_s18 = scalar_select %p845_p1, %s6699_s0, %s847_s15  }
  0x5d   : > { %p7002_p5 = por %p858_p2, %p857_p0  ;;  %p7006_p6 = por %p864_p4, %p863_p3 }
  0x5e   : > { %7820 = sst [smem:[#allocation76_spill]] %s7000_s18  ;;  %p4992_p7 = scmp.ge.s32.totalorder %s6703_s2, 1 }
  0x5f   : > { %s7821_s22 = scalar_select %p7002_p5, 1, 0 }
  0x60   : > { %s7822_s23 = scalar_select %p7006_p6, 1, 0 }
  0x61   : > { %p897_p8 = scmp.lt.s32.totalorder %s6703_s2, 3  ;;  %p7756_p9 = scmp.eq.s32.totalorder %s6985_s7, 0 }
  0x62   : > { %7823 = sst [smem:[#allocation77_spill]] %s7822_s23  ;;  %s6741_s10 = smov [#allocation5]  }
  0x63   : > { %p7013_p10 = pnand %p4992_p7, %p897_p8  ;;  %s939_s15 = sshll.u32 %s6741_s10, 4  ;;  %s940_s15 = int_to_ptr.vmem [resolvable:$true] %s939_s15 }
  0x64   : > { %s6742_s16 = smov [#allocation8]   ;;  %s6743_s11 = smov [#allocation11]  }
  0x65   : > { %s7824_s26 = scalar_select %p7013_p10, 1, 0 }
  0x66   : > { %p5794_p11 = pneg %p7013_p10  ;;  %s963_s18 = sshll.u32 %s6742_s16, 4  ;;  %s7025_s18 = int_to_ptr.vmem [resolvable:$true] %s963_s18 }
  0x67   : > { %s7027_s23 = sshll.u32 %s6743_s11, 4  ;;  %s6037_s28 = scalar_lea.hbm %s7816_s8, 16  ;;  %s992_s23 = int_to_ptr.vmem [resolvable:$true] %s7027_s23 }
  0x68   : > { %p7021_p12 = pnand %p7756_p9, %p5794_p11  ;;  %p6038_p13 = scmp.ne.s32.totalorder %s7816_s8, %s6037_s28 }
  0x69   : > { %p6044_p3 = scmp.lt.u32.totalorder %s6037_s28, %s7816_s8 }
  0x6a   : > { %p7033_p0 = pneg %p7021_p12 }
  0x6c   : > { %p6040_p1 = pnand %p7033_p0, %p6038_p13 }
  0x6e   : > { %p6041_p2 = pneg %p6040_p1 }
  0x70   : > { %p6046_p4 = pnand %p6044_p3, %p6041_p2 }
  0x72   : > { %6049 = shalt.err (!%p6046_p4)
}
  0x73   : > { %s6050_s16 = scalar_lea.vmem %s940_s15, 16  ;;  %s6057_s11 = scalar_lea.vmem %s940_s15, 32 }
  0x74   : > { %p6051_p7 = scmp.ne.s32.totalorder %s940_s15, %s6050_s16  ;;  %p6058_p9 = scmp.lt.s32.totalorder %s940_s15, %s940_s15 }
  0x75   : > { %p6059_p6 = scmp.lt.s32.totalorder %s6057_s11, %s6050_s16 }
  0x76   : > { %p6053_p8 = pnand %p6051_p7, %p7033_p0 }
  0x77   : > { %p6060_p5 = por %p6059_p6, %p6058_p9 }
  0x78   : > { %p6054_p11 = pneg %p6053_p8 }
  0x7a   : > { %p6061_p10 = pnand %p6060_p5, %p6054_p11 }
  0x7c   : > { %6064 = shalt.err (!%p6061_p10)
}
  0x7d   : > { %5800 = dma.hbm_to_vmem [thread:$0]  (!%p7021_p12), %s7816_s8, 16, %s940_s15, [#allocation6]  }
  0x7e   : > { %s6065_s28 = scalar_lea.hbm %s7814_s24, 512 }
  0x7f   : > { %p6066_p13 = scmp.ne.s32.totalorder %s7814_s24, %s6065_s28  ;;  %p6072_p3 = scmp.lt.u32.totalorder %s6065_s28, %s7814_s24 }
  0x81   : > { %p6068_p1 = pnand %p6066_p13, %p7033_p0 }
  0x83   : > { %p6069_p2 = pneg %p6068_p1 }
  0x85   : > { %p6074_p4 = pnand %p6072_p3, %p6069_p2 }
  0x87   : > { %6077 = shalt.err (!%p6074_p4)
}
  0x88   : > { %s6078_s16 = scalar_lea.vmem %s7025_s18, 512  ;;  %p6086_p10 = scmp.lt.s32.totalorder %s7025_s18, %s7025_s18 }
  0x89   : > { %p6079_p5 = scmp.ne.s32.totalorder %s7025_s18, %s6078_s16  ;;  %p6087_p7 = scmp.lt.s32.totalorder %s6078_s16, %s6078_s16 }
  0x8b   : > { %p6081_p6 = pnand %p6079_p5, %p7033_p0  ;;  %p6088_p8 = por %p6087_p7, %p6086_p10 }
  0x8d   : > { %p6082_p9 = pneg %p6081_p6 }
  0x8f   : > { %p6089_p11 = pnand %p6088_p8, %p6082_p9 }
  0x91   : > { %6092 = shalt.err (!%p6089_p11)
}
  0x92   : > { %s7760_s15 = smov 128   ;;  %s7761_s11 = smov 8  }
  0x93   : > { %5806 = dma.hbm_to_vmem [thread:$0]  (!%p7021_p12), %s7814_s24, 512, %s7025_s18, [#allocation9], %s7760_s15, %s7760_s15, %s7761_s11  }
  0x94   : > { %s6093_s28 = scalar_lea.hbm %s7815_s12, 16 }
  0x95   : > { %p6094_p13 = scmp.ne.s32.totalorder %s7815_s12, %s6093_s28  ;;  %p6100_p3 = scmp.lt.u32.totalorder %s6093_s28, %s7815_s12 }
  0x97   : > { %p6096_p1 = pnand %p6094_p13, %p7033_p0 }
  0x99   : > { %p6097_p2 = pneg %p6096_p1 }
  0x9b   : > { %p6102_p4 = pnand %p6100_p3, %p6097_p2 }
  0x9d   : > { %6105 = shalt.err (!%p6102_p4)
}
  0x9e   : > { %s6106_s16 = scalar_lea.vmem %s992_s23, 16  ;;  %s6113_s8 = scalar_lea.vmem %s992_s23, 32 }
  0x9f   : > { %p6107_p5 = scmp.ne.s32.totalorder %s992_s23, %s6106_s16  ;;  %p6114_p10 = scmp.lt.s32.totalorder %s992_s23, %s992_s23 }
  0xa0   : > { %p6115_p7 = scmp.lt.s32.totalorder %s6113_s8, %s6106_s16 }
  0xa1   : > { %p6109_p6 = pnand %p6107_p5, %p7033_p0 }
  0xa2   : > { %p6116_p8 = por %p6115_p7, %p6114_p10 }
  0xa3   : > { %p6110_p9 = pneg %p6109_p6 }
  0xa5   : > { %p6117_p11 = pnand %p6116_p8, %p6110_p9 }
  0xa7   : > { %6120 = shalt.err (!%p6117_p11)
}
  0xa8   : > { %5812 = dma.hbm_to_vmem [thread:$0]  (!%p7021_p12), %s7815_s12, 16, %s992_s23, [#allocation12]  }
  0xa9   : > { %s6746_s18 = smov [#allocation14]   ;;  %s6121_s15 = scalar_lea.hbm %s6872_s13, 32 }
  0xaa   : > { %s1018_s28 = sshll.u32 %s6746_s18, 4  ;;  %p6122_p13 = scmp.ne.s32.totalorder %s6872_s13, %s6121_s15  ;;  %s1019_s28 = int_to_ptr.vmem [resolvable:$true] %s1018_s28 }
  0xab   : > { %p6128_p3 = scmp.lt.u32.totalorder %s6121_s15, %s6872_s13 }
  0xac   : > { %p6124_p1 = pnand %p6122_p13, %p7033_p0 }
  0xae   : > { %p6125_p2 = pneg %p6124_p1 }
  0xb0   : > { %p6130_p4 = pnand %p6128_p3, %p6125_p2 }
  0xb2   : > { %6133 = shalt.err (!%p6130_p4)
}
  0xb3   : > { %s6134_s8 = scalar_lea.vmem %s1019_s28, 32  ;;  %p6142_p10 = scmp.lt.s32.totalorder %s1019_s28, %s1019_s28 }
  0xb4   : > { %p6135_p5 = scmp.ne.s32.totalorder %s1019_s28, %s6134_s8  ;;  %p6143_p7 = scmp.lt.s32.totalorder %s6134_s8, %s6134_s8 }
  0xb6   : > { %p6137_p6 = pnand %p6135_p5, %p7033_p0  ;;  %p6144_p8 = por %p6143_p7, %p6142_p10 }
  0xb8   : > { %p6138_p9 = pneg %p6137_p6 }
  0xba   : > { %p6145_p11 = pnand %p6144_p8, %p6138_p9 }
  0xbc   : > { %6148 = shalt.err (!%p6145_p11)
}
  0xbd   : > { %s6747_s23 = smov 16   ;;  %s6748_s15 = smov 1  }
  0xbe   : > { %5818 = dma.hbm_to_vmem [thread:$0]  (!%p7021_p12), %s6872_s13, 32, %s1019_s28, [#allocation15], %s6747_s23, %s6747_s23, %s6748_s15  }
  0xbf   : > { %s6749_s16 = smov [#allocation17]   ;;  %s6750_s11 = smov [#allocation20]  }
  0xc0   : > { %s1050_s18 = sshll.u32 %s6749_s16, 4  ;;  %s1079_s8 = sshll.u32 %s6750_s11, 4  ;;  %s1051_s18 = int_to_ptr.vmem [resolvable:$true] %s1050_s18  ;;  %s7087_s8 = int_to_ptr.vmem [resolvable:$true] %s1079_s8 }
  0xc1   : > { %s6149_s12 = scalar_lea.hbm %s6892_s14, 32 }
  0xc2   : > { %p6150_p13 = scmp.ne.s32.totalorder %s6892_s14, %s6149_s12  ;;  %p6156_p3 = scmp.lt.u32.totalorder %s6149_s12, %s6892_s14 }
  0xc4   : > { %p6152_p1 = pnand %p6150_p13, %p7033_p0 }
  0xc6   : > { %p6153_p2 = pneg %p6152_p1 }
  0xc8   : > { %p6158_p4 = pnand %p6156_p3, %p6153_p2 }
  0xca   : > { %6161 = shalt.err (!%p6158_p4)
}
  0xcb   : > { %s6162_s24 = scalar_lea.vmem %s1051_s18, 32  ;;  %p6170_p10 = scmp.lt.s32.totalorder %s1051_s18, %s1051_s18 }
  0xcc   : > { %p6163_p5 = scmp.ne.s32.totalorder %s1051_s18, %s6162_s24  ;;  %p6171_p7 = scmp.lt.s32.totalorder %s6162_s24, %s6162_s24 }
  0xce   : > { %p6165_p6 = pnand %p6163_p5, %p7033_p0  ;;  %p6172_p8 = por %p6171_p7, %p6170_p10 }
  0xd0   : > { %p6166_p9 = pneg %p6165_p6 }
  0xd2   : > { %p6173_p11 = pnand %p6172_p8, %p6166_p9 }
  0xd4   : > { %6176 = shalt.err (!%p6173_p11)
}
  0xd5   : > { %5824 = dma.hbm_to_vmem [thread:$0]  (!%p7021_p12), %s6892_s14, 32, %s1051_s18, [#allocation18], %s6747_s23, %s6747_s23, %s6748_s15  }
  0xd6   : > { %s6177_s12 = scalar_lea.hbm %s7813_s4, 32 }
  0xd7   : > { %p6178_p13 = scmp.ne.s32.totalorder %s7813_s4, %s6177_s12  ;;  %p6184_p3 = scmp.lt.u32.totalorder %s6177_s12, %s7813_s4 }
  0xd9   : > { %p6180_p1 = pnand %p6178_p13, %p7033_p0 }
  0xdb   : > { %p6181_p2 = pneg %p6180_p1 }
  0xdd   : > { %p6186_p4 = pnand %p6184_p3, %p6181_p2 }
  0xdf   : > { %6189 = shalt.err (!%p6186_p4)
}
  0xe0   : > { %s6190_s24 = scalar_lea.vmem %s7087_s8, 32  ;;  %p6198_p10 = scmp.lt.s32.totalorder %s7087_s8, %s7087_s8 }
  0xe1   : > { %p6191_p5 = scmp.ne.s32.totalorder %s7087_s8, %s6190_s24  ;;  %p6199_p7 = scmp.lt.s32.totalorder %s6190_s24, %s6190_s24 }
  0xe3   : > { %p6193_p6 = pnand %p6191_p5, %p7033_p0  ;;  %p6200_p8 = por %p6199_p7, %p6198_p10 }
  0xe5   : > { %p6194_p9 = pneg %p6193_p6 }
  0xe7   : > { %p6201_p11 = pnand %p6200_p8, %p6194_p9 }
  0xe9   : > { %6204 = shalt.err (!%p6201_p11)
}
  0xea   : > { %5830 = dma.hbm_to_vmem [thread:$0]  (!%p7021_p12), %s7813_s4, 32, %s7087_s8, [#allocation21], %s6747_s23, %s6747_s23, %s6748_s15  }
  0xeb   : > { %s6751_s11 = smov [#allocation23]   ;;  %s6752_s16 = smov [#allocation26]  }
  0xec   : > { %s1105_s28 = sshll.u32 %s6751_s11, 4  ;;  %s1135_s18 = sshll.u32 %s6752_s16, 4  ;;  %s1106_s28 = int_to_ptr.vmem [resolvable:$true] %s1105_s28  ;;  %s7120_s18 = int_to_ptr.vmem [resolvable:$true] %s1135_s18 }
  0xed   : > { %s6205_s12 = scalar_lea.hbm %s6917_s20, 32 }
  0xee   : > { %p6206_p13 = scmp.ne.s32.totalorder %s6917_s20, %s6205_s12  ;;  %p6212_p3 = scmp.lt.u32.totalorder %s6205_s12, %s6917_s20 }
  0xf0   : > { %p6208_p1 = pnand %p6206_p13, %p7033_p0 }
  0xf2   : > { %p6209_p2 = pneg %p6208_p1 }
  0xf4   : > { %p6214_p4 = pnand %p6212_p3, %p6209_p2 }
  0xf6   : > { %6217 = shalt.err (!%p6214_p4)
}
  0xf7   : > { %s6218_s24 = scalar_lea.vmem %s1106_s28, 32  ;;  %p6226_p10 = scmp.lt.s32.totalorder %s1106_s28, %s1106_s28 }
  0xf8   : > { %p6219_p5 = scmp.ne.s32.totalorder %s1106_s28, %s6218_s24  ;;  %p6227_p7 = scmp.lt.s32.totalorder %s6218_s24, %s6218_s24 }
  0xfa   : > { %p6221_p6 = pnand %p6219_p5, %p7033_p0  ;;  %p6228_p8 = por %p6227_p7, %p6226_p10 }
  0xfc   : > { %p6222_p9 = pneg %p6221_p6 }
  0xfe   : > { %p6229_p11 = pnand %p6228_p8, %p6222_p9 }
 0x100   : > { %6232 = shalt.err (!%p6229_p11)
}
 0x101   : > { %5836 = dma.hbm_to_vmem [thread:$0]  (!%p7021_p12), %s6917_s20, 32, %s1106_s28, [#allocation24], %s6747_s23, %s6747_s23, %s6748_s15  }
 0x102   : > { %s6233_s8 = scalar_lea.hbm %s7812_s5, 16 }
 0x103   : > { %p6234_p13 = scmp.ne.s32.totalorder %s7812_s5, %s6233_s8  ;;  %p6240_p3 = scmp.lt.u32.totalorder %s6233_s8, %s7812_s5 }
 0x105   : > { %p6236_p1 = pnand %p6234_p13, %p7033_p0 }
 0x107   : > { %p6237_p2 = pneg %p6236_p1 }
 0x109   : > { %p6242_p4 = pnand %p6240_p3, %p6237_p2 }
 0x10b   : > { %6245 = shalt.err (!%p6242_p4)
}
 0x10c   : > { %s6246_s11 = scalar_lea.vmem %s7120_s18, 16  ;;  %s6253_s16 = scalar_lea.vmem %s7120_s18, 32 }
 0x10d   : > { %p6247_p5 = scmp.ne.s32.totalorder %s7120_s18, %s6246_s11  ;;  %p6254_p10 = scmp.lt.s32.totalorder %s7120_s18, %s7120_s18 }
 0x10e   : > { %p6255_p7 = scmp.lt.s32.totalorder %s6253_s16, %s6246_s11 }
 0x10f   : > { %p6249_p6 = pnand %p6247_p5, %p7033_p0 }
 0x110   : > { %p6256_p8 = por %p6255_p7, %p6254_p10 }
 0x111   : > { %p6250_p9 = pneg %p6249_p6 }
 0x113   : > { %p6257_p11 = pnand %p6256_p8, %p6250_p9 }
 0x115   : > { %6260 = shalt.err (!%p6257_p11)
}
 0x116   : > { %5842 = dma.hbm_to_vmem [thread:$0]  (!%p7021_p12), %s7812_s5, 16, %s7120_s18, [#allocation27]  }
 0x117   : > { %s6753_s28 = smov [#allocation29]   ;;  %s6754_s24 = smov [#allocation2]  }
 0x118   : > { %s1159_s12 = sshll.u32 %s6753_s28, 4  ;;  %s925_s8 = sshll.u32 %s6754_s24, 4  ;;  %s1160_s12 = int_to_ptr.vmem [resolvable:$true] %s1159_s12  ;;  %s7151_s8 = int_to_ptr.vmem [resolvable:$true] %s925_s8 }
 0x119   : > { %s6261_s11 = scalar_lea.hbm %s6942_s21, 16 }
 0x11a   : > { %p6262_p13 = scmp.ne.s32.totalorder %s6942_s21, %s6261_s11  ;;  %p6268_p3 = scmp.lt.u32.totalorder %s6261_s11, %s6942_s21 }
 0x11c   : > { %p6264_p1 = pnand %p6262_p13, %p7033_p0 }
 0x11e   : > { %p6265_p2 = pneg %p6264_p1 }
 0x120   : > { %p6270_p4 = pnand %p6268_p3, %p6265_p2 }
 0x122   : > { %6273 = shalt.err (!%p6270_p4)
}
 0x123   : > { %s6274_s16 = scalar_lea.vmem %s1160_s12, 16  ;;  %s6281_s18 = scalar_lea.vmem %s1160_s12, 32 }
 0x124   : > { %p6275_p5 = scmp.ne.s32.totalorder %s1160_s12, %s6274_s16  ;;  %p6282_p10 = scmp.lt.s32.totalorder %s1160_s12, %s1160_s12 }
 0x125   : > { %p6283_p7 = scmp.lt.s32.totalorder %s6281_s18, %s6274_s16 }
 0x126   : > { %p6277_p6 = pnand %p6275_p5, %p7033_p0 }
 0x127   : > { %p6284_p8 = por %p6283_p7, %p6282_p10 }
 0x128   : > { %p6278_p9 = pneg %p6277_p6 }
 0x12a   : > { %p6285_p11 = pnand %p6284_p8, %p6278_p9 }
 0x12c   : > { %6288 = shalt.err (!%p6285_p11)
}
 0x12d   : > { %5848 = dma.hbm_to_vmem [thread:$0]  (!%p7021_p12), %s6942_s21, 16, %s1160_s12, [#allocation30]  }
 0x12e   : > { %s6289_s28 = scalar_lea.hbm %s6812_s29, 16 }
 0x12f   : > { %p6290_p13 = scmp.ne.s32.totalorder %s6812_s29, %s6289_s28  ;;  %p6296_p3 = scmp.lt.u32.totalorder %s6289_s28, %s6812_s29 }
 0x131   : > { %p6292_p1 = pnand %p6290_p13, %p7033_p0 }
 0x133   : > { %p6293_p2 = pneg %p6292_p1 }
 0x135   : > { %p6298_p4 = pnand %p6296_p3, %p6293_p2 }
 0x137   : > { %6301 = shalt.err (!%p6298_p4)
}
 0x138   : > { %s6302_s24 = scalar_lea.vmem %s7151_s8, 16  ;;  %s6309_s11 = scalar_lea.vmem %s7151_s8, 32 }
 0x139   : > { %p6303_p5 = scmp.ne.s32.totalorder %s7151_s8, %s6302_s24  ;;  %p6310_p10 = scmp.lt.s32.totalorder %s7151_s8, %s7151_s8 }
 0x13a   : > { %p6311_p7 = scmp.lt.s32.totalorder %s6309_s11, %s6302_s24 }
 0x13b   : > { %p6305_p6 = pnand %p6303_p5, %p7033_p0 }
 0x13c   : > { %p6312_p8 = por %p6311_p7, %p6310_p10 }
 0x13d   : > { %p6306_p9 = pneg %p6305_p6 }
 0x13f   : > { %p6313_p11 = pnand %p6312_p8, %p6306_p9 }
 0x141   : > { %6316 = shalt.err (!%p6313_p11)
}
 0x142   : > { %5797 = dma.hbm_to_vmem [thread:$0]  (!%p7021_p12), %s6812_s29, 16, %s7151_s8, [#allocation3]  }
 0x143   : > { %s6755_s12 = smov [#allocation7]   ;;  %s6756_s18 = smov [#allocation10]  }
 0x144   : > { %s953_s16 = sshll.u32 %s6755_s12, 4  ;;  %s977_s28 = sshll.u32 %s6756_s18, 4  ;;  %s954_s16 = int_to_ptr.vmem [resolvable:$true] %s953_s16  ;;  %s7179_s28 = int_to_ptr.vmem [resolvable:$true] %s977_s28 }
 0x145   : > { %s6317_s24 = scalar_lea.hbm %s6832_s19, 16 }
 0x146   : > { %p6318_p13 = scmp.ne.s32.totalorder %s6832_s19, %s6317_s24  ;;  %p6324_p3 = scmp.lt.u32.totalorder %s6317_s24, %s6832_s19 }
 0x148   : > { %p6320_p1 = pnand %p6318_p13, %p7033_p0 }
 0x14a   : > { %p6321_p2 = pneg %p6320_p1 }
 0x14c   : > { %p6326_p4 = pnand %p6324_p3, %p6321_p2 }
 0x14e   : > { %6329 = shalt.err (!%p6326_p4)
}
 0x14f   : > { %s6330_s11 = scalar_lea.vmem %s954_s16, 16  ;;  %s6337_s8 = scalar_lea.vmem %s954_s16, 32 }
 0x150   : > { %p6331_p5 = scmp.ne.s32.totalorder %s954_s16, %s6330_s11  ;;  %p6338_p10 = scmp.lt.s32.totalorder %s954_s16, %s954_s16 }
 0x151   : > { %p6339_p7 = scmp.lt.s32.totalorder %s6337_s8, %s6330_s11 }
 0x152   : > { %p6333_p6 = pnand %p6331_p5, %p7033_p0 }
 0x153   : > { %p6340_p8 = por %p6339_p7, %p6338_p10 }
 0x154   : > { %p6334_p9 = pneg %p6333_p6 }
 0x156   : > { %p6341_p11 = pnand %p6340_p8, %p6334_p9 }
 0x158   : > { %6344 = shalt.err (!%p6341_p11)
}
 0x159   : > { %5803 = dma.hbm_to_vmem [thread:$0]  (!%p7021_p12), %s6832_s19, 16, %s954_s16, [#allocation6]  }
 0x15a   : > { %s6345_s12 = scalar_lea.hbm %s6842_s30, 16 }
 0x15b   : > { %p6346_p13 = scmp.ne.s32.totalorder %s6842_s30, %s6345_s12  ;;  %p6352_p3 = scmp.lt.u32.totalorder %s6345_s12, %s6842_s30 }
 0x15d   : > { %p6348_p1 = pnand %p6346_p13, %p7033_p0 }
 0x15f   : > { %p6349_p2 = pneg %p6348_p1 }
 0x161   : > { %p6354_p4 = pnand %p6352_p3, %p6349_p2 }
 0x163   : > { %6357 = shalt.err (!%p6354_p4)
}
 0x164   : > { %s6358_s18 = scalar_lea.vmem %s7179_s28, 16  ;;  %s6365_s24 = scalar_lea.vmem %s7179_s28, 32 }
 0x165   : > { %p6359_p5 = scmp.ne.s32.totalorder %s7179_s28, %s6358_s18  ;;  %p6366_p10 = scmp.lt.s32.totalorder %s7179_s28, %s7179_s28 }
 0x166   : > { %p6367_p7 = scmp.lt.s32.totalorder %s6365_s24, %s6358_s18 }
 0x167   : > { %p6361_p6 = pnand %p6359_p5, %p7033_p0 }
 0x168   : > { %p6368_p8 = por %p6367_p7, %p6366_p10 }
 0x169   : > { %p6362_p9 = pneg %p6361_p6 }
 0x16b   : > { %p6369_p11 = pnand %p6368_p8, %p6362_p9 }
 0x16d   : > { %6372 = shalt.err (!%p6369_p11)
}
 0x16e   : > { %5809 = dma.hbm_to_vmem [thread:$0]  (!%p7021_p12), %s6842_s30, 16, %s7179_s28, [#allocation9]  }
 0x16f   : > { %s6757_s16 = smov [#allocation13]   ;;  %s6758_s8 = smov [#allocation16]  }
 0x170   : > { %s1005_s11 = sshll.u32 %s6757_s16, 4  ;;  %s1034_s12 = sshll.u32 %s6758_s8, 4  ;;  %s1006_s11 = int_to_ptr.vmem [resolvable:$true] %s1005_s11  ;;  %s7207_s12 = int_to_ptr.vmem [resolvable:$true] %s1034_s12 }
 0x171   : > { %s6373_s18 = scalar_lea.hbm %s6862_s27, 16 }
 0x172   : > { %p6374_p13 = scmp.ne.s32.totalorder %s6862_s27, %s6373_s18  ;;  %p6380_p3 = scmp.lt.u32.totalorder %s6373_s18, %s6862_s27 }
 0x174   : > { %p6376_p1 = pnand %p6374_p13, %p7033_p0 }
 0x176   : > { %p6377_p2 = pneg %p6376_p1 }
 0x178   : > { %p6382_p4 = pnand %p6380_p3, %p6377_p2 }
 0x17a   : > { %6385 = shalt.err (!%p6382_p4)
}
 0x17b   : > { %s6386_s24 = scalar_lea.vmem %s1006_s11, 16  ;;  %s6393_s28 = scalar_lea.vmem %s1006_s11, 32 }
 0x17c   : > { %p6387_p5 = scmp.ne.s32.totalorder %s1006_s11, %s6386_s24  ;;  %p6394_p10 = scmp.lt.s32.totalorder %s1006_s11, %s1006_s11 }
 0x17d   : > { %p6395_p7 = scmp.lt.s32.totalorder %s6393_s28, %s6386_s24 }
 0x17e   : > { %p6389_p6 = pnand %p6387_p5, %p7033_p0 }
 0x17f   : > { %p6396_p8 = por %p6395_p7, %p6394_p10 }
 0x180   : > { %p6390_p9 = pneg %p6389_p6 }
 0x182   : > { %p6397_p11 = pnand %p6396_p8, %p6390_p9 }
 0x184   : > { %6400 = shalt.err (!%p6397_p11)
}
 0x185   : > { %5815 = dma.hbm_to_vmem [thread:$0]  (!%p7021_p12), %s6862_s27, 16, %s1006_s11, [#allocation12]  }
 0x186   : > { %s6401_s16 = scalar_lea.hbm %s7811_s6, 32 }
 0x187   : > { %p6402_p13 = scmp.ne.s32.totalorder %s7811_s6, %s6401_s16  ;;  %p6408_p3 = scmp.lt.u32.totalorder %s6401_s16, %s7811_s6 }
 0x189   : > { %p6404_p1 = pnand %p6402_p13, %p7033_p0 }
 0x18b   : > { %p6405_p2 = pneg %p6404_p1 }
 0x18d   : > { %p6410_p4 = pnand %p6408_p3, %p6405_p2 }
 0x18f   : > { %6413 = shalt.err (!%p6410_p4)
}
 0x190   : > { %s6414_s8 = scalar_lea.vmem %s7207_s12, 32  ;;  %p6422_p10 = scmp.lt.s32.totalorder %s7207_s12, %s7207_s12 }
 0x191   : > { %p6415_p5 = scmp.ne.s32.totalorder %s7207_s12, %s6414_s8  ;;  %p6423_p7 = scmp.lt.s32.totalorder %s6414_s8, %s6414_s8 }
 0x193   : > { %p6417_p6 = pnand %p6415_p5, %p7033_p0  ;;  %p6424_p8 = por %p6423_p7, %p6422_p10 }
 0x195   : > { %p6418_p9 = pneg %p6417_p6 }
 0x197   : > { %p6425_p11 = pnand %p6424_p8, %p6418_p9 }
 0x199   : > { %6428 = shalt.err (!%p6425_p11)
}
 0x19a   : > { %s7827_s11 = sld [smem:[#allocation65_spill]]  ;;  %s6759_s18 = smov [#allocation19]  }
 0x19b   : > { %5821 = dma.hbm_to_vmem [thread:$0]  (!%p7021_p12), %s7811_s6, 32, %s7207_s12, [#allocation15], %s6747_s23, %s6747_s23, %s6748_s15  }
 0x19c   : > { %s1066_s24 = sshll.u32 %s6759_s18, 4  ;;  %s6760_s28 = smov [#allocation22]   ;;  %s1067_s24 = int_to_ptr.vmem [resolvable:$true] %s1066_s24 }
 0x19d   : > { %s1092_s16 = sshll.u32 %s6760_s28, 4  ;;  %s7237_s16 = int_to_ptr.vmem [resolvable:$true] %s1092_s16 }
 0x1a0   : > { %s6429_s8 = scalar_lea.hbm %s7827_s11, 32 }
 0x1a1   : > { %p6430_p13 = scmp.ne.s32.totalorder %s7827_s11, %s6429_s8  ;;  %p6436_p3 = scmp.lt.u32.totalorder %s6429_s8, %s7827_s11 }
 0x1a3   : > { %p6432_p1 = pnand %p6430_p13, %p7033_p0 }
 0x1a5   : > { %p6433_p2 = pneg %p6432_p1 }
 0x1a7   : > { %p6438_p4 = pnand %p6436_p3, %p6433_p2 }
 0x1a9   : > { %6441 = shalt.err (!%p6438_p4)
}
 0x1aa   : > { %s6442_s4 = scalar_lea.vmem %s1067_s24, 32  ;;  %p6450_p10 = scmp.lt.s32.totalorder %s1067_s24, %s1067_s24 }
 0x1ab   : > { %p6443_p5 = scmp.ne.s32.totalorder %s1067_s24, %s6442_s4  ;;  %p6451_p7 = scmp.lt.s32.totalorder %s6442_s4, %s6442_s4 }
 0x1ad   : > { %p6445_p6 = pnand %p6443_p5, %p7033_p0  ;;  %p6452_p8 = por %p6451_p7, %p6450_p10 }
 0x1af   : > { %p6446_p9 = pneg %p6445_p6 }
 0x1b1   : > { %p6453_p11 = pnand %p6452_p8, %p6446_p9 }
 0x1b3   : > { %6456 = shalt.err (!%p6453_p11)
}
 0x1b4   : > { %s7828_s12 = sld [smem:[#allocation67_spill]] }
 0x1b5   : > { %5827 = dma.hbm_to_vmem [thread:$0]  (!%p7021_p12), %s7827_s11, 32, %s1067_s24, [#allocation18], %s6747_s23, %s6747_s23, %s6748_s15  }
 0x1ba   : > { %s6457_s18 = scalar_lea.hbm %s7828_s12, 32 }
 0x1bb   : > { %p6458_p13 = scmp.ne.s32.totalorder %s7828_s12, %s6457_s18  ;;  %p6464_p3 = scmp.lt.u32.totalorder %s6457_s18, %s7828_s12 }
 0x1bd   : > { %p6460_p1 = pnand %p6458_p13, %p7033_p0 }
 0x1bf   : > { %p6461_p2 = pneg %p6460_p1 }
 0x1c1   : > { %p6466_p4 = pnand %p6464_p3, %p6461_p2 }
 0x1c3   : > { %6469 = shalt.err (!%p6466_p4)
}
 0x1c4   : > { %s6470_s4 = scalar_lea.vmem %s7237_s16, 32  ;;  %p6478_p10 = scmp.lt.s32.totalorder %s7237_s16, %s7237_s16 }
 0x1c5   : > { %p6471_p5 = scmp.ne.s32.totalorder %s7237_s16, %s6470_s4  ;;  %p6479_p7 = scmp.lt.s32.totalorder %s6470_s4, %s6470_s4 }
 0x1c7   : > { %p6473_p6 = pnand %p6471_p5, %p7033_p0  ;;  %p6480_p8 = por %p6479_p7, %p6478_p10 }
 0x1c9   : > { %p6474_p9 = pneg %p6473_p6 }
 0x1cb   : > { %p6481_p11 = pnand %p6480_p8, %p6474_p9 }
 0x1cd   : > { %6484 = shalt.err (!%p6481_p11)
}
 0x1ce   : > { %s7829_s24 = sld [smem:[#allocation68_spill]]  ;;  %s6761_s28 = smov [#allocation25]  }
 0x1cf   : > { %5833 = dma.hbm_to_vmem [thread:$0]  (!%p7021_p12), %s7828_s12, 32, %s7237_s16, [#allocation21], %s6747_s23, %s6747_s23, %s6748_s15  }
 0x1d0   : > { %s1118_s8 = sshll.u32 %s6761_s28, 4  ;;  %s6762_s18 = smov [#allocation28]   ;;  %s1119_s8 = int_to_ptr.vmem [resolvable:$true] %s1118_s8 }
 0x1d1   : > { %s1145_s5 = sshll.u32 %s6762_s18, 4  ;;  %s7270_s5 = int_to_ptr.vmem [resolvable:$true] %s1145_s5 }
 0x1d4   : > { %s6485_s4 = scalar_lea.hbm %s7829_s24, 32 }
 0x1d5   : > { %p6486_p13 = scmp.ne.s32.totalorder %s7829_s24, %s6485_s4  ;;  %p6492_p3 = scmp.lt.u32.totalorder %s6485_s4, %s7829_s24 }
 0x1d7   : > { %p6488_p1 = pnand %p6486_p13, %p7033_p0 }
 0x1d9   : > { %p6489_p2 = pneg %p6488_p1 }
 0x1db   : > { %p6494_p4 = pnand %p6492_p3, %p6489_p2 }
 0x1dd   : > { %6497 = shalt.err (!%p6494_p4)
}
 0x1de   : > { %s6498_s6 = scalar_lea.vmem %s1119_s8, 32  ;;  %p6506_p10 = scmp.lt.s32.totalorder %s1119_s8, %s1119_s8 }
 0x1df   : > { %p6499_p5 = scmp.ne.s32.totalorder %s1119_s8, %s6498_s6  ;;  %p6507_p7 = scmp.lt.s32.totalorder %s6498_s6, %s6498_s6 }
 0x1e1   : > { %p6501_p6 = pnand %p6499_p5, %p7033_p0  ;;  %p6508_p8 = por %p6507_p7, %p6506_p10 }
 0x1e3   : > { %p6502_p9 = pneg %p6501_p6 }
 0x1e5   : > { %p6509_p11 = pnand %p6508_p8, %p6502_p9 }
 0x1e7   : > { %6512 = shalt.err (!%p6509_p11)
}
 0x1e8   : > { %s7830_s16 = sld [smem:[#allocation71_spill]] }
 0x1e9   : > { %5839 = dma.hbm_to_vmem [thread:$0]  (!%p7021_p12), %s7829_s24, 32, %s1119_s8, [#allocation24], %s6747_s23, %s6747_s23, %s6748_s15  }
 0x1ee   : > { %s6513_s28 = scalar_lea.hbm %s7830_s16, 512 }
 0x1ef   : > { %p6514_p13 = scmp.ne.s32.totalorder %s7830_s16, %s6513_s28  ;;  %p6520_p3 = scmp.lt.u32.totalorder %s6513_s28, %s7830_s16 }
 0x1f1   : > { %p6516_p1 = pnand %p6514_p13, %p7033_p0 }
 0x1f3   : > { %p6517_p2 = pneg %p6516_p1 }
 0x1f5   : > { %p6522_p4 = pnand %p6520_p3, %p6517_p2 }
 0x1f7   : > { %6525 = shalt.err (!%p6522_p4)
}
 0x1f8   : > { %s6526_s6 = scalar_lea.vmem %s7270_s5, 512  ;;  %p6534_p10 = scmp.lt.s32.totalorder %s7270_s5, %s7270_s5 }
 0x1f9   : > { %p6527_p5 = scmp.ne.s32.totalorder %s7270_s5, %s6526_s6  ;;  %p6535_p7 = scmp.lt.s32.totalorder %s6526_s6, %s6526_s6 }
 0x1fb   : > { %p6529_p6 = pnand %p6527_p5, %p7033_p0  ;;  %p6536_p8 = por %p6535_p7, %p6534_p10 }
 0x1fd   : > { %p6530_p9 = pneg %p6529_p6 }
 0x1ff   : > { %p6537_p11 = pnand %p6536_p8, %p6530_p9 }
 0x201   : > { %6540 = shalt.err (!%p6537_p11)
}
 0x202   : > { %s7831_s23 = smov 8   ;;  %s7832_s15 = smov 128  }
 0x203   : > { %5845 = dma.hbm_to_vmem [thread:$0]  (!%p7021_p12), %s7830_s16, 512, %s7270_s5, [#allocation27], %s7832_s15, %s7832_s15, %s7831_s23  }
 0x204   : > { %s6763_s8 = smov [#allocation31]   ;;  %s6541_s4 = scalar_lea.hbm %s7810_s9, 16 }
 0x205   : > { %s1173_s18 = sshll.u32 %s6763_s8, 4  ;;  %p6542_p13 = scmp.ne.s32.totalorder %s7810_s9, %s6541_s4  ;;  %s1174_s18 = int_to_ptr.vmem [resolvable:$true] %s1173_s18 }
 0x206   : > { %p6548_p3 = scmp.lt.u32.totalorder %s6541_s4, %s7810_s9 }
 0x207   : > { %p6544_p1 = pnand %p6542_p13, %p7033_p0 }
 0x209   : > { %p6545_p2 = pneg %p6544_p1 }
 0x20b   : > { %p6550_p4 = pnand %p6548_p3, %p6545_p2 }
 0x20d   : > { %6553 = shalt.err (!%p6550_p4)
}
 0x20e   : > { %s6554_s28 = scalar_lea.vmem %s1174_s18, 16  ;;  %s6561_s6 = scalar_lea.vmem %s1174_s18, 32 }
 0x20f   : > { %p6555_p5 = scmp.ne.s32.totalorder %s1174_s18, %s6554_s28  ;;  %p6562_p10 = scmp.lt.s32.totalorder %s1174_s18, %s1174_s18 }
 0x210   : > { %p6563_p7 = scmp.lt.s32.totalorder %s6561_s6, %s6554_s28 }
 0x211   : > { %p6557_p6 = pnand %p6555_p5, %p7033_p0 }
 0x212   : > { %p6564_p8 = por %p6563_p7, %p6562_p10 }
 0x213   : > { %p6558_p9 = pneg %p6557_p6 }
 0x215   : > { %p6565_p11 = pnand %p6564_p8, %p6558_p9 }
 0x217   : > { %6568 = shalt.err (!%p6565_p11)
}
 0x218   : > { %5851 = dma.hbm_to_vmem [thread:$0]  (!%p7021_p12), %s7810_s9, 16, %s1174_s18, [#allocation30]  }
 0x219   : > { %p7833_p13 = scmp.ne.s32.totalorder %s7824_s26, 0 }
 0x21a   : > { %p7834_p1 = scmp.eq.s32.totalorder (!%p7833_p13), %s6985_s7, 0 }
 0x21b   : > { %1193 = sbr.rel (%p7833_p13) target bundleno = 9698 (0x25e2), region = 160 }
 0x222   : > { %6642 = dma.done.wait (%p7834_p1), [#allocation3], 16   ;;  %p7835_p2 = pmov %p7834_p1 }
 0x223   : > { %p7836_p0 = pmov %p7834_p1 }
 0x224   : > { %6644 = vsyncadd (%p7835_p2), [#allocation3], 4294967280 }
 0x225   : > { %6646 = dma.done.wait (%p7836_p0), [#allocation6], 32   ;;  %p7837_p3 = pmov %p7836_p0 }
 0x226   : > { %p7838_p4 = pmov %p7836_p0 }
 0x227   : > { %6648 = vsyncadd (%p7837_p3), [#allocation6], 4294967264 }
 0x228   : > { %6650 = dma.done.wait (%p7838_p4), [#allocation9], 528   ;;  %p7839_p12 = pmov %p7836_p0 }
 0x229   : > { %p7840_p5 = pmov %p7836_p0 }
 0x22a   : > { %6652 = vsyncadd (%p7839_p12), [#allocation9], 4294966768 }
 0x22b   : > { %6654 = dma.done.wait (%p7840_p5), [#allocation12], 32   ;;  %p7841_p6 = pmov %p7836_p0 }
 0x22c   : > { %p7842_p9 = pmov %p7836_p0 }
 0x22d   : > { %6656 = vsyncadd (%p7841_p6), [#allocation12], 4294967264 }
 0x22e   : > { %6658 = dma.done.wait (%p7842_p9), [#allocation15], 64   ;;  %p7843_p10 = pmov %p7836_p0 }
 0x22f   : > { %p7844_p7 = pmov %p7836_p0 }
 0x230   : > { %6660 = vsyncadd (%p7843_p10), [#allocation15], 4294967232 }
 0x231   : > { %6662 = dma.done.wait (%p7844_p7), [#allocation18], 64   ;;  %p7845_p8 = pmov %p7836_p0 }
 0x232   : > { %p7846_p11 = pmov %p7836_p0 }
 0x233   : > { %6664 = vsyncadd (%p7845_p8), [#allocation18], 4294967232 }
 0x234   : > { %6666 = dma.done.wait (%p7846_p11), [#allocation21], 64   ;;  %p7847_p13 = pmov %p7836_p0 }
 0x235   : > { %p7848_p1 = pmov %p7836_p0 }
 0x236   : > { %6668 = vsyncadd (%p7847_p13), [#allocation21], 4294967232 }
 0x237   : > { %6670 = dma.done.wait (%p7848_p1), [#allocation24], 64   ;;  %p7849_p2 = pmov %p7836_p0 }
 0x239   : > { %6672 = vsyncadd (%p7849_p2), [#allocation24], 4294967232 }
 0x23a   : > { %6674 = dma.done.wait (%p7836_p0), [#allocation27], 528   ;;  %p7850_p3 = pmov %p7836_p0 }
 0x23b   : > { %p7851_p4 = pmov %p7836_p0 }
 0x23c   : > { %6676 = vsyncadd (%p7850_p3), [#allocation27], 4294966768 }
 0x23d   : > { %6678 = dma.done.wait (%p7851_p4), [#allocation30], 32   ;;  %p7852_p12 = pmov %p7836_p0 }
 0x23e   : > { %s7853_s5 = sld [smem:[#allocation50_spill]]  ;;  %s7854_s0 = sld [smem:[#allocation47_spill]]  ;;  %v6764_v0 = vmov 0.0|0.0   ;;  %vm6765_vm0 = vmmov 0   ;;  %v6766_v1 = vmov 0.0   ;;  %vm1372_vm1 = vcmask 130048  }
 0x23f   : > { %6680 = vsyncadd (%p7852_p12), [#allocation30], 4294967264  ;;  %s7855_s26 = sld [smem:[#allocation52_spill]]  ;;  %p1358_p5 = scmp.lt.s32.totalorder %s6985_s7, 1  ;;  %5585 = vmatprep.subr.bf16.mxu0 %v6764_v0  ;;  %5271 = vmatprep.mubr.msk.f32.mxu0 %vm6765_vm0, %v6766_v1  ;;  %vm1464_vm2 = vcmask 261120   ;;  %vm1617_vm3 = vcmask 64512  }
 0x240   : > { %5594 = vmatprep.subr.bf16.mxu1 %v6764_v0  ;;  %5309 = vmatprep.mubr.msk.f32.mxu1 %vm6765_vm0, %v6766_v1  ;;  %s7856_s8 = sld [smem:[#allocation51_spill]]  ;;  %s7857_s18 = sld [smem:[#allocation48_spill]]  ;;  %v5037_v18 = vld [vmem:[#allocation2] ss:$0 sm:$0xff]  ;;  %vm2696_vm4 = vcmask 523264  }
 0x241   : > { %s1359_s10 = scalar_select %p1358_p5, %s6985_s7, 1 }
 0x242   : > { %s7769_s4 = smov 64   ;;  %s7773_s28 = smov 96  }
 0x243   : > { %s5034_s23 = sshll.u32 %s1359_s10, 3  ;;  %s7772_s6 = smov 80  }
 0x244   : > { %v1363_v2 = vld [vmem:[%s7853_s5] sm:$0xff]  ;;  %v1364_v3 = vld [vmem:[%s7853_s5 + $0x8] sm:$0xff]  ;;  %s1361_s15 = scalar_lea.vmem %s7854_s0, %s5034_s23  ;;  %s7771_s0 = smov 112  }
 0x245   : > { %v5586_v4 = vpack.c.bf16 %v1364_v3, %v1363_v2  ;;  %v1448_v5 = vld [vmem:[%s7855_s26] sm:$0xff]  ;;  %v1449_v6 = vld [vmem:[%s7855_s26 + $0x8] sm:$0xff]  ;;  %v1450_v9 = vld [vmem:[%s7855_s26 + $0x10] sm:$0xff]  ;;  %s7858_s10 = sld [smem:[#allocation53_spill]]  ;;  %s7767_s23 = smov 48  }
 0x246   : > { %v1362_v7 = vld [vmem:[%s1361_s15] sm:$0xff]  ;;  %v5589_v8 = vpack.c.bf16 %v1449_v6, %v1448_v5  ;;  %v1451_v10 = vld [vmem:[%s7855_s26 + $0x18] sm:$0xff]  ;;  %s7859_s15 = sld [smem:[#allocation55_spill]]  ;;  %s7872_s9 = smov 96  }
 0x247   : > { %5587 = vmatpush3.bf16.msra.mxu0 %v5586_v4  ;;  %v5592_v11 = vpack.c.bf16 %v1451_v10, %v1450_v9  ;;  %v5035_v12 = vld [vmem:[%s7856_s8] ss:$0 sm:$0xff]  ;;  %v5047_v6 = vld [vmem:[#allocation5] ss:$0 sm:$0xff]  ;;  %s7860_s8 = sld [smem:[#allocation57_spill]]  ;;  %p7875_p9 = scmp.ne.s32.totalorder %s7821_s22, 0 }
 0x248   : > { %5588 = vmatprep.subr.bf16.mxu0 %v6764_v0  ;;  %v1446_v14 = vld [vmem:[%s7857_s18] sm:$0xff]  ;;  %s7861_s18 = sld [smem:[#allocation59_spill]] }
 0x24a   : > { %5272 = vmatmul.mubr.msk.f32.vlgmr.msra.gmra.mrb[0].mxu0 %vm1372_vm1, %v1362_v7 }
 0x24b   : > { %5590 = vmatpush3.bf16.msra.mxu0 %v5589_v8  ;;  %5282 = vmatprep.mubr.msk.f32.mxu0 %vm6765_vm0, %v6766_v1  ;;  %v1455_v48 = vld [vmem:[%s7858_s10 + $0x10] sm:$0xff]  ;;  %v1456_v49 = vld [vmem:[%s7858_s10 + $0x18] sm:$0xff]  ;;  %v1453_v53 = vld [vmem:[%s7858_s10] sm:$0xff] }
 0x24c   : > { %5591 = vmatprep.subr.bf16.mxu0 %v6764_v0  ;;  %v5595_v50 = vpack.c.bf16 %v1456_v49, %v1455_v48  ;;  %v1454_v54 = vld [vmem:[%s7858_s10 + $0x8] sm:$0xff]  ;;  %v2023_v58 = vld [vmem:[%s7859_s15] sm:$0xff]  ;;  %v2025_v3 = vld [vmem:[%s7859_s15 + $0x10] sm:$0xff]  ;;  %s7873_s10 = smov 112  }
 0x24d   : > { %v5598_v56 = vpack.c.bf16 %v1454_v54, %v1453_v53  ;;  %v2024_v59 = vld [vmem:[%s7859_s15 + $0x8] sm:$0xff]  ;;  %v2026_v4 = vld [vmem:[%s7859_s15 + $0x18] sm:$0xff]  ;;  %v2596_v53 = vld [vmem:[%s7860_s8] sm:$0xff] }
 0x24e   : > { %5596 = vmatpush3.bf16.msra.mxu1 %v5595_v50  ;;  %v5601_v60 = vpack.c.bf16 %v2024_v59, %v2023_v58  ;;  %v5604_v5 = vpack.c.bf16 %v2026_v4, %v2025_v3  ;;  %v2597_v54 = vld [vmem:[%s7860_s8 + $0x8] sm:$0xff]  ;;  %v2681_v59 = vld [vmem:[%s7861_s18] sm:$0xff] }
 0x24f   : > { %5593 = vmatpush3.bf16.msra.mxu0 %v5592_v11  ;;  %5600 = vmatprep.subr.bf16.mxu1 %v6764_v0  ;;  %v5048_v11 = vld [vmem:[#allocation7] ss:$0 sm:$0xff]  ;;  %v2686_v4 = vld [vmem:[%s7861_s18 + $0x28] sm:$0xff] }
 0x250   : > { %5285 = vmatprep.subr.mxu0 %v6766_v1  ;;  %v2685_v3 = vld [vmem:[%s7861_s18 + $0x20] sm:$0xff] }
 0x31d   : > { %v1442_v13 = vpop.f32.mrb[0].mxu0 }
 0x31e   : > { %v1443_v15 = vadd.f32 %v5035_v12, %v1442_v13  ;;  %v5273_v16 = vpop.f32.mrb[1].mxu0 }
 0x320   : > { %v1447_v17 = vadd.f32 %v1446_v14, %v1443_v15 }
 0x322   : > { %5283 = vmatmul.mubr.msk.f32.vlgmr.msra.gmra.mrb[2].mxu0 %vm1464_vm2, %v1447_v17 }
 0x323   : > { %5287 = vmatprep.mubr.msk.f32.mxu0 %vm6765_vm0, %v6766_v1 }
 0x3f5   : > { %v1534_v19 = vpop.f32.mrb[2].mxu0 }
 0x3f6   : > { %v1535_v20 = vadd.f32 %v5037_v18, %v1534_v19  ;;  %v5284_v21 = vpop.f32.mrb[3].mxu0 }
 0x3f8   : > { %1629 = vrot.lane.b32.xlu1 %v1535_v20, %s7769_s4  ;;  %1540 = vrot.lane.b32.xlu0 %v1535_v20, %s7773_s28  ;;  %v1538_v23 = vmul.f32 0.25, %v1535_v20 }
 0x3fc   : > { %1707 = vrot.lane.b32.xlu1 %v1535_v20, %s7772_s6 }
 0x46a   : > { %v1541_v22 = vpop.permute.xlu0 %1540  ;;  %v1630_v24 = vpop.permute.xlu1 %1629 }
 0x46b   : > { %5286 = vmatpush3.xpose.msk.msra.mxu0 %vm1372_vm1, %v1541_v22 }
 0x46c   : > { %5290 = vmatprep.subr.mxu0 %v6766_v1 }
 0x46e   : > { %5288 = vmatmul.mubr.msk.f32.vlgmr.msra.gmra.mrb[4].mxu0 %vm1372_vm1, %v1538_v23  ;;  %v1708_v33 = vpop.permute.xlu1 %1707 }
 0x46f   : > { %5291 = vmatpush3.msra.mxu0 %v1630_v24  ;;  %5292 = vmatprep.mubr.msk.f32.mxu0 %vm6765_vm0, %v6766_v1 }
 0x470   : > { %5295 = vmatprep.subr.mxu0 %v6766_v1 }
 0x541   : > { %v1613_v25 = vpop.f32.mrb[4].mxu0 }
 0x542   : > { %v5289_v26 = vpop.f32.mrb[5].mxu0  ;;  %v1618_v27 = vsel %vm1617_vm3, %v1613_v25, -inf }
 0x543   : > { %1619 = vmax.xlane.f32.xlu0 %v1618_v27 }
 0x5d0   : > { %v1620_v28 = vpop.xlane.xlu0 %1619 }
 0x5d1   : > { %v1621_v29 = vsub.f32 %v1613_v25, %v1620_v28 }
 0x5d3   : > { %v1622_v30 = vmul.f32 1.442695, %v1621_v29 }
 0x5d5   : > { %5997 = vpow2.f32 %v1622_v30 }
 0x5df   : > { %v5998_v31 = vpop.eup %5997 }
 0x5e0   : > { %v1624_v32 = vsel %vm1617_vm3, %v5998_v31, 0.0 }
 0x5e1   : > { %1625 = vadd.xlane.f32.xlu1 %v1624_v32 }
 0x5f2   : > { %1705 = vrot.lane.b32.xlu1 %v1538_v23, %s7771_s0 }
 0x66e   : > { %v1626_v34 = vpop.xlane.xlu1 %1625 }
 0x66f   : > { %5999 = vrcp.f32 %v1626_v34 }
 0x672   : > { %v1706_v37 = vpop.permute.xlu1 %1705 }
 0x679   : > { %v6000_v35 = vpop.eup %5999 }
 0x67a   : > { %v1628_v36 = vmul.f32 %v6000_v35, %v5998_v31 }
 0x67c   : > { %5293 = vmatmul.mubr.msk.f32.vlgmr.msra.gmra.mrb[6].mxu0 %vm1617_vm3, %v1628_v36 }
 0x67d   : > { %5296 = vmatpush3.xpose.msk.msra.mxu0 %vm1372_vm1, %v1708_v33  ;;  %5297 = vmatprep.mubr.msk.f32.mxu0 %vm6765_vm0, %v6766_v1 }
 0x67e   : > { %5300 = vmatprep.subr.mxu0 %v6766_v1 }
 0x680   : > { %5298 = vmatmul.mubr.msk.f32.vlgmr.msra.gmra.mrb[8].mxu0 %vm1372_vm1, %v1706_v37 }
 0x681   : > { %5302 = vmatprep.mubr.msk.f32.mxu0 %vm6765_vm0, %v6766_v1 }
 0x74f   : > { %v1701_v38 = vpop.f32.mrb[6].mxu0 }
 0x750   : > { %v5294_v39 = vpop.f32.mrb[7].mxu0 }
 0x753   : > { %v1779_v40 = vpop.f32.mrb[8].mxu0 }
 0x754   : > { %v5299_v41 = vpop.f32.mrb[9].mxu0  ;;  %v1783_v42 = vsel %vm1617_vm3, %v1779_v40, -inf }
 0x755   : > { %1784 = vmax.xlane.f32.xlu1 %v1783_v42  ;;  %v2029_v41 = vld [vmem:[#allocation8 + $0x8] sm:$0xff] }
 0x7e2   : > { %v1785_v43 = vpop.xlane.xlu1 %1784 }
 0x7e3   : > { %v1786_v44 = vsub.f32 %v1779_v40, %v1785_v43  ;;  %v2028_v40 = vld [vmem:[#allocation8] sm:$0xff] }
 0x7e5   : > { %v1787_v45 = vmul.f32 1.442695, %v1786_v44  ;;  %v5610_v44 = vpack.c.bf16 %v2029_v41, %v2028_v40 }
 0x7e7   : > { %6001 = vpow2.f32 %v1787_v45 }
 0x7f1   : > { %v6002_v46 = vpop.eup %6001 }
 0x7f2   : > { %v1789_v47 = vsel %vm1617_vm3, %v6002_v46, 0.0 }
 0x7f3   : > { %1790 = vadd.xlane.f32.xlu0 %v1789_v47  ;;  %v2031_v47 = vld [vmem:[#allocation8 + $0x18] sm:$0xff] }
 0x809   : > { %1794 = vrot.lane.b32.xlu0 %v1535_v20, %s7767_s23 }
 0x880   : > { %v1791_v51 = vpop.xlane.xlu0 %1790 }
 0x881   : > { %6003 = vrcp.f32 %v1791_v51 }
 0x884   : > { %v1795_v52 = vpop.permute.xlu0 %1794 }
 0x885   : > { %5301 = vmatpush3.msra.mxu0 %v1795_v52 }
 0x886   : > { %5597 = vmatprep.subr.bf16.mxu0 %v6764_v0 }
 0x88b   : > { %v6004_v55 = vpop.eup %6003 }
 0x88c   : > { %v1793_v57 = vmul.f32 %v6004_v55, %v6002_v46  ;;  %v2030_v46 = vld [vmem:[#allocation8 + $0x10] sm:$0xff]  ;;  %v5613_v55 = vpack.c.bf16 %v2597_v54, %v2596_v53 }
 0x88d   : > { %v5607_v48 = vpack.c.bf16 %v2031_v47, %v2030_v46 }
 0x88e   : > { %5303 = vmatmul.mubr.msk.f32.vlgmr.msra.gmra.mrb[10].mxu0 %vm1617_vm3, %v1793_v57  ;;  %v2599_v57 = vld [vmem:[%s7860_s8 + $0x18] sm:$0xff] }
 0x88f   : > { %5599 = vmatpush3.bf16.msra.mxu0 %v5598_v56  ;;  %5316 = vmatprep.mubr.msk.f32.mxu0 %vm6765_vm0, %v6766_v1  ;;  %v2598_v56 = vld [vmem:[%s7860_s8 + $0x10] sm:$0xff]  ;;  %s7870_s8 = sld [smem:[#allocation64_spill]] }
 0x890   : > { %5330 = vmatprep.subr.mxu0 %v6766_v1  ;;  %v5616_v58 = vpack.c.bf16 %v2599_v57, %v2598_v56 }
 0x892   : > { %5317 = vmatmul.mubr.msk.f32.vlgmr.msra.gmra.mrb[12].mxu0 %vm1372_vm1, %v1701_v38 }
 0x893   : > { %5332 = vmatprep.mubr.msk.f32.mxu0 %vm6765_vm0, %v6766_v1 }
 0x961   : > { %v1866_v61 = vpop.f32.mrb[10].mxu0 }
 0x962   : > { %v5304_v62 = vpop.f32.mrb[11].mxu0  ;;  %5310 = vmatmul.mubr.msk.f32.vlgmr.msra.gmra.mrb[0].mxu1 %vm1372_vm1, %v1866_v61  ;;  %v2683_v61 = vld [vmem:[%s7861_s18 + $0x10] sm:$0xff] }
 0x963   : > { %5602 = vmatpush3.bf16.msra.mxu1 %v5601_v60  ;;  %5327 = vmatprep.mubr.msk.f32.mxu1 %vm6765_vm0, %v6766_v1  ;;  %v2682_v60 = vld [vmem:[%s7861_s18 + $0x8] sm:$0xff] }
 0x964   : > { %5603 = vmatprep.subr.bf16.mxu1 %v6764_v0  ;;  %v5619_v62 = vpack.c.bf16 %v2682_v60, %v2681_v59 }
 0x965   : > { %v2012_v63 = vpop.f32.mrb[12].mxu0 }
 0x966   : > { %v5318_v2 = vpop.f32.mrb[13].mxu0 }
 0x967   : > { %5605 = vmatpush3.bf16.msra.mxu1 %v5604_v5  ;;  %v5625_v5 = vpack.c.bf16 %v2686_v4, %v2685_v3 }
 0x968   : > { %5340 = vmatprep.subr.mxu1 %v6766_v1 }
 0xa35   : > { %v1939_v7 = vpop.f32.mrb[0].mxu1 }
 0xa36   : > { %v2013_v8 = vadd.f32 %v2012_v63, %v1939_v7  ;;  %v5311_v9 = vpop.f32.mrb[1].mxu1  ;;  %v2684_v63 = vld [vmem:[%s7861_s18 + $0x18] sm:$0xff] }
 0xa37   : > { %v5622_v2 = vpack.c.bf16 %v2684_v63, %v2683_v61 }
 0xa38   : > { %v2022_v10 = vadd.f32 %v5047_v6, %v2013_v8  ;;  %v5058_v8 = vld [vmem:[#allocation10] ss:$0 sm:$0xff] }
 0xa3a   : > { %5328 = vmatmul.mubr.msk.f32.vlgmr.msra.gmra.mrb[2].mxu1 %vm1464_vm2, %v2022_v10 }
 0xa3b   : > { %5342 = vmatprep.mubr.msk.f32.mxu1 %vm6765_vm0, %v6766_v1 }
 0xb0d   : > { %v2108_v12 = vpop.f32.mrb[2].mxu1 }
 0xb0e   : > { %v2109_v13 = vadd.f32 %v5048_v11, %v2108_v12  ;;  %v5329_v14 = vpop.f32.mrb[3].mxu1 }
 0xb0f   : > { %v2688_v14 = vld [vmem:[%s7861_s18 + $0x38] sm:$0xff] }
 0xb10   : > { %2114 = vrot.lane.b32.xlu0 %v2109_v13, %s7773_s28  ;;  %v2112_v15 = vmul.f32 0.25, %v2109_v13 }
 0xb12   : > { %2278 = vrot.lane.b32.xlu1 %v2112_v15, %s7771_s0 }
 0xb14   : > { %2280 = vrot.lane.b32.xlu0 %v2109_v13, %s7772_s6 }
 0xb82   : > { %v2115_v16 = vpop.permute.xlu0 %2114 }
 0xb83   : > { %5331 = vmatpush3.xpose.msk.msra.mxu0 %vm1372_vm1, %v2115_v16 }
 0xb84   : > { %5335 = vmatprep.subr.mxu0 %v6766_v1  ;;  %v2279_v18 = vpop.permute.xlu1 %2278 }
 0xb86   : > { %v2281_v17 = vpop.permute.xlu0 %2280  ;;  %5333 = vmatmul.mubr.msk.f32.vlgmr.msra.gmra.mrb[14].mxu0 %vm1372_vm1, %v2112_v15 }
 0xb87   : > { %5341 = vmatpush3.xpose.msk.msra.mxu1 %vm1372_vm1, %v2281_v17  ;;  %5337 = vmatprep.mubr.msk.f32.mxu0 %vm6765_vm0, %v6766_v1 }
 0xb88   : > { %5606 = vmatprep.subr.bf16.mxu1 %v6764_v0 }
 0xb8a   : > { %5343 = vmatmul.mubr.msk.f32.vlgmr.msra.gmra.mrb[4].mxu1 %vm1372_vm1, %v2279_v18 }
 0xb8b   : > { %5354 = vmatprep.mubr.msk.f32.mxu1 %vm6765_vm0, %v6766_v1  ;;  %5608 = vmatpush3.bf16.msra.mxu1 %v5607_v48 }
 0xb8c   : > { %5612 = vmatprep.subr.bf16.mxu1 %v6764_v0 }
 0xc59   : > { %v2187_v19 = vpop.f32.mrb[14].mxu0 }
 0xc5a   : > { %v5334_v20 = vpop.f32.mrb[15].mxu0  ;;  %v2191_v21 = vsel %vm1617_vm3, %v2187_v19, -inf }
 0xc5b   : > { %2192 = vmax.xlane.f32.xlu0 %v2191_v21 }
 0xc5d   : > { %v2352_v22 = vpop.f32.mrb[4].mxu1 }
 0xc5e   : > { %v5344_v23 = vpop.f32.mrb[5].mxu1  ;;  %v2356_v24 = vsel %vm1617_vm3, %v2352_v22, -inf }
 0xc5f   : > { %2357 = vmax.xlane.f32.xlu1 %v2356_v24 }
 0xc70   : > { %2367 = vrot.lane.b32.xlu1 %v2109_v13, %s7767_s23  ;;  %s7862_s23 = sld [smem:[#allocation60_spill]] }
 0xc76   : > { %v2772_v16 = vld [vmem:[%s7862_s23] sm:$0xff]  ;;  %v2773_v17 = vld [vmem:[%s7862_s23 + $0x8] sm:$0xff]  ;;  %v2774_v24 = vld [vmem:[%s7862_s23 + $0x10] sm:$0xff] }
 0xc77   : > { %v5631_v18 = vpack.c.bf16 %v2773_v17, %v2772_v16 }
 0xce8   : > { %v2193_v25 = vpop.xlane.xlu0 %2192 }
 0xce9   : > { %v2194_v26 = vsub.f32 %v2187_v19, %v2193_v25  ;;  %v5059_v19 = vld [vmem:[#allocation11] ss:$0 sm:$0xff]  ;;  %v2775_v25 = vld [vmem:[%s7862_s23 + $0x18] sm:$0xff] }
 0xceb   : > { %v2195_v27 = vmul.f32 1.442695, %v2194_v26  ;;  %v5634_v26 = vpack.c.bf16 %v2775_v25, %v2774_v24 }
 0xcec   : > { %v2358_v28 = vpop.xlane.xlu1 %2357 }
 0xced   : > { %6005 = vpow2.f32 %v2195_v27  ;;  %v2359_v29 = vsub.f32 %v2352_v22, %v2358_v28  ;;  %v5061_v27 = vld [vmem:[#allocation13] ss:$0 sm:$0xff] }
 0xcef   : > { %v2360_v30 = vmul.f32 1.442695, %v2359_v29 }
 0xcf0   : > { %v2368_v42 = vpop.permute.xlu1 %2367 }
 0xcf1   : > { %6007 = vpow2.f32 %v2360_v30 }
 0xcf7   : > { %v6006_v31 = vpop.eup %6005 }
 0xcf8   : > { %v2197_v32 = vsel %vm1617_vm3, %v6006_v31, 0.0 }
 0xcf9   : > { %2198 = vadd.xlane.f32.xlu0 %v2197_v32 }
 0xcfb   : > { %v6008_v33 = vpop.eup %6007 }
 0xcfc   : > { %v2362_v34 = vsel %vm1617_vm3, %v6008_v33, 0.0 }
 0xcfd   : > { %2363 = vadd.xlane.f32.xlu0 %v2362_v34 }
 0xd13   : > { %2202 = vrot.lane.b32.xlu0 %v2109_v13, %s7769_s4  ;;  %v2687_v13 = vld [vmem:[%s7861_s18 + $0x30] sm:$0xff]  ;;  %s7863_s4 = sld [smem:[#allocation49_spill]] }
 0xd14   : > { %v5628_v15 = vpack.c.bf16 %v2688_v14, %v2687_v13 }
 0xd19   : > { %v2770_v29 = vld [vmem:[%s7863_s4] sm:$0xff]  ;;  %s7864_s4 = smov 64  }
 0xd86   : > { %v2199_v35 = vpop.xlane.xlu0 %2198 }
 0xd87   : > { %6009 = vrcp.f32 %v2199_v35 }
 0xd8a   : > { %v2364_v36 = vpop.xlane.xlu0 %2363 }
 0xd8b   : > { %6011 = vrcp.f32 %v2364_v36 }
 0xd8e   : > { %v2203_v37 = vpop.permute.xlu0 %2202 }
 0xd8f   : > { %5336 = vmatpush3.msra.mxu0 %v2203_v37 }
 0xd90   : > { %5345 = vmatprep.subr.mxu0 %v6766_v1 }
 0xd91   : > { %v6010_v38 = vpop.eup %6009 }
 0xd92   : > { %v2201_v39 = vmul.f32 %v6010_v38, %v6006_v31 }
 0xd94   : > { %5338 = vmatmul.mubr.msk.f32.vlgmr.msra.gmra.mrb[16].mxu0 %vm1617_vm3, %v2201_v39 }
 0xd95   : > { %v6012_v43 = vpop.eup %6011  ;;  %5346 = vmatpush3.msra.mxu0 %v2368_v42  ;;  %5347 = vmatprep.mubr.msk.f32.mxu0 %vm6765_vm0, %v6766_v1 }
 0xd96   : > { %v2366_v45 = vmul.f32 %v6012_v43, %v6008_v33  ;;  %5609 = vmatprep.subr.bf16.mxu0 %v6764_v0  ;;  %v5063_v33 = vld [vmem:[#allocation14] ss:$0 sm:$0xff] }
 0xd98   : > { %5348 = vmatmul.mubr.msk.f32.vlgmr.msra.gmra.mrb[18].mxu0 %vm1617_vm3, %v2366_v45 }
 0xd99   : > { %5611 = vmatpush3.bf16.msra.mxu0 %v5610_v44  ;;  %5361 = vmatprep.mubr.msk.f32.mxu0 %vm6765_vm0, %v6766_v1 }
 0xd9a   : > { %5618 = vmatprep.subr.bf16.mxu0 %v6764_v0 }
 0xe67   : > { %v2274_v49 = vpop.f32.mrb[16].mxu0 }
 0xe68   : > { %v5339_v50 = vpop.f32.mrb[17].mxu0  ;;  %5362 = vmatmul.mubr.msk.f32.vlgmr.msra.gmra.mrb[20].mxu0 %vm1372_vm1, %v2274_v49 }
 0xe69   : > { %5391 = vmatprep.mubr.msk.f32.mxu0 %vm6765_vm0, %v6766_v1  ;;  %5620 = vmatpush3.bf16.msra.mxu0 %v5619_v62 }
 0xe6a   : > { %5621 = vmatprep.subr.bf16.mxu0 %v6764_v0 }
 0xe6b   : > { %v2439_v51 = vpop.f32.mrb[18].mxu0 }
 0xe6c   : > { %v5349_v52 = vpop.f32.mrb[19].mxu0  ;;  %5355 = vmatmul.mubr.msk.f32.vlgmr.msra.gmra.mrb[6].mxu1 %vm1372_vm1, %v2439_v51 }
 0xe6d   : > { %5372 = vmatprep.mubr.msk.f32.mxu1 %vm6765_vm0, %v6766_v1  ;;  %5614 = vmatpush3.bf16.msra.mxu1 %v5613_v55 }
 0xe6e   : > { %5615 = vmatprep.subr.bf16.mxu1 %v6764_v0  ;;  %5623 = vmatpush3.bf16.msra.mxu0 %v5622_v2 }
 0xe6f   : > { %5624 = vmatprep.subr.bf16.mxu0 %v6764_v0 }
 0xe71   : > { %5617 = vmatpush3.bf16.msra.mxu1 %v5616_v58 }
 0xe72   : > { %5630 = vmatprep.subr.bf16.mxu1 %v6764_v0  ;;  %5626 = vmatpush3.bf16.msra.mxu0 %v5625_v5 }
 0xe73   : > { %5627 = vmatprep.subr.bf16.mxu0 %v6764_v0 }
 0xe76   : > { %5629 = vmatpush3.bf16.msra.mxu0 %v5628_v15  ;;  %v5073_v15 = vld [vmem:[#allocation16] ss:$0 sm:$0xff] }
 0xe77   : > { %5410 = vmatprep.subr.mxu0 %v6766_v1 }
 0xf3b   : > { %v2585_v6 = vpop.f32.mrb[20].mxu0 }
 0xf3c   : > { %v5363_v7 = vpop.f32.mrb[21].mxu0 }
 0xf3f   : > { %v2512_v9 = vpop.f32.mrb[6].mxu1 }
 0xf40   : > { %v2586_v10 = vadd.f32 %v2585_v6, %v2512_v9  ;;  %v5356_v11 = vpop.f32.mrb[7].mxu1 }
 0xf42   : > { %v2595_v12 = vadd.f32 %v5058_v8, %v2586_v10 }
 0xf44   : > { %5373 = vmatmul.mubr.msk.f32.vlgmr.msra.gmra.mrb[8].mxu1 %vm1464_vm2, %v2595_v12 }
 0xf45   : > { %5402 = vmatprep.mubr.msk.f32.mxu1 %vm6765_vm0, %v6766_v1  ;;  %5632 = vmatpush3.bf16.msra.mxu1 %v5631_v18 }
 0xf46   : > { %5633 = vmatprep.subr.bf16.mxu1 %v6764_v0 }
 0xf49   : > { %5635 = vmatpush3.bf16.msra.mxu1 %v5634_v26 }
 0xf4a   : > { %5405 = vmatprep.subr.mxu1 %v6766_v1 }
0x1017   : > { %v2676_v20 = vpop.f32.mrb[8].mxu1 }
0x1018   : > { %v2677_v21 = vadd.f32 %v5059_v19, %v2676_v20  ;;  %v5374_v22 = vpop.f32.mrb[9].mxu1 }
0x101a   : > { %v2680_v23 = vmax.f32 %v2677_v21, 0.0 }
0x101c   : > { %5392 = vmatmul.mubr.msk.f32.vlgmr.msra.gmra.mrb[22].mxu0 %vm2696_vm4, %v2680_v23 }
0x101d   : > { %5412 = vmatprep.mubr.msk.f32.mxu0 %vm6765_vm0, %v6766_v1 }
0x10ef   : > { %v2766_v28 = vpop.f32.mrb[22].mxu0 }
0x10f0   : > { %v2767_v30 = vadd.f32 %v5061_v27, %v2766_v28  ;;  %v5393_v31 = vpop.f32.mrb[23].mxu0 }
0x10f2   : > { %v7494_v32 = vadd.f32 %v2770_v29, %v2767_v30 }
0x10f4   : > { %5403 = vmatmul.mubr.msk.f32.vlgmr.msra.gmra.mrb[10].mxu1 %vm1464_vm2, %v7494_v32 }
0x10f5   : > { %5407 = vmatprep.mubr.msk.f32.mxu1 %vm6765_vm0, %v6766_v1 }
0x11c7   : > { %v2857_v34 = vpop.f32.mrb[10].mxu1 }
0x11c8   : > { %v2858_v35 = vadd.f32 %v5063_v33, %v2857_v34  ;;  %v5404_v36 = vpop.f32.mrb[11].mxu1  ;;  %v3461_v33 = vld [vmem:[%s7870_s8] sm:$0xff]  ;;  %v3462_v34 = vld [vmem:[%s7870_s8 + $0x8] sm:$0xff] }
0x11ca   : > { %2863 = vrot.lane.b32.xlu0 %v2858_v35, %s7773_s28  ;;  %v2861_v37 = vmul.f32 0.25, %v2858_v35  ;;  %s7867_s28 = smov 48  }
0x11cc   : > { %3027 = vrot.lane.b32.xlu1 %v2861_v37, %s7771_s0  ;;  %s7865_s0 = sld [smem:[#allocation61_spill]] }
0x11ce   : > { %3029 = vrot.lane.b32.xlu0 %v2858_v35, %s7772_s6 }
0x11d2   : > { %s7866_s6 = smov %s7865_s0  ;;  %v2777_v62 = vld [vmem:[%s7865_s0] sm:$0xff]  ;;  %s7868_s0 = sld [smem:[#allocation63_spill]] }
0x11d3   : > { %v2778_v63 = vld [vmem:[%s7866_s6 + $0x8] sm:$0xff]  ;;  %v2779_v6 = vld [vmem:[%s7866_s6 + $0x10] sm:$0xff]  ;;  %v2780_v7 = vld [vmem:[%s7866_s6 + $0x18] sm:$0xff] }
0x11d4   : > { %v5640_v4 = vpack.c.bf16 %v2778_v63, %v2777_v62  ;;  %v5637_v8 = vpack.c.bf16 %v2780_v7, %v2779_v6  ;;  %v5085_v6 = vld [vmem:[%s7862_s23 + $0x38] sm:$0xff] }
0x11d8   : > { %s7869_s5 = smov %s7868_s0  ;;  %v3376_v27 = vld [vmem:[%s7868_s0] sm:$0xff]  ;;  %s7871_s0 = smov 80  }
0x11d9   : > { %v3377_v28 = vld [vmem:[%s7869_s5 + $0x8] sm:$0xff]  ;;  %v3378_v30 = vld [vmem:[%s7869_s5 + $0x10] sm:$0xff]  ;;  %v3379_v31 = vld [vmem:[%s7869_s5 + $0x18] sm:$0xff] }
0x11da   : > { %v5643_v29 = vpack.c.bf16 %v3377_v28, %v3376_v27 }
0x123c   : > { %v2864_v38 = vpop.permute.xlu0 %2863 }
0x123d   : > { %5406 = vmatpush3.xpose.msk.msra.mxu1 %vm1372_vm1, %v2864_v38 }
0x123e   : > { %5415 = vmatprep.subr.mxu1 %v6766_v1  ;;  %v3028_v40 = vpop.permute.xlu1 %3027 }
0x1240   : > { %v3030_v39 = vpop.permute.xlu0 %3029  ;;  %5408 = vmatmul.mubr.msk.f32.vlgmr.msra.gmra.mrb[12].mxu1 %vm1372_vm1, %v2861_v37 }
0x1241   : > { %5416 = vmatpush3.xpose.msk.msra.mxu1 %vm1372_vm1, %v3030_v39  ;;  %5417 = vmatprep.mubr.msk.f32.mxu1 %vm6765_vm0, %v6766_v1 }
0x1242   : > { %5636 = vmatprep.subr.bf16.mxu1 %v6764_v0 }
0x1244   : > { %5418 = vmatmul.mubr.msk.f32.vlgmr.msra.gmra.mrb[14].mxu1 %vm1372_vm1, %v3028_v40  ;;  %v5074_v40 = vld [vmem:[#allocation20] ss:$0 sm:$0xff] }
0x1245   : > { %5429 = vmatprep.mubr.msk.f32.mxu1 %vm6765_vm0, %v6766_v1  ;;  %5638 = vmatpush3.bf16.msra.mxu1 %v5637_v8 }
0x1246   : > { %5642 = vmatprep.subr.bf16.mxu1 %v6764_v0 }
0x1313   : > { %v2936_v41 = vpop.f32.mrb[12].mxu1 }
0x1314   : > { %v5409_v42 = vpop.f32.mrb[13].mxu1  ;;  %v2940_v43 = vsel %vm1617_vm3, %v2936_v41, -inf }
0x1315   : > { %2941 = vmax.xlane.f32.xlu0 %v2940_v43  ;;  %v5075_v42 = vld [vmem:[#allocation22] ss:$0 sm:$0xff] }
0x1317   : > { %v3101_v44 = vpop.f32.mrb[14].mxu1 }
0x1318   : > { %v5419_v45 = vpop.f32.mrb[15].mxu1  ;;  %v3105_v46 = vsel %vm1617_vm3, %v3101_v44, -inf }
0x1319   : > { %3106 = vmax.xlane.f32.xlu1 %v3105_v46  ;;  %v3463_v45 = vld [vmem:[%s7870_s8 + $0x10] sm:$0xff]  ;;  %v3464_v46 = vld [vmem:[%s7870_s8 + $0x18] sm:$0xff] }
0x132a   : > { %2951 = vrot.lane.b32.xlu1 %v2858_v35, %s7864_s4 }
0x13a2   : > { %v2942_v47 = vpop.xlane.xlu0 %2941 }
0x13a3   : > { %v2943_v48 = vsub.f32 %v2936_v41, %v2942_v47  ;;  %v5652_v47 = vpack.c.bf16 %v3464_v46, %v3463_v45  ;;  %v5086_v46 = vld [vmem:[%s7866_s6 + $0x20] sm:$0xff] }
0x13a5   : > { %v2944_v49 = vmul.f32 1.442695, %v2943_v48  ;;  %v5076_v48 = vld [vmem:[#allocation17] ss:$0 sm:$0xff] }
0x13a6   : > { %v3107_v50 = vpop.xlane.xlu1 %3106 }
0x13a7   : > { %6013 = vpow2.f32 %v2944_v49  ;;  %v3108_v51 = vsub.f32 %v3101_v44, %v3107_v50 }
0x13a9   : > { %v3109_v52 = vmul.f32 1.442695, %v3108_v51 }
0x13aa   : > { %v2952_v53 = vpop.permute.xlu1 %2951 }
0x13ab   : > { %6015 = vpow2.f32 %v3109_v52  ;;  %5411 = vmatpush3.msra.mxu0 %v2952_v53  ;;  %v5078_v53 = vld [vmem:[#allocation19] ss:$0 sm:$0xff] }
0x13ac   : > { %5420 = vmatprep.subr.mxu0 %v6766_v1 }
0x13b1   : > { %v6014_v54 = vpop.eup %6013 }
0x13b2   : > { %v2946_v55 = vsel %vm1617_vm3, %v6014_v54, 0.0 }
0x13b3   : > { %2947 = vadd.xlane.f32.xlu0 %v2946_v55 }
0x13b5   : > { %v6016_v56 = vpop.eup %6015 }
0x13b6   : > { %v3111_v57 = vsel %vm1617_vm3, %v6016_v56, 0.0 }
0x13b7   : > { %3112 = vadd.xlane.f32.xlu0 %v3111_v57 }
0x13cd   : > { %3116 = vrot.lane.b32.xlu0 %v2858_v35, %s7867_s28  ;;  %v5649_v35 = vpack.c.bf16 %v3462_v34, %v3461_v33 }
0x1440   : > { %v2948_v58 = vpop.xlane.xlu0 %2947 }
0x1441   : > { %6017 = vrcp.f32 %v2948_v58 }
0x1444   : > { %v3113_v59 = vpop.xlane.xlu0 %3112 }
0x1445   : > { %6019 = vrcp.f32 %v3113_v59 }
0x1448   : > { %v3117_v2 = vpop.permute.xlu0 %3116 }
0x144b   : > { %v6018_v60 = vpop.eup %6017 }
0x144c   : > { %v2950_v61 = vmul.f32 %v6018_v60, %v6014_v54 }
0x144e   : > { %5413 = vmatmul.mubr.msk.f32.vlgmr.msra.gmra.mrb[24].mxu0 %vm1617_vm3, %v2950_v61 }
0x144f   : > { %v6020_v3 = vpop.eup %6019  ;;  %5421 = vmatpush3.msra.mxu0 %v3117_v2  ;;  %5422 = vmatprep.mubr.msk.f32.mxu0 %vm6765_vm0, %v6766_v1  ;;  %v5082_v2 = vld [vmem:[%s7862_s23 + $0x20] sm:$0xff] }
0x1450   : > { %v3115_v5 = vmul.f32 %v6020_v3, %v6016_v56  ;;  %5639 = vmatprep.subr.bf16.mxu0 %v6764_v0  ;;  %v5083_v3 = vld [vmem:[%s7862_s23 + $0x28] sm:$0xff] }
0x1452   : > { %5423 = vmatmul.mubr.msk.f32.vlgmr.msra.gmra.mrb[26].mxu0 %vm1617_vm3, %v3115_v5  ;;  %v5084_v5 = vld [vmem:[%s7862_s23 + $0x30] sm:$0xff] }
0x1453   : > { %5641 = vmatpush3.bf16.msra.mxu0 %v5640_v4  ;;  %5436 = vmatprep.mubr.msk.f32.mxu0 %vm6765_vm0, %v6766_v1  ;;  %v5655_v4 = vpack.c.bf16 %v5083_v3, %v5082_v2  ;;  %v5658_v7 = vpack.c.bf16 %v5085_v6, %v5084_v5 }
0x1454   : > { %5648 = vmatprep.subr.bf16.mxu0 %v6764_v0 }
0x1521   : > { %v3023_v9 = vpop.f32.mrb[24].mxu0 }
0x1522   : > { %v5414_v10 = vpop.f32.mrb[25].mxu0  ;;  %5437 = vmatmul.mubr.msk.f32.vlgmr.msra.gmra.mrb[28].mxu0 %vm1372_vm1, %v3023_v9 }
0x1523   : > { %5458 = vmatprep.mubr.msk.f32.mxu0 %vm6765_vm0, %v6766_v1  ;;  %5650 = vmatpush3.bf16.msra.mxu0 %v5649_v35 }
0x1524   : > { %5651 = vmatprep.subr.bf16.mxu0 %v6764_v0 }
0x1525   : > { %v3188_v11 = vpop.f32.mrb[26].mxu0 }
0x1526   : > { %v5424_v12 = vpop.f32.mrb[27].mxu0  ;;  %5430 = vmatmul.mubr.msk.f32.vlgmr.msra.gmra.mrb[16].mxu1 %vm1372_vm1, %v3188_v11 }
0x1527   : > { %5447 = vmatprep.mubr.msk.f32.mxu1 %vm6765_vm0, %v6766_v1  ;;  %5644 = vmatpush3.bf16.msra.mxu1 %v5643_v29  ;;  %v5080_v12 = vld [vmem:[#allocation23] ss:$0 sm:$0xff] }
0x1528   : > { %5645 = vmatprep.subr.bf16.mxu1 %v6764_v0  ;;  %5653 = vmatpush3.bf16.msra.mxu0 %v5652_v47  ;;  %v5087_v47 = vld [vmem:[%s7866_s6 + $0x28] sm:$0xff] }
0x1529   : > { %5472 = vmatprep.subr.mxu0 %v6766_v1 }
0x15f5   : > { %v3334_v13 = vpop.f32.mrb[28].mxu0 }
0x15f6   : > { %v5438_v14 = vpop.f32.mrb[29].mxu0 }
0x15f7   : > { %v5081_v14 = vld [vmem:[#allocation25] ss:$0 sm:$0xff] }
0x15f9   : > { %v3261_v16 = vpop.f32.mrb[16].mxu1 }
0x15fa   : > { %v3335_v17 = vadd.f32 %v3334_v13, %v3261_v16  ;;  %v5431_v18 = vpop.f32.mrb[17].mxu1 }
0x15fc   : > { %v3344_v19 = vadd.f32 %v5073_v15, %v3335_v17  ;;  %v5090_v17 = vld [vmem:[#allocation14 + $0x1] ss:$0 sm:$0xff] }
0x15fe   : > { %v3345_v20 = vadd.f32 %v3344_v19, %v7494_v32  ;;  %v5646_v32 = vpack.c.bf16 %v3379_v31, %v3378_v30 }
0x1600   : > { %v3348_v21 = vsel %vm1464_vm2, %v3345_v20, 0.0  ;;  %5647 = vmatpush3.bf16.msra.mxu1 %v5646_v32 }
0x1601   : > { %3349 = vadd.xlane.f32.xlu1 %v3348_v21  ;;  %5654 = vmatprep.subr.bf16.mxu1 %v6764_v0 }
0x168e   : > { %v3350_v22 = vpop.xlane.xlu1 %3349 }
0x168f   : > { %v3352_v23 = vmul.f32 0.03125, %v3350_v22 }
0x1691   : > { %v3353_v24 = vsub.f32 %v3345_v20, %v3352_v23 }
0x1693   : > { %v3354_v25 = vmul.f32 %v3353_v24, %v3353_v24 }
0x1695   : > { %v3355_v26 = vsel %vm1464_vm2, %v3354_v25, 0.0 }
0x1696   : > { %3356 = vadd.xlane.f32.xlu0 %v3355_v26 }
0x1723   : > { %v3357_v36 = vpop.xlane.xlu0 %3356 }
0x1724   : > { %v3358_v37 = vmul.f32 0.03125, %v3357_v36 }
0x1726   : > { %v3359_v38 = vadd.f32 1e-05, %v3358_v37 }
0x1728   : > { %6021 = vrsqrt.f32 %v3359_v38 }
0x1732   : > { %v6022_v39 = vpop.eup %6021 }
0x1733   : > { %v3361_v41 = vmul.f32 %v6022_v39, %v3353_v24 }
0x1735   : > { %v3368_v43 = vmul.f32 %v5074_v40, %v3361_v41 }
0x1737   : > { %v3375_v44 = vadd.f32 %v5075_v42, %v3368_v43 }
0x1739   : > { %5448 = vmatmul.mubr.msk.f32.vlgmr.msra.gmra.mrb[18].mxu1 %vm1464_vm2, %v3375_v44 }
0x173a   : > { %5469 = vmatprep.mubr.msk.f32.mxu1 %vm6765_vm0, %v6766_v1  ;;  %5656 = vmatpush3.bf16.msra.mxu1 %v5655_v4 }
0x173b   : > { %5657 = vmatprep.subr.bf16.mxu1 %v6764_v0 }
0x173e   : > { %5659 = vmatpush3.bf16.msra.mxu1 %v5658_v7 }
0x173f   : > { %5482 = vmatprep.subr.mxu1 %v6766_v1 }
0x180c   : > { %v3456_v49 = vpop.f32.mrb[18].mxu1 }
0x180d   : > { %v3457_v50 = vadd.f32 %v5076_v48, %v3456_v49  ;;  %v5449_v51 = vpop.f32.mrb[19].mxu1 }
0x180f   : > { %v3460_v52 = vmax.f32 %v3457_v50, 0.0  ;;  %v5664_v50 = vpack.c.bf16 %v5087_v47, %v5086_v46 }
0x1811   : > { %5459 = vmatmul.mubr.msk.f32.vlgmr.msra.gmra.mrb[30].mxu0 %vm1464_vm2, %v3460_v52  ;;  %v5088_v52 = vld [vmem:[%s7866_s6 + $0x30] sm:$0xff] }
0x1812   : > { %5474 = vmatprep.mubr.msk.f32.mxu0 %vm6765_vm0, %v6766_v1 }
0x18e4   : > { %v3541_v54 = vpop.f32.mrb[30].mxu0 }
0x18e5   : > { %v3542_v55 = vadd.f32 %v5078_v53, %v3541_v54  ;;  %v5460_v56 = vpop.f32.mrb[31].mxu0  ;;  %v5089_v53 = vld [vmem:[%s7866_s6 + $0x38] sm:$0xff] }
0x18e6   : > { %v5661_v54 = vpack.c.bf16 %v5089_v53, %v5088_v52 }
0x18e7   : > { %v3545_v57 = vadd.f32 %v3542_v55, %v3375_v44 }
0x18e9   : > { %v3548_v58 = vsel %vm1464_vm2, %v3545_v57, 0.0 }
0x18ea   : > { %3549 = vadd.xlane.f32.xlu1 %v3548_v58 }
0x1977   : > { %v3550_v59 = vpop.xlane.xlu1 %3549 }
0x1978   : > { %v3551_v60 = vmul.f32 0.03125, %v3550_v59 }
0x197a   : > { %v3552_v61 = vsub.f32 %v3545_v57, %v3551_v60 }
0x197c   : > { %v3553_v62 = vmul.f32 %v3552_v61, %v3552_v61 }
0x197e   : > { %v3554_v63 = vsel %vm1464_vm2, %v3553_v62, 0.0 }
0x197f   : > { %3555 = vadd.xlane.f32.xlu0 %v3554_v63 }
0x1a0c   : > { %v3556_v8 = vpop.xlane.xlu0 %3555 }
0x1a0d   : > { %v3557_v9 = vmul.f32 0.03125, %v3556_v8 }
0x1a0f   : > { %v3558_v10 = vadd.f32 1e-05, %v3557_v9 }
0x1a11   : > { %6023 = vrsqrt.f32 %v3558_v10 }
0x1a1b   : > { %v6024_v11 = vpop.eup %6023 }
0x1a1c   : > { %v3560_v13 = vmul.f32 %v6024_v11, %v3552_v61  ;;  %v5100_v61 = vld [vmem:[#allocation16 + $0x1] ss:$0 sm:$0xff]  ;;  %v5103_v11 = vld [vmem:[%s7869_s5 + $0x20] sm:$0xff] }
0x1a1e   : > { %v3567_v15 = vmul.f32 %v5080_v12, %v3560_v13  ;;  %v5104_v12 = vld [vmem:[%s7869_s5 + $0x28] sm:$0xff] }
0x1a1f   : > { %v5667_v13 = vpack.c.bf16 %v5104_v12, %v5103_v11  ;;  %v4562_v11 = vld [vmem:[%s6947_s25 + $0x18] sm:$0xff] }
0x1a20   : > { %v7568_v16 = vadd.f32 %v5081_v14, %v3567_v15  ;;  %v5105_v14 = vld [vmem:[%s7869_s5 + $0x30] sm:$0xff]  ;;  %v5106_v15 = vld [vmem:[%s7869_s5 + $0x38] sm:$0xff] }
0x1a22   : > { %5470 = vmatmul.mubr.msk.f32.vlgmr.msra.gmra.mrb[20].mxu1 %vm1464_vm2, %v7568_v16 }
0x1a23   : > { %5484 = vmatprep.mubr.msk.f32.mxu1 %vm6765_vm0, %v6766_v1 }
0x1af5   : > { %v3664_v18 = vpop.f32.mrb[20].mxu1 }
0x1af6   : > { %v3665_v19 = vadd.f32 %v5090_v17, %v3664_v18  ;;  %v5471_v20 = vpop.f32.mrb[21].mxu1  ;;  %v5109_v17 = vld [vmem:[%s7870_s8 + $0x20] sm:$0xff]  ;;  %v5110_v18 = vld [vmem:[%s7870_s8 + $0x28] sm:$0xff] }
0x1af8   : > { %3836 = vrot.lane.b32.xlu0 %v3665_v19, %s7871_s0  ;;  %3670 = vrot.lane.b32.xlu1 %v3665_v19, %s7872_s9  ;;  %v3668_v21 = vmul.f32 0.25, %v3665_v19  ;;  %s7874_s9 = sld [smem:[#allocation69_spill]]  ;;  %s5123_s0 = sshll.u32 %s6985_s7, 7 }
0x1af9   : > { %s7677_s5 = scalar_lea.hbm %s6957_s17, %s5123_s0 }
0x1afc   : > { %3834 = vrot.lane.b32.xlu1 %v3668_v21, %s7873_s10 }
0x1afe   : > { %v4392_v52 = vld [vmem:[%s7874_s9 + $0x18] sm:$0xff] }
0x1b6a   : > { %v3837_v22 = vpop.permute.xlu0 %3836  ;;  %v3671_v23 = vpop.permute.xlu1 %3670 }
0x1b6b   : > { %5473 = vmatpush3.xpose.msk.msra.mxu0 %vm1372_vm1, %v3671_v23  ;;  %5483 = vmatpush3.xpose.msk.msra.mxu1 %vm1372_vm1, %v3837_v22 }
0x1b6c   : > { %5477 = vmatprep.subr.mxu0 %v6766_v1  ;;  %5660 = vmatprep.subr.bf16.mxu1 %v6764_v0 }
0x1b6e   : > { %v3835_v24 = vpop.permute.xlu1 %3834  ;;  %5475 = vmatmul.mubr.msk.f32.vlgmr.msra.gmra.mrb[32].mxu0 %vm1372_vm1, %v3668_v21 }
0x1b6f   : > { %5485 = vmatmul.mubr.msk.f32.vlgmr.msra.gmra.mrb[22].mxu1 %vm1372_vm1, %v3835_v24  ;;  %5479 = vmatprep.mubr.msk.f32.mxu0 %vm6765_vm0, %v6766_v1  ;;  %v5101_v24 = vld [vmem:[#allocation20 + $0x1] ss:$0 sm:$0xff] }
0x1b70   : > { %5496 = vmatprep.mubr.msk.f32.mxu1 %vm6765_vm0, %v6766_v1  ;;  %5662 = vmatpush3.bf16.msra.mxu1 %v5661_v54  ;;  %v4474_v54 = vld [vmem:[#allocation28] sm:$0xff] }
0x1b71   : > { %5666 = vmatprep.subr.bf16.mxu1 %v6764_v0 }
0x1c41   : > { %v3743_v25 = vpop.f32.mrb[32].mxu0 }
0x1c42   : > { %v5476_v26 = vpop.f32.mrb[33].mxu0  ;;  %v3908_v27 = vpop.f32.mrb[22].mxu1  ;;  %v3747_v28 = vsel %vm1617_vm3, %v3743_v25, -inf }
0x1c43   : > { %v5486_v29 = vpop.f32.mrb[23].mxu1  ;;  %3748 = vmax.xlane.f32.xlu1 %v3747_v28  ;;  %v3912_v30 = vsel %vm1617_vm3, %v3908_v27, -inf  ;;  %v5102_v26 = vld [vmem:[#allocation22 + $0x1] ss:$0 sm:$0xff] }
0x1c44   : > { %3913 = vmax.xlane.f32.xlu0 %v3912_v30  ;;  %v5111_v29 = vld [vmem:[%s7870_s8 + $0x30] sm:$0xff]  ;;  %v5112_v30 = vld [vmem:[%s7870_s8 + $0x38] sm:$0xff] }
0x1cd0   : > { %v3749_v31 = vpop.xlane.xlu1 %3748 }
0x1cd1   : > { %v3750_v32 = vsub.f32 %v3743_v25, %v3749_v31  ;;  %v3914_v33 = vpop.xlane.xlu0 %3913  ;;  %v5676_v31 = vpack.c.bf16 %v5112_v30, %v5111_v29 }
0x1cd2   : > { %v3915_v34 = vsub.f32 %v3908_v27, %v3914_v33 }
0x1cd3   : > { %v3751_v35 = vmul.f32 1.442695, %v3750_v32  ;;  %v5107_v32 = vld [vmem:[#allocation17 + $0x1] ss:$0 sm:$0xff] }
0x1cd4   : > { %v3916_v36 = vmul.f32 1.442695, %v3915_v34 }
0x1cd5   : > { %6025 = vpow2.f32 %v3751_v35 }
0x1cd6   : > { %6027 = vpow2.f32 %v3916_v36 }
0x1cdf   : > { %v6026_v37 = vpop.eup %6025 }
0x1ce0   : > { %v6028_v38 = vpop.eup %6027  ;;  %v3753_v39 = vsel %vm1617_vm3, %v6026_v37, 0.0 }
0x1ce1   : > { %3754 = vadd.xlane.f32.xlu0 %v3753_v39  ;;  %v3918_v40 = vsel %vm1617_vm3, %v6028_v38, 0.0 }
0x1ce2   : > { %3919 = vadd.xlane.f32.xlu1 %v3918_v40 }
0x1cf3   : > { %3923 = vrot.lane.b32.xlu1 %v3665_v19, %s7867_s28  ;;  %s7668_s28 = sand.u32 1, %s6695_s1  }
0x1cf4   : > { %s5033_s10 = sshll.u32 %s7668_s28, 3 }
0x1cf7   : > { %3758 = vrot.lane.b32.xlu0 %v3665_v19, %s7864_s4  ;;  %v5673_v19 = vpack.c.bf16 %v5110_v18, %v5109_v17  ;;  %v4567_v18 = vld [vmem:[%s6947_s25 + $0x40] sm:$0xff]  ;;  %s1351_s4 = scalar_lea.vmem [#allocation32], %s5033_s10  ;;  %s4655_s10 = scalar_lea.sflag [#allocation4], %s7668_s28 }
0x1cf8   : > { %s4672_s6 = sshll.u32 %s1351_s4, 4  ;;  %s4673_s6 = int_to_ptr.vmem [resolvable:$true] %s4672_s6 }
0x1cf9   : > { %s6569_s8 = scalar_lea.vmem %s4673_s6, 128 }
0x1cfa   : > { %p6570_p6 = scmp.ne.s32.totalorder %s4673_s6, %s6569_s8 }
0x1cfc   : > { %p6571_p10 = pnand %p6570_p6, %p7875_p9 }
0x1cfe   : > { %p6572_p7 = pneg %p6571_p10 }
0x1d6e   : > { %v3755_v41 = vpop.xlane.xlu0 %3754 }
0x1d6f   : > { %6029 = vrcp.f32 %v3755_v41  ;;  %v3920_v42 = vpop.xlane.xlu1 %3919 }
0x1d70   : > { %6031 = vrcp.f32 %v3920_v42 }
0x1d72   : > { %v3759_v43 = vpop.permute.xlu0 %3758 }
0x1d73   : > { %5478 = vmatpush3.msra.mxu0 %v3759_v43  ;;  %v3924_v49 = vpop.permute.xlu1 %3923 }
0x1d74   : > { %5487 = vmatprep.subr.mxu0 %v6766_v1 }
0x1d79   : > { %v6030_v44 = vpop.eup %6029 }
0x1d7a   : > { %v3757_v45 = vmul.f32 %v6030_v44, %v6026_v37  ;;  %v6032_v48 = vpop.eup %6031  ;;  %v5113_v37 = vld [vmem:[#allocation19 + $0x1] ss:$0 sm:$0xff] }
0x1d7b   : > { %v3922_v51 = vmul.f32 %v6032_v48, %v6028_v38  ;;  %v4389_v48 = vld [vmem:[%s7874_s9] sm:$0xff] }
0x1d7c   : > { %5480 = vmatmul.mubr.msk.f32.vlgmr.msra.gmra.mrb[34].mxu0 %vm1617_vm3, %v3757_v45 }
0x1d7d   : > { %5488 = vmatpush3.msra.mxu0 %v3924_v49  ;;  %5489 = vmatprep.mubr.msk.f32.mxu0 %vm6765_vm0, %v6766_v1  ;;  %v4390_v49 = vld [vmem:[%s7874_s9 + $0x8] sm:$0xff] }
0x1d7e   : > { %5663 = vmatprep.subr.bf16.mxu0 %v6764_v0 }
0x1d80   : > { %5490 = vmatmul.mubr.msk.f32.vlgmr.msra.gmra.mrb[36].mxu0 %vm1617_vm3, %v3922_v51  ;;  %v4391_v51 = vld [vmem:[%s7874_s9 + $0x10] sm:$0xff]  ;;  %s6772_s9 = smov [#allocation32]  }
0x1d81   : > { %5665 = vmatpush3.bf16.msra.mxu0 %v5664_v50  ;;  %5503 = vmatprep.mubr.msk.f32.mxu0 %vm6765_vm0, %v6766_v1  ;;  %v5679_v50 = vpack.c.bf16 %v4390_v49, %v4389_v48  ;;  %v5682_v53 = vpack.c.bf16 %v4392_v52, %v4391_v51  ;;  %s6573_s11 = sshll.u32 %s6772_s9, 4  ;;  %s6574_s11 = int_to_ptr.vmem [resolvable:$false] %s6573_s11 }
0x1d82   : > { %5672 = vmatprep.subr.bf16.mxu0 %v6764_v0  ;;  %s6575_s12 = scalar_lea.vmem %s6574_s11, 256  ;;  %p6576_p8 = scmp.lt.s32.totalorder %s4673_s6, %s6574_s11 }
0x1d83   : > { %p6577_p11 = scmp.lt.s32.totalorder %s6575_s12, %s6569_s8 }
0x1d85   : > { %p6578_p13 = por %p6577_p11, %p6576_p8 }
0x1d87   : > { %p6579_p1 = pnand %p6578_p13, %p6572_p7 }
0x1e4f   : > { %v3830_v55 = vpop.f32.mrb[34].mxu0 }
0x1e50   : > { %v5481_v56 = vpop.f32.mrb[35].mxu0  ;;  %5504 = vmatmul.mubr.msk.f32.vlgmr.msra.gmra.mrb[38].mxu0 %vm1372_vm1, %v3830_v55  ;;  %v4475_v55 = vld [vmem:[#allocation28 + $0x8] sm:$0xff] }
0x1e51   : > { %5525 = vmatprep.mubr.msk.f32.mxu0 %vm6765_vm0, %v6766_v1  ;;  %5674 = vmatpush3.bf16.msra.mxu0 %v5673_v19  ;;  %v5685_v56 = vpack.c.bf16 %v4475_v55, %v4474_v54  ;;  %v4568_v19 = vld [vmem:[%s6947_s25 + $0x48] sm:$0xff] }
0x1e52   : > { %5675 = vmatprep.subr.bf16.mxu0 %v6764_v0 }
0x1e53   : > { %v3995_v57 = vpop.f32.mrb[36].mxu0 }
0x1e54   : > { %v5491_v58 = vpop.f32.mrb[37].mxu0  ;;  %5497 = vmatmul.mubr.msk.f32.vlgmr.msra.gmra.mrb[24].mxu1 %vm1372_vm1, %v3995_v57 }
0x1e55   : > { %5514 = vmatprep.mubr.msk.f32.mxu1 %vm6765_vm0, %v6766_v1  ;;  %5668 = vmatpush3.bf16.msra.mxu1 %v5667_v13  ;;  %v4563_v13 = vld [vmem:[%s6947_s25 + $0x20] sm:$0xff] }
0x1e56   : > { %5669 = vmatprep.subr.bf16.mxu1 %v6764_v0  ;;  %5677 = vmatpush3.bf16.msra.mxu0 %v5676_v31  ;;  %v4573_v31 = vld [vmem:[%s6947_s25 + $0x70] sm:$0xff] }
0x1e57   : > { %5684 = vmatprep.subr.bf16.mxu0 %v6764_v0 }
0x1f23   : > { %v4141_v59 = vpop.f32.mrb[38].mxu0 }
0x1f24   : > { %v5505_v60 = vpop.f32.mrb[39].mxu0 }
0x1f27   : > { %v4068_v62 = vpop.f32.mrb[24].mxu1 }
0x1f28   : > { %v4142_v63 = vadd.f32 %v4141_v59, %v4068_v62  ;;  %v5498_v2 = vpop.f32.mrb[25].mxu1 }
0x1f2a   : > { %v4151_v3 = vadd.f32 %v5100_v61, %v4142_v63  ;;  %v5115_v61 = vld [vmem:[#allocation23 + $0x1] ss:$0 sm:$0xff]  ;;  %v5116_v63 = vld [vmem:[#allocation25 + $0x1] ss:$0 sm:$0xff] }
0x1f2c   : > { %v4152_v4 = vadd.f32 %v4151_v3, %v7568_v16  ;;  %v5670_v16 = vpack.c.bf16 %v5106_v15, %v5105_v14  ;;  %v4565_v15 = vld [vmem:[%s6947_s25 + $0x30] sm:$0xff] }
0x1f2e   : > { %v4157_v5 = vsel %vm1464_vm2, %v4152_v4, 0.0  ;;  %5671 = vmatpush3.bf16.msra.mxu1 %v5670_v16  ;;  %v4566_v16 = vld [vmem:[%s6947_s25 + $0x38] sm:$0xff] }
0x1f2f   : > { %4158 = vadd.xlane.f32.xlu1 %v4157_v5  ;;  %5678 = vmatprep.subr.bf16.mxu1 %v6764_v0  ;;  %v4477_v5 = vld [vmem:[#allocation28 + $0x18] sm:$0xff]  ;;  %v5700_v17 = vpack.c.bf16 %v4566_v16, %v4565_v15 }
0x1fbc   : > { %v4159_v6 = vpop.xlane.xlu1 %4158 }
0x1fbd   : > { %v4160_v7 = vmul.f32 0.03125, %v4159_v6 }
0x1fbf   : > { %v4161_v8 = vsub.f32 %v4152_v4, %v4160_v7  ;;  %v4476_v4 = vld [vmem:[#allocation28 + $0x10] sm:$0xff]  ;;  %v4559_v7 = vld [vmem:[%s6947_s25] sm:$0xff] }
0x1fc0   : > { %v5688_v6 = vpack.c.bf16 %v4477_v5, %v4476_v4 }
0x1fc1   : > { %v4162_v9 = vmul.f32 %v4161_v8, %v4161_v8 }
0x1fc3   : > { %v4163_v10 = vsel %vm1464_vm2, %v4162_v9, 0.0  ;;  %v4561_v9 = vld [vmem:[%s6947_s25 + $0x10] sm:$0xff] }
0x1fc4   : > { %4164 = vadd.xlane.f32.xlu0 %v4163_v10  ;;  %v5694_v12 = vpack.c.bf16 %v4562_v11, %v4561_v9 }
0x2051   : > { %v4165_v20 = vpop.xlane.xlu0 %4164 }
0x2052   : > { %v4166_v21 = vmul.f32 0.03125, %v4165_v20  ;;  %v5703_v20 = vpack.c.bf16 %v4568_v19, %v4567_v18 }
0x2054   : > { %v4167_v22 = vadd.f32 1e-05, %v4166_v21  ;;  %v4569_v21 = vld [vmem:[%s6947_s25 + $0x50] sm:$0xff] }
0x2056   : > { %6033 = vrsqrt.f32 %v4167_v22  ;;  %v4570_v22 = vld [vmem:[%s6947_s25 + $0x58] sm:$0xff] }
0x2060   : > { %v6034_v23 = vpop.eup %6033 }
0x2061   : > { %v4169_v25 = vmul.f32 %v6034_v23, %v4161_v8  ;;  %v4560_v8 = vld [vmem:[%s6947_s25 + $0x8] sm:$0xff]  ;;  %v5706_v23 = vpack.c.bf16 %v4570_v22, %v4569_v21 }
0x2062   : > { %v5691_v10 = vpack.c.bf16 %v4560_v8, %v4559_v7 }
0x2063   : > { %v4176_v27 = vmul.f32 %v5101_v24, %v4169_v25  ;;  %v4571_v24 = vld [vmem:[%s6947_s25 + $0x60] sm:$0xff]  ;;  %v4572_v25 = vld [vmem:[%s6947_s25 + $0x68] sm:$0xff] }
0x2065   : > { %v4183_v28 = vadd.f32 %v5102_v26, %v4176_v27  ;;  %v5709_v26 = vpack.c.bf16 %v4572_v25, %v4571_v24  ;;  %v5117_v27 = vld [vmem:[#allocation26] ss:$0 sm:$0xff] }
0x2067   : > { %5515 = vmatmul.mubr.msk.f32.vlgmr.msra.gmra.mrb[26].mxu1 %vm1464_vm2, %v4183_v28 }
0x2068   : > { %5536 = vmatprep.mubr.msk.f32.mxu1 %vm6765_vm0, %v6766_v1  ;;  %5680 = vmatpush3.bf16.msra.mxu1 %v5679_v50 }
0x2069   : > { %5681 = vmatprep.subr.bf16.mxu1 %v6764_v0 }
0x206c   : > { %5683 = vmatpush3.bf16.msra.mxu1 %v5682_v53 }
0x206d   : > { %5690 = vmatprep.subr.bf16.mxu1 %v6764_v0 }
0x213a   : > { %v4266_v33 = vpop.f32.mrb[26].mxu1 }
0x213b   : > { %v4267_v34 = vadd.f32 %v5107_v32, %v4266_v33  ;;  %v5516_v35 = vpop.f32.mrb[27].mxu1  ;;  %v4574_v32 = vld [vmem:[%s6947_s25 + $0x78] sm:$0xff] }
0x213c   : > { %v5119_v33 = vld [vmem:[#allocation29] ss:$0 sm:$0xff] }
0x213d   : > { %v4270_v36 = vmax.f32 %v4267_v34, 0.0 }
0x213f   : > { %5526 = vmatmul.mubr.msk.f32.vlgmr.msra.gmra.mrb[40].mxu0 %vm1464_vm2, %v4270_v36 }
0x2140   : > { %5547 = vmatprep.mubr.msk.f32.mxu0 %vm6765_vm0, %v6766_v1  ;;  %5686 = vmatpush3.bf16.msra.mxu0 %v5685_v56 }
0x2141   : > { %5687 = vmatprep.subr.bf16.mxu0 %v6764_v0 }
0x2144   : > { %5689 = vmatpush3.bf16.msra.mxu0 %v5688_v6 }
0x2212   : > { %v4353_v38 = vpop.f32.mrb[40].mxu0 }
0x2213   : > { %v4354_v39 = vadd.f32 %v5113_v37, %v4353_v38  ;;  %v5527_v40 = vpop.f32.mrb[41].mxu0 }
0x2215   : > { %v4357_v41 = vadd.f32 %v4354_v39, %v4183_v28 }
0x2217   : > { %v4362_v42 = vsel %vm1464_vm2, %v4357_v41, 0.0 }
0x2218   : > { %4363 = vadd.xlane.f32.xlu0 %v4362_v42 }
0x22a5   : > { %v4364_v43 = vpop.xlane.xlu0 %4363 }
0x22a6   : > { %v4365_v44 = vmul.f32 0.03125, %v4364_v43 }
0x22a8   : > { %v4366_v45 = vsub.f32 %v4357_v41, %v4365_v44 }
0x22aa   : > { %v4367_v46 = vmul.f32 %v4366_v45, %v4366_v45 }
0x22ac   : > { %v4368_v47 = vsel %vm1464_vm2, %v4367_v46, 0.0 }
0x22ad   : > { %4369 = vadd.xlane.f32.xlu1 %v4368_v47 }
0x233a   : > { %v4370_v57 = vpop.xlane.xlu1 %4369 }
0x233b   : > { %v4371_v58 = vmul.f32 0.03125, %v4370_v57 }
0x233d   : > { %v4372_v59 = vadd.f32 1e-05, %v4371_v58 }
0x233f   : > { %6035 = vrsqrt.f32 %v4372_v59 }
0x2349   : > { %v6036_v60 = vpop.eup %6035 }
0x234a   : > { %v4374_v62 = vmul.f32 %v6036_v60, %v4366_v45 }
0x234c   : > { %v4381_v2 = vmul.f32 %v5115_v61, %v4374_v62 }
0x234e   : > { %v4388_v3 = vadd.f32 %v5116_v63, %v4381_v2 }
0x2350   : > { %5537 = vmatmul.mubr.msk.f32.vlgmr.msra.gmra.mrb[28].mxu1 %vm1464_vm2, %v4388_v3 }
0x2351   : > { %5582 = vmatprep.mubr.msk.f32.mxu1 %vm6765_vm0, %v6766_v1  ;;  %5692 = vmatpush3.bf16.msra.mxu1 %v5691_v10  ;;  %v4564_v1 = vld [vmem:[%s6947_s25 + $0x28] sm:$0xff] }
0x2352   : > { %5693 = vmatprep.subr.bf16.mxu1 %v6764_v0  ;;  %v5697_v14 = vpack.c.bf16 %v4564_v1, %v4563_v13 }
0x2355   : > { %5695 = vmatpush3.bf16.msra.mxu1 %v5694_v12 }
0x2356   : > { %5696 = vmatprep.subr.bf16.mxu1 %v6764_v0 }
0x2359   : > { %5698 = vmatpush3.bf16.msra.mxu1 %v5697_v14 }
0x235a   : > { %5699 = vmatprep.subr.bf16.mxu1 %v6764_v0 }
0x235d   : > { %5701 = vmatpush3.bf16.msra.mxu1 %v5700_v17 }
0x235e   : > { %5702 = vmatprep.subr.bf16.mxu1 %v6764_v0 }
0x2361   : > { %5704 = vmatpush3.bf16.msra.mxu1 %v5703_v20 }
0x2362   : > { %5705 = vmatprep.subr.bf16.mxu1 %v6764_v0 }
0x2365   : > { %5707 = vmatpush3.bf16.msra.mxu1 %v5706_v23 }
0x2366   : > { %5708 = vmatprep.subr.bf16.mxu1 %v6764_v0 }
0x2369   : > { %5710 = vmatpush3.bf16.msra.mxu1 %v5709_v26 }
0x236a   : > { %5711 = vmatprep.subr.bf16.mxu1 %v6764_v0  ;;  %v5712_v0 = vpack.c.bf16 %v4574_v32, %v4573_v31 }
0x236d   : > { %5713 = vmatpush3.bf16.msra.mxu1 %v5712_v0 }
0x2423   : > { %v4469_v28 = vpop.f32.mrb[28].mxu1 }
0x2424   : > { %v4470_v29 = vadd.f32 %v5117_v27, %v4469_v28  ;;  %v5538_v30 = vpop.f32.mrb[29].mxu1 }
0x2426   : > { %5548 = vmatmul.mubr.msk.f32.vlgmr.msra.gmra.mrb[42].mxu0 %vm1464_vm2, %v4470_v29  ;;  %4473 = vst.msk [vmem:[%s1351_s4] sm:$0xff] %vm1464_vm2, %v4470_v29 }
0x24f9   : > { %v4554_v34 = vpop.f32.mrb[42].mxu0 }
0x24fa   : > { %v4555_v35 = vadd.f32 %v5119_v33, %v4554_v34  ;;  %v5549_v36 = vpop.f32.mrb[43].mxu0 }
0x24fc   : > { %v4558_v37 = vmax.f32 %v4555_v35, 0.0 }
0x24fe   : > { %5583 = vmatmul.mubr.f32.vlgmr.msra.gmra.mrb[30].mxu1 %v4558_v37 }
0x24ff   : > { %6582 = shalt.err (!%p6579_p1)
}
0x2500   : > { %s6583_s4 = scalar_lea.hbm %s7677_s5, 128  ;;  %s6587_s9 = scalar_lea.hbm %s6957_s17, 256 }
0x2501   : > { %p6584_p2 = scmp.ne.s32.totalorder %s7677_s5, %s6583_s4  ;;  %p6588_p4 = scmp.lt.u32.totalorder %s7677_s5, %s6957_s17 }
0x2502   : > { %p6589_p12 = scmp.lt.u32.totalorder %s6587_s9, %s6583_s4  ;;  %p6591_p6 = scmp.lt.u32.totalorder %s6583_s4, %s7677_s5 }
0x2503   : > { %p6585_p0 = pnand %p6584_p2, %p7875_p9 }
0x2504   : > { %p6590_p5 = por %p6589_p12, %p6588_p4 }
0x2505   : > { %p6586_p3 = pneg %p6585_p0 }
0x2506   : > { %p6592_p10 = por %p6591_p6, %p6590_p5 }
0x2508   : > { %p6593_p7 = pnand %p6592_p10, %p6586_p3 }
0x250a   : > { %6596 = shalt.err (!%p6593_p7)
}
0x250b   : > { %5790 = dma.vmem_to_hbm [thread:$0]  (%p7875_p9), %s4673_s6, 128, %s7677_s5, %s4655_s10   ;;  %v5121_v38 = vld [vmem:[#allocation31] ss:$0 sm:$0xff]  ;;  %vm4652_vm5 = vcmask 31751  }
0x250c   : > { %s5124_s11 = sshll.u32 %s6985_s7, 4  ;;  %s1357_s12 = scalar_lea.vmem [#allocation33], %s7668_s28 }
0x250d   : > { %s4685_s8 = sshll.u32 %s1357_s12, 4  ;;  %s7696_s0 = scalar_lea.hbm %s6962_s3, %s5124_s11  ;;  %s7698_s8 = int_to_ptr.vmem [resolvable:$true] %s4685_s8 }
0x250e   : > { %s4660_s4 = scalar_lea.sflag [#allocation34], %s7668_s28  ;;  %s6597_s9 = scalar_lea.vmem %s7698_s8, 16 }
0x250f   : > { %p6598_p8 = scmp.ne.s32.totalorder %s7698_s8, %s6597_s9  ;;  %s6773_s7 = smov [#allocation33]  }
0x2510   : > { %s6601_s5 = sshll.u32 %s6773_s7, 4  ;;  %s6602_s5 = int_to_ptr.vmem [resolvable:$false] %s6601_s5 }
0x2511   : > { %p6599_p11 = pnand %p6598_p8, %p7875_p9  ;;  %s6603_s6 = scalar_lea.vmem %s6602_s5, 32 }
0x2512   : > { %p6604_p1 = scmp.lt.s32.totalorder %s7698_s8, %s6602_s5  ;;  %p6605_p2 = scmp.lt.s32.totalorder %s6603_s6, %s6597_s9 }
0x2513   : > { %p6600_p13 = pneg %p6599_p11 }
0x2514   : > { %p6606_p0 = por %p6605_p2, %p6604_p1 }
0x2516   : > { %p6607_p3 = pnand %p6606_p0, %p6600_p13 }
0x25d1   : > { %v4648_v39 = vpop.f32.mrb[30].mxu1 }
0x25d2   : > { %v4649_v40 = vadd.f32 %v5121_v38, %v4648_v39  ;;  %v5584_v41 = vpop.f32.mrb[31].mxu1 }
0x25d4   : > { %4653 = vst.msk [vmem:[%s1357_s12 - $0x7] sm:$0x80] %vm4652_vm5, %v4649_v40 }
0x25d5   : > { %6610 = shalt.err (!%p6607_p3)
}
0x25d6   : > { %s6611_s28 = scalar_lea.hbm %s7696_s0, 16  ;;  %s6615_s10 = scalar_lea.hbm %s6962_s3, 32 }
0x25d7   : > { %p6612_p4 = scmp.ne.s32.totalorder %s7696_s0, %s6611_s28  ;;  %p6616_p6 = scmp.lt.u32.totalorder %s7696_s0, %s6962_s3 }
0x25d8   : > { %p6617_p10 = scmp.lt.u32.totalorder %s6615_s10, %s6611_s28  ;;  %p6619_p8 = scmp.lt.u32.totalorder %s6611_s28, %s7696_s0 }
0x25d9   : > { %p6613_p12 = pnand %p6612_p4, %p7875_p9 }
0x25da   : > { %p6618_p7 = por %p6617_p10, %p6616_p6 }
0x25db   : > { %p6614_p5 = pneg %p6613_p12 }
0x25dc   : > { %p6620_p11 = por %p6619_p8, %p6618_p7 }
0x25de   : > { %p6621_p13 = pnand %p6620_p11, %p6614_p5 }
0x25e0   : > { %6624 = shalt.err (!%p6621_p13)
}
0x25e1   : > { %5791 = dma.vmem_to_hbm [thread:$0]  (%p7875_p9), %s7698_s8, 16, %s7696_s0, %s4660_s4  }
0x25e2 PF: > { %s7876_s11 = sld [smem:[#allocation73_spill]]  ;;  %s7877_s12 = sld [smem:[#allocation77_spill]] }
0x25e3   : > { %p5897_p1 = scmp.ge.s32.totalorder %s6703_s2, 2 }
0x25e8   : > { %s4697_s9 = sand.u32 1, %s7876_s11   ;;  %p7878_p2 = scmp.ne.s32.totalorder %s7877_s12, 0 }
0x25e9   : > { %s4698_s7 = scalar_lea.sflag [#allocation4], %s4697_s9 }
0x25ea   : > { %p5853_p0 = pnand %p5897_p1, %p7878_p2 }
0x25ec   : > { %6682 = dma.done.wait (!%p5853_p0), %s4698_s7, 128  }
0x25ed   : > { %6684 = vsyncadd (!%p5853_p0), %s4698_s7, 4294967168  ;;  %s4707_s5 = scalar_lea.sflag [#allocation34], %s4697_s9 }
0x25ee   : > { %6686 = dma.done.wait (!%p5853_p0), %s4707_s5, 16  }
0x25ef   : > { %6688 = vsyncadd (!%p5853_p0), %s4707_s5, 4294967280  ;;  %s7879_s2 = sld [smem:[#allocation75_spill]]  ;;  %s7880_s22 = sld [smem:[#allocation74_spill]] }
0x25f0   : > { %s7881_s0 = sld [smem:[#allocation76_spill]]  ;;  %s7882_s28 = smov %s6695_s1 }
0x25f5   : > { %p97_p9 = scmp.ge.s32.totalorder %s7879_s2, 4   ;;  %s7883_s1 = smov %s7880_s22 }
0x25f7   :  { %99 = sbr.rel (!%p97_p9) target bundleno = 82 (0x52), region = 337 }
0x25fe   :  { %4711 = vsyncpa [#allocation3], 1 }
0x25ff   :  { %4713 = vsyncpa [#allocation3 + $0x1], 1 }
0x2600   :  { %4714 = vsyncpa [#allocation6], 1 }
0x2601   :  { %4715 = vsyncpa [#allocation9], 1 }
0x2602   :  { %4716 = vsyncpa [#allocation12], 1 }
0x2603   :  { %4717 = vsyncpa [#allocation15], 1 }
0x2604   :  { %4718 = vsyncpa [#allocation18], 1 }
0x2605   :  { %4719 = vsyncpa [#allocation21], 1 }
0x2606   :  { %4720 = vsyncpa [#allocation24], 1 }
0x2607   :  { %4721 = vsyncpa [#allocation27], 1 }
0x2608   :  { %4722 = vsyncpa [#allocation30], 1 }
0x2609   :  { %4723 = vsyncpa [#allocation4], 1 }
0x260a   :  { %4725 = vsyncpa [#allocation4 + $0x1], 1 }
0x260b   :  { %4726 = vsyncpa [#allocation34], 1 }
0x260c   :  { %4728 = vsyncpa [#allocation34 + $0x1], 1 }

</bundles_post_ra>
